<compile_context>
chip_gen: v7x
topology: tpu7x:2x2x1
jax: 0.10.0
libtpu: 0.0.40
codegen_flags: <defaults>
</compile_context>

<pallas_src>
import functools

import jax
import jax.numpy as jnp
import numpy as np
from jax import lax
from jax.experimental import pallas as pl
from jax.experimental.pallas import tpu as pltpu

_LANE = 128
_UNROLL_MAX_LAYERS = 6          # static unroll up to this many hidden layers


def _round_up(x, m):
    return ((x + m - 1) // m) * m


def _resident_spec(shape):
    """Whole-array, constant-index (VMEM-resident) block, single-buffered.

    The index_map is constant across the grid, so double buffering buys nothing;
    pl.Buffered(1) halves the resident weight footprint (matters for deep/wide
    SIRENs, especially on v7x's 64 MiB VMEM).
    """
    index_map = lambda i: (0,) * len(shape)
    if hasattr(pl, "Buffered"):
        return pl.BlockSpec(shape, index_map, pipeline_mode=pl.Buffered(1))
    return pl.BlockSpec(shape, index_map)


def _siren_fused_kernel(x_ref, w0t_ref, wt_ref, b_ref, o_ref, *, num_hidden):
    """Runs the whole SIREN stack on one row tile, all weights resident in VMEM.

    x_ref  : (tm, B*in)           packed coordinate tile (native width, no padding)
    w0t_ref: (B*in, Dp)           first-layer block-diagonal, omega-folded W^T
    wt_ref : (max(Lh,1), Dp, Dp)  hidden-layer block-diagonal, omega-folded W^T
    b_ref  : (L, 1, Dp)           per-layer omega-folded, lane-tiled bias
    o_ref  : (tm, Dp)             packed output tile (Dp = B*hidden, lane dense)
    """
    # Layer 0: small-K dot straight off the narrow input block (no K padding needed).
    z = jnp.dot(x_ref[...], w0t_ref[...], preferred_element_type=jnp.float32)
    h = jnp.sin(z + b_ref[0])

    def layer(l, h):
        z = jnp.dot(h, wt_ref[l], preferred_element_type=jnp.float32)
        return jnp.sin(z + b_ref[l + 1])

    if num_hidden <= _UNROLL_MAX_LAYERS:
        for l in range(num_hidden):                    # static unroll, small fixed L
            h = layer(l, h)
    else:
        h = lax.fori_loop(0, num_hidden, layer, h)     # bounds live ranges for deep nets

    o_ref[...] = h.astype(o_ref.dtype)


def init_siren_params(key, in_features, hidden_features, hidden_layers,
                      first_omega_0, hidden_omega_0):
    """Deterministic init mirroring SineLayerBase.init_weights semantics.

    Returns a list of (w [out,in], b [out], omega) in the PyTorch layout.
    """
    params = []
    # First layer: weight ~ U(-1/in, 1/in); bias keeps nn.Linear default U(+-1/sqrt(in)).
    key, kw, kb = jax.random.split(key, 3)
    w0 = jax.random.uniform(kw, (hidden_features, in_features), jnp.float32,
                            minval=-1.0 / in_features, maxval=1.0 / in_features)
    b_bound = 1.0 / np.sqrt(in_features)
    b0 = jax.random.uniform(kb, (hidden_features,), jnp.float32,
                            minval=-b_bound, maxval=b_bound)
    params.append((w0, b0, float(first_omega_0)))
    # Hidden layers: weight ~ U(+-sqrt(6/in)/omega); bias = 0.
    bound = np.sqrt(6.0 / hidden_features) / hidden_omega_0
    for _ in range(hidden_layers):
        key, kw = jax.random.split(key)
        w = jax.random.uniform(kw, (hidden_features, hidden_features), jnp.float32,
                               minval=-bound, maxval=bound)
        b = jnp.zeros((hidden_features,), jnp.float32)
        params.append((w, b, float(hidden_omega_0)))
    return params


def pack_siren_params(params):
    """One-time prep: fold omega, transpose, lane-pack via block-diagonal weights.

    For hidden < 128 (and 128 % hidden == 0) we pack B = 128 // hidden independent
    coordinate rows per vreg row: the weights become B-fold block-diagonal and the
    biases are lane-tiled B times.  The packed activation width Dp = B*hidden fills
    all 128 lanes, so the sin/bias VPU work and the MXU N-width are fully utilized
    while the HBM input/output blocks stay at their native (unpadded) widths.
    Padding rows/cols inside the block-diagonal are exactly zero -> math is exact.
    """
    in_features = params[0][0].shape[1]
    hidden = params[0][0].shape[0]
    if hidden < _LANE and _LANE % hidden == 0:
        b_pack = _LANE // hidden
    else:
        b_pack = 1
    k_in = b_pack * in_features
    d_p = b_pack * hidden

    def block_diag(wt):                     # (k, n) -> (b_pack*k, b_pack*n)
        k, n = wt.shape
        out = np.zeros((b_pack * k, b_pack * n), np.float32)
        for r in range(b_pack):
            out[r * k:(r + 1) * k, r * n:(r + 1) * n] = wt
        return out

    num_layers = len(params)
    num_hidden = num_layers - 1

    w0, b0, omega0 = params[0]
    w0t = block_diag(np.asarray(omega0 * w0, np.float32).T)           # (k_in, d_p)

    wt_hidden = np.zeros((max(num_hidden, 1), d_p, d_p), np.float32)  # dummy row if Lh == 0
    b_all = np.zeros((num_layers, 1, d_p), np.float32)
    b_all[0, 0, :] = np.tile(np.asarray(omega0 * b0, np.float32), b_pack)
    for l, (w, b, omega) in enumerate(params[1:]):
        wt_hidden[l] = block_diag(np.asarray(omega * w, np.float32).T)
        b_all[l + 1, 0, :] = np.tile(np.asarray(omega * b, np.float32), b_pack)

    return dict(
        w0t=jnp.asarray(w0t), wt=jnp.asarray(wt_hidden), b=jnp.asarray(b_all),
        b_pack=b_pack, in_features=in_features, hidden=hidden,
        k_in=k_in, d_p=d_p, num_hidden=num_hidden,
    )


def siren_forward(x, packed, *, tm_target=1024):
    """Fused SIREN forward: x [N, in_features] -> [N, hidden_features]."""
    w0t, wt, b_all = packed["w0t"], packed["wt"], packed["b"]
    b_pack, k_in, d_p = packed["b_pack"], packed["k_in"], packed["d_p"]
    num_hidden = packed["num_hidden"]

    n_rows, d_in = x.shape
    assert d_in == packed["in_features"]
    x = x.astype(jnp.float32)

    # Row-pad only to a multiple of the packing factor (<= b_pack-1 rows); the row
    # tile tail is handled by Pallas partial-block masking, not host-side padding.
    n_pack = _round_up(n_rows, b_pack)
    if n_pack != n_rows:
        x = jnp.pad(x, ((0, n_pack - n_rows), (0, 0)))
    rows = n_pack // b_pack
    x_packed = x.reshape(rows, k_in)          # contiguous reshape: free, no extra HBM pass

    # Large row tile to amortize per-step overhead; tiny inputs run as one full block.
    if rows <= tm_target:
        tm = rows                              # block dim == full array dim: always legal
    else:
        tm = tm_target                         # multiple of 8; cdiv grid, partial tail block
    grid = pl.cdiv(rows, tm)

    # VMEM budget: resident weights (single-buffered) + double-buffered I/O tiles
    # + activation temporaries + headroom; capped at 48 MiB (safe on v7x's 64 MiB).
    # TODO(synk): for very deep/wide SIRENs whose resident weights approach the cap,
    # stream one layer's W^T per step (emit_pipeline) instead of keeping all resident.
    weight_bytes = 4 * int(w0t.size + wt.size + b_all.size)
    io_bytes = 2 * tm * (k_in + d_p) * 4
    act_bytes = 2 * tm * d_p * 4
    vmem_limit = int(min(max(weight_bytes + io_bytes + act_bytes + (8 << 20), 16 << 20),
                         48 << 20))

    kernel = functools.partial(_siren_fused_kernel, num_hidden=num_hidden)

    out_packed = pl.pallas_call(
        kernel,
        out_shape=jax.ShapeDtypeStruct((rows, d_p), jnp.float32),
        grid_spec=pltpu.PrefetchScalarGridSpec(
            num_scalar_prefetch=0,
            grid=(grid,),
            in_specs=[
                pl.BlockSpec((tm, k_in), lambda i: (i, 0)),    # packed coords, native width
                _resident_spec(w0t.shape),                     # first-layer W^T (resident)
                _resident_spec(wt.shape),                      # hidden-layer W^T stack
                _resident_spec(b_all.shape),                   # biases
            ],
            out_specs=pl.BlockSpec((tm, d_p), lambda i: (i, 0)),  # lane-dense packed output
        ),
        compiler_params=pltpu.CompilerParams(
            dimension_semantics=("parallel",),
            vmem_limit_bytes=vmem_limit,
        ),
    )(x_packed, w0t, wt, b_all)

    # Unpack: free contiguous reshape, then a cheap row slice only if rows were padded.
    out = out_packed.reshape(n_pack, packed["hidden"])
    return out[:n_rows] if n_pack != n_rows else out


if __name__ == "__main__":
    # Small, SIREN-consistent shapes: N coordinates of dimension in_features.
    N = 300
    in_features = 2
    hidden_features = 32
    hidden_layers = 2
    first_omega_0 = 30.0
    hidden_omega_0 = 30.0

    key = jax.random.PRNGKey(0)
    key, kx = jax.random.split(key)
    x = jax.random.uniform(kx, (N, in_features), jnp.float32, minval=-1.0, maxval=1.0)

    params = init_siren_params(key, in_features, hidden_features, hidden_layers,
                               first_omega_0, hidden_omega_0)
    packed = pack_siren_params(params)

    out = siren_forward(x, packed)
    out = jax.block_until_ready(out)

    # Sanity check against a pure-JAX reference mirroring the PyTorch module:
    # per layer, sin(omega * (x @ W^T + b)).
    ref = x
    for (w, b, omega) in params:
        ref = jnp.sin(omega * (ref @ w.T + b))
    assert out.shape == (N, hidden_features)
    np.testing.assert_allclose(np.asarray(out), np.asarray(ref), rtol=1e-4, atol=1e-4)

    print("KERNEL_OK")
</pallas_src>

<mosaic_0001>
module attributes {stable_mosaic.version = 11 : i64} {
  func.func @_siren_fused_kernel(%arg0: i32, %arg1: memref<75x8xf32, #tpu.memory_space<vmem>>, %arg2: memref<8x128xf32, #tpu.memory_space<vmem>>, %arg3: memref<2x128x128xf32, #tpu.memory_space<vmem>>, %arg4: memref<3x1x128xf32, #tpu.memory_space<vmem>>, %arg5: memref<75x128xf32, #tpu.memory_space<vmem>>) attributes {dimension_semantics = [#tpu.dimension_semantics<parallel>], iteration_bounds = array<i64: 1>, scalar_prefetch = 0 : i64, scratch_operands = 0 : i64, tpu.core_type = #tpu.core_type<tc>, window_params = [{transform_indices = @transform_0, window_bounds = array<i64: 75, 8>}, {pipeline_mode = #tpu.pipeline_mode<synchronous>, transform_indices = @transform_1, window_bounds = array<i64: 8, 128>}, {pipeline_mode = #tpu.pipeline_mode<synchronous>, transform_indices = @transform_2, window_bounds = array<i64: 2, 128, 128>}, {pipeline_mode = #tpu.pipeline_mode<synchronous>, transform_indices = @transform_3, window_bounds = array<i64: 3, 1, 128>}, {transform_indices = @transform_4, window_bounds = array<i64: 75, 128>}]} {
    %c0 = arith.constant 0 : index
    %c0_0 = arith.constant 0 : index
    %0 = vector.load %arg1[%c0, %c0_0] : memref<75x8xf32, #tpu.memory_space<vmem>>, vector<75x8xf32>
    %c0_1 = arith.constant 0 : index
    %c0_2 = arith.constant 0 : index
    %1 = vector.load %arg2[%c0_1, %c0_2] : memref<8x128xf32, #tpu.memory_space<vmem>>, vector<8x128xf32>
    %cst = arith.constant dense<0.000000e+00> : vector<75x128xf32>
    %2 = tpu.matmul %0, %1, %cst {dimension_numbers = #tpu.dot_dimension_numbers<[1], [0], [0], [1], [0, 0, 1, 1], [], []>} : vector<75x8xf32>, vector<8x128xf32>, vector<75x128xf32> -> vector<75x128xf32>
    %c0_3 = arith.constant 0 : index
    %c0_4 = arith.constant 0 : index
    %c0_5 = arith.constant 0 : index
    %3 = vector.load %arg4[%c0_3, %c0_4, %c0_5] : memref<3x1x128xf32, #tpu.memory_space<vmem>>, vector<1x1x128xf32>
    %4 = vector.shape_cast %3 : vector<1x1x128xf32> to vector<1x128xf32>
    %5 = vector.broadcast %4 : vector<1x128xf32> to vector<75x128xf32>
    %6 = arith.addf %2, %5 : vector<75x128xf32>
    %7 = math.sin %6 : vector<75x128xf32>
    %c0_6 = arith.constant 0 : index
    %c0_7 = arith.constant 0 : index
    %c0_8 = arith.constant 0 : index
    %8 = vector.load %arg3[%c0_6, %c0_7, %c0_8] : memref<2x128x128xf32, #tpu.memory_space<vmem>>, vector<1x128x128xf32>
    %9 = vector.shape_cast %8 : vector<1x128x128xf32> to vector<128x128xf32>
    %cst_9 = arith.constant dense<0.000000e+00> : vector<75x128xf32>
    %10 = tpu.matmul %7, %9, %cst_9 {dimension_numbers = #tpu.dot_dimension_numbers<[1], [0], [0], [1], [0, 0, 1, 1], [], []>} : vector<75x128xf32>, vector<128x128xf32>, vector<75x128xf32> -> vector<75x128xf32>
    %c1 = arith.constant 1 : index
    %c0_10 = arith.constant 0 : index
    %c0_11 = arith.constant 0 : index
    %11 = vector.load %arg4[%c1, %c0_10, %c0_11] : memref<3x1x128xf32, #tpu.memory_space<vmem>>, vector<1x1x128xf32>
    %12 = vector.shape_cast %11 : vector<1x1x128xf32> to vector<1x128xf32>
    %13 = vector.broadcast %12 : vector<1x128xf32> to vector<75x128xf32>
    %14 = arith.addf %10, %13 : vector<75x128xf32>
    %15 = math.sin %14 : vector<75x128xf32>
    %c1_12 = arith.constant 1 : index
    %c0_13 = arith.constant 0 : index
    %c0_14 = arith.constant 0 : index
    %16 = vector.load %arg3[%c1_12, %c0_13, %c0_14] : memref<2x128x128xf32, #tpu.memory_space<vmem>>, vector<1x128x128xf32>
    %17 = vector.shape_cast %16 : vector<1x128x128xf32> to vector<128x128xf32>
    %cst_15 = arith.constant dense<0.000000e+00> : vector<75x128xf32>
    %18 = tpu.matmul %15, %17, %cst_15 {dimension_numbers = #tpu.dot_dimension_numbers<[1], [0], [0], [1], [0, 0, 1, 1], [], []>} : vector<75x128xf32>, vector<128x128xf32>, vector<75x128xf32> -> vector<75x128xf32>
    %c2 = arith.constant 2 : index
    %c0_16 = arith.constant 0 : index
    %c0_17 = arith.constant 0 : index
    %19 = vector.load %arg4[%c2, %c0_16, %c0_17] : memref<3x1x128xf32, #tpu.memory_space<vmem>>, vector<1x1x128xf32>
    %20 = vector.shape_cast %19 : vector<1x1x128xf32> to vector<1x128xf32>
    %21 = vector.broadcast %20 : vector<1x128xf32> to vector<75x128xf32>
    %22 = arith.addf %18, %21 : vector<75x128xf32>
    %23 = math.sin %22 : vector<75x128xf32>
    %c0_18 = arith.constant 0 : index
    %c0_19 = arith.constant 0 : index
    %24 = vector.load %arg5[%c0_18, %c0_19] : memref<75x128xf32, #tpu.memory_space<vmem>>, vector<75x128xf32>
    tpu.vector_store %arg5[%c0_18, %c0_19], %23 {strides = array<i32>} : memref<75x128xf32, #tpu.memory_space<vmem>>, vector<75x128xf32>,
    return
  }
  func.func @transform_0(%arg0: i32) -> (i32, i32) {
    %c0_i32 = arith.constant 0 : i32
    %c0_i32_0 = arith.constant 0 : i32
    return %arg0, %c0_i32 : i32, i32
  }
  func.func @transform_1(%arg0: i32) -> (i32, i32) {
    %c0_i32 = arith.constant 0 : i32
    %c0_i32_0 = arith.constant 0 : i32
    %c0_i32_1 = arith.constant 0 : i32
    return %c0_i32, %c0_i32_0 : i32, i32
  }
  func.func @transform_2(%arg0: i32) -> (i32, i32, i32) {
    %c0_i32 = arith.constant 0 : i32
    %c0_i32_0 = arith.constant 0 : i32
    %c0_i32_1 = arith.constant 0 : i32
    %c0_i32_2 = arith.constant 0 : i32
    return %c0_i32, %c0_i32_0, %c0_i32_1 : i32, i32, i32
  }
  func.func @transform_3(%arg0: i32) -> (i32, i32, i32) {
    %c0_i32 = arith.constant 0 : i32
    %c0_i32_0 = arith.constant 0 : i32
    %c0_i32_1 = arith.constant 0 : i32
    %c0_i32_2 = arith.constant 0 : i32
    return %c0_i32, %c0_i32_0, %c0_i32_1 : i32, i32, i32
  }
  func.func @transform_4(%arg0: i32) -> (i32, i32) {
    %c0_i32 = arith.constant 0 : i32
    %c0_i32_0 = arith.constant 0 : i32
    return %arg0, %c0_i32 : i32, i32
  }
}

</mosaic_0001>

<bundles_post_ra>
// kernel: tpu_custom_call.1
= control target key start
LH: loop header
LB: loop body
LE: loop exit
PB: predicated region body
PF: predicated region fallthrough
CT: control target
= control target key end

     0   :  { %9 = vsyncpa [#allocation3], 0  ;;  %s6897_s0 = inlined_call_operand.vmem [shape: f32[75,8], index: 0, kind: input, shape index: {}]   ;;  %s6898_s1 = inlined_call_operand.vmem [shape: f32[8,128], index: 1, kind: input, shape index: {}]   ;;  %s6899_s2 = inlined_call_operand.hbm [shape: f32[2,128,128], index: 2, kind: input, shape index: {}]   ;;  %s6900_s3 = inlined_call_operand.vmem [shape: f32[3,1,128], index: 3, kind: input, shape index: {}]   ;;  %s6901_s4 = inlined_call_operand.hbm [shape: f32[75,128], index: 4, kind: output, shape index: {}]  }
   0x1   :  { %10 = vsyncpa [#allocation4], 0  ;;  %s4295_s15 = smov [#allocation2]   ;;  %s4247_s19 = scalar_lea.hbm %s6899_s2, 4096 }
   0x2   :  { %s20_s16 = sshll.u32 %s4295_s15, 4  ;;  %p4248_p0 = scmp.ne.s32.totalorder %s6899_s2, %s4247_s19  ;;  %s21_s16 = int_to_ptr.vmem [resolvable:$true] %s20_s16 }
   0x3   :  { %p4251_p1 = scmp.lt.u32.totalorder %s4247_s19, %s6899_s2 }
   0x5   :  { %p4253_p2 = pnand %p4251_p1, %p4248_p0 }
   0x7   :  { %4256 = shalt.err (!%p4253_p2)
}
   0x8   :  { %s4257_s24 = scalar_lea.vmem %s21_s16, 4096  ;;  %p4262_p4 = scmp.lt.s32.totalorder %s21_s16, %s21_s16 }
   0x9   :  { %p4258_p3 = scmp.ne.s32.totalorder %s21_s16, %s4257_s24  ;;  %p4263_p5 = scmp.lt.s32.totalorder %s4257_s24, %s4257_s24 }
   0xb   :  { %p4264_p6 = por %p4263_p5, %p4262_p4 }
   0xd   :  { %p4265_p7 = pnand %p4264_p6, %p4258_p3 }
   0xf   :  { %4268 = shalt.err (!%p4265_p7)
}
  0x10   :  { %s4296_s25 = smov 128   ;;  %s4297_s26 = smov 8  }
  0x11   :  { %26 = dma.hbm_to_vmem [thread:$0]  %s6899_s2, 4096, %s21_s16, [#allocation3], %s4296_s25, %s4296_s25, %s4297_s26  }
  0x12   :  { %4291 = dma.done.wait [#allocation3], 4096  }
  0x13   :  { %4292 = vsyncadd [#allocation3], 4294963200  ;;  %vm50_vm0 = vcmask 64512   ;;  %v42_v0 = vld [vmem:[%s6898_s1] sm:$0xff]  ;;  %v33_v2 = vld [vmem:[%s6897_s0 + $0x8] sm:$0xff] }
  0x14   :  { %v32_v1 = vld [vmem:[%s6897_s0] sm:$0xff]  ;;  %3820 = vmatprep.subr.mxu0 %v42_v0  ;;  %v34_v3 = vld [vmem:[%s6897_s0 + $0x10] sm:$0xff]  ;;  %v35_v4 = vld [vmem:[%s6897_s0 + $0x18] sm:$0xff]  ;;  %v6912_v39 = vmov 683565275  }
  0x15   :  { %3822 = vmatprep.mubr.msk.f32.mxu0 %vm50_vm0, %v32_v1  ;;  %3821 = vmatpush3.msra.mxu0 %v42_v0  ;;  %v36_v5 = vld [vmem:[%s6897_s0 + $0x20] sm:$0xff]  ;;  %v37_v6 = vld [vmem:[%s6897_s0 + $0x28] sm:$0xff]  ;;  %v38_v7 = vld [vmem:[%s6897_s0 + $0x30] sm:$0xff]  ;;  %v6909_v41 = vmov 2475754826  }
  0x16   :  { %3823 = vmatmul.mubr.msk.f32.vlgmr.msra.gmra.mrb[0].mxu0 %vm50_vm0, %v33_v2  ;;  %v39_v8 = vld [vmem:[%s6897_s0 + $0x38] sm:$0xff]  ;;  %v40_v9 = vld [vmem:[%s6897_s0 + $0x40] sm:$0xff]  ;;  %v41_v10 = vld [vmem:[%s6897_s0 + $0x48] sm:$0x7]  ;;  %v6907_v46 = vmov 2131351028  }
  0x17   :  { %3825 = vmatprep.mubr.msk.f32.mxu0 %vm50_vm0, %v34_v3  ;;  %v4391_v11 = vld [vmem:[%s6900_s3] ss:$0 sm:$0xff]  ;;  %v6922_v49 = vmov 2102212464   ;;  %v6924_v53 = vmov 920167782  }
  0x18   :  { %v6914_v56 = vmov 1326507024  }
  0x1a   :  { %3826 = vmatmul.mubr.msk.f32.gmra.mrb[2].mxu0 %vm50_vm0, %v35_v4 }
  0x1b   :  { %3828 = vmatprep.mubr.msk.f32.mxu0 %vm50_vm0, %v36_v5 }
  0x1e   :  { %3829 = vmatmul.mubr.msk.f32.gmra.mrb[4].mxu0 %vm50_vm0, %v37_v6 }
  0x1f   :  { %3831 = vmatprep.mubr.msk.f32.mxu0 %vm50_vm0, %v38_v7 }
  0x22   :  { %3832 = vmatmul.mubr.msk.f32.gmra.mrb[6].mxu0 %vm50_vm0, %v39_v8 }
  0x23   :  { %3834 = vmatprep.mubr.msk.f32.mxu0 %vm50_vm0, %v40_v9 }
  0x26   :  { %3835 = vmatmul.mubr.msk.f32.gmra.mrb[8].mxu0 %vm50_vm0, %v41_v10 }
  0xe9   :  { %v3824_v12 = vpop.f32.mrb[0].mxu0 }
  0xea   :  { %v4394_v13 = vadd.f32 %v3824_v12, %v4391_v11  ;;  %v4396_v14 = vpop.f32.mrb[1].mxu0 }
  0xec   :  { %6960 = vst [vmem:[#allocation8_spill] sm:$0xff] %v4394_v13  ;;  %v303_v15 = vand.u32 2139095040, %v4394_v13  ;;  %v6906_v20 = vand.u32 2147483647, %v4394_v13 }
  0xed   :  { %v3827_v16 = vpop.f32.mrb[2].mxu0 }
  0xee   :  { %v304_v17 = vshrl.u32 %v303_v15, 23  ;;  %v4400_v18 = vadd.f32 %v3827_v16, %v4391_v11  ;;  %v157_v19 = vpop.f32.mrb[3].mxu0  ;;  %v307_v27 = vand.u32 8388607, %v6906_v20 }
  0xef   :  { %v4405_v23 = vadd.f32 %v4391_v11, %v157_v19 }
  0xf0   :  { %v3637_v21 = vadd.s32 4294967169, %v304_v17  ;;  %v511_v22 = vand.u32 2139095040, %v4400_v18  ;;  %v308_v34 = vor.u32 8388608, %v307_v27  ;;  %v6904_v36 = vand.u32 2147483647, %v4400_v18 }
  0xf1   :  { %v4407_v24 = vpop.f32.mrb[4].mxu0  ;;  %v407_v30 = vand.u32 2139095040, %v4405_v23 }
  0xf2   :  { %v310_v25 = vadd.s32 1, %v3637_v21  ;;  %v4409_v26 = vpop.f32.mrb[5].mxu0  ;;  %v512_v28 = vshrl.u32 %v511_v22, 23  ;;  %v348_v9 = vshll.u32 %v308_v34, 8  ;;  %v515_v34 = vand.u32 8388607, %v6904_v36 }
  0xf3   :  { %v408_v43 = vshrl.u32 %v407_v30, 23 }
  0xf4   :  { %vm311_vm1 = vcmp.gt.s32.totalorder %v310_v25, 0  ;;  %v3645_v37 = vadd.s32 4294967169, %v512_v28 }
  0xf5   :  { %v312_v29 = vsel %vm311_vm1, %v310_v25, 0  ;;  %v4414_v31 = vpop.f32.mrb[6].mxu0  ;;  %v3641_v3 = vadd.s32 4294967169, %v408_v43 }
  0xf6   :  { %v314_v32 = vand.u32 31, %v312_v29  ;;  %v4416_v33 = vpop.f32.mrb[7].mxu0  ;;  %v313_v38 = vshrl.u32 %v312_v29, 5  ;;  %v518_v61 = vadd.s32 1, %v3645_v37  ;;  %v4443_v29 = vadd.f32 %v4391_v11, %v4396_v14 }
  0xf7   :  { %v414_v25 = vadd.s32 1, %v3641_v3 }
  0xf8   :  { %v315_v35 = vsub.s32 32, %v314_v32  ;;  %v317_v40 = vshll.u32 %v6912_v39, %v314_v32  ;;  %v320_v42 = vshll.u32 %v6909_v41, %v314_v32  ;;  %v323_v48 = vshll.u32 %v6907_v46, %v314_v32 }
  0xf9   :  { %v4421_v44 = vpop.f32.mrb[8].mxu0  ;;  %v326_v52 = vshll.u32 %v6922_v49, %v314_v32  ;;  %v329_v55 = vshll.u32 %v6924_v53, %v314_v32  ;;  %vm332_vm2 = vcmp.lt.s32.totalorder %v313_v38, 1  ;;  %vm335_vm3 = vcmp.lt.s32.totalorder %v313_v38, 4 }
  0xfa   :  { %v318_v45 = vshrl.u32 %v6909_v41, %v315_v35  ;;  %v321_v47 = vshrl.u32 %v6907_v46, %v315_v35  ;;  %v324_v50 = vshrl.u32 %v6922_v49, %v315_v35  ;;  %v4427_v51 = vpop.f32.mrb[9].mxu0  ;;  %v327_v54 = vshrl.u32 %v6924_v53, %v315_v35 }
  0xfb   :  { %v330_v57 = vshrl.u32 %v6914_v56, %v315_v35  ;;  %v316_v4 = vshrl.u32 %v6912_v39, %v315_v35  ;;  %vm334_vm4 = vcmp.lt.s32.totalorder %v313_v38, 3  ;;  %vm333_vm5 = vcmp.lt.s32.totalorder %v313_v38, 2 }
  0xfc   :  { %v319_v58 = vor.u32 %v318_v45, %v317_v40  ;;  %v322_v59 = vor.u32 %v321_v47, %v320_v42  ;;  %v325_v60 = vor.u32 %v324_v50, %v323_v48  ;;  %v328_v62 = vor.u32 %v327_v54, %v326_v52 }
  0xfd   :  { %v331_v63 = vor.u32 %v330_v57, %v329_v55  ;;  %vm519_vm6 = vcmp.gt.s32.totalorder %v518_v61, 0  ;;  %v6905_v35 = vand.u32 2147483647, %v4405_v23  ;;  %vm415_vm8 = vcmp.gt.s32.totalorder %v414_v25, 0 }
  0xfe   :  { %v337_v0 = vsel %vm335_vm3, %v325_v60, 2102212464  ;;  %v340_v1 = vsel %vm332_vm2, %v319_v58, %v322_v59  ;;  %v344_v2 = vsel %vm332_vm2, %v322_v59, %v325_v60  ;;  %v341_v5 = vsel %vm335_vm3, %v328_v62, 920167782 }
  0xff   :  { %v345_v6 = vsel %vm335_vm3, %v331_v63, 1326507024  ;;  %v342_v7 = vsel %vm334_vm4, %v325_v60, %v341_v5  ;;  %v336_v10 = vsel %vm332_vm2, %v316_v4, %v319_v58  ;;  %v338_v12 = vsel %vm334_vm4, %v322_v59, %v337_v0 }
 0x100   :  { %v346_v8 = vsel %vm334_vm4, %v328_v62, %v345_v6  ;;  %v343_v15 = vsel %vm333_vm5, %v340_v1, %v342_v7  ;;  %v339_v27 = vsel %vm333_vm5, %v336_v10, %v338_v12  ;;  %v520_v28 = vsel %vm519_vm6, %v518_v61, 0 }
 0x101   :  { %v347_v16 = vsel %vm333_vm5, %v344_v2, %v346_v8  ;;  %v4437_v21 = vmul.u32.u64.low %v348_v9, %v343_v15  ;;  %v4438_v22 = vmul.u32.u64.high %v348_v9, %v343_v15, %v4437_v21  ;;  %v522_v30 = vand.u32 31, %v520_v28 }
 0x102   :  { %v4434_v17 = vmul.u32.u64.low %v348_v9, %v347_v16  ;;  %v4435_v19 = vmul.u32.u64.high %v348_v9, %v347_v16, %v4434_v17  ;;  %v355_v37 = vmul.u32 %v348_v9, %v339_v27  ;;  %v4451_v38 = vshrl.u32 %v520_v28, 5 }
 0x103   :  { %v358_v32 = vadd.s32 1, %v4438_v22  ;;  %v523_v40 = vsub.s32 32, %v522_v30  ;;  %v525_v14 = vshll.u32 %v6912_v39, %v522_v30  ;;  %v528_v43 = vshll.u32 %v6909_v41, %v522_v30 }
 0x104   :  { %vm357_vm7 = vc.u32 %v4435_v19, %v4437_v21  ;;  %v531_v45 = vshll.u32 %v6907_v46, %v522_v30  ;;  %v534_v52 = vshll.u32 %v6922_v49, %v522_v30  ;;  %v537_v57 = vshll.u32 %v6924_v53, %v522_v30 }
 0x105   :  { %v359_v42 = vsel %vm357_vm7, %v358_v32, %v4438_v22  ;;  %v526_v48 = vshrl.u32 %v6909_v41, %v523_v40  ;;  %v529_v50 = vshrl.u32 %v6907_v46, %v523_v40  ;;  %v532_v54 = vshrl.u32 %v6922_v49, %v523_v40 }
 0x106   :  { %v360_v47 = vadd.s32 %v359_v42, %v355_v37  ;;  %v535_v55 = vshrl.u32 %v6924_v53, %v523_v40  ;;  %v538_v58 = vshrl.u32 %v6914_v56, %v523_v40  ;;  %v516_v60 = vor.u32 8388608, %v515_v34 }
 0x107   :  { %v527_v61 = vor.u32 %v526_v48, %v525_v14  ;;  %v530_v62 = vor.u32 %v529_v50, %v528_v43  ;;  %v533_v63 = vor.u32 %v532_v54, %v531_v45  ;;  %vm540_vm9 = vcmp.lt.s32.totalorder %v4451_v38, 1 }
 0x108   :  { %v361_v59 = vadd.s32 536870912, %v360_v47  ;;  %v536_v0 = vor.u32 %v535_v55, %v534_v52  ;;  %v539_v1 = vor.u32 %v538_v58, %v537_v57  ;;  %vm543_vm10 = vcmp.lt.s32.totalorder %v4451_v38, 4 }
 0x109   :  { %v548_v3 = vsel %vm540_vm9, %v527_v61, %v530_v62  ;;  %v416_v4 = vsel %vm415_vm8, %v414_v25, 0  ;;  %vm542_vm11 = vcmp.lt.s32.totalorder %v4451_v38, 3  ;;  %v552_v6 = vsel %vm540_vm9, %v530_v62, %v533_v63 }
 0x10a   :  { %v4465_v2 = vshrl.u32 %v361_v59, 30  ;;  %v549_v5 = vsel %vm543_vm10, %v536_v0, 920167782  ;;  %v553_v7 = vsel %vm543_vm10, %v539_v1, 1326507024  ;;  %vm541_vm12 = vcmp.lt.s32.totalorder %v4451_v38, 2 }
 0x10b   :  { %v550_v8 = vsel %vm542_vm11, %v533_v63, %v549_v5  ;;  %v554_v9 = vsel %vm542_vm11, %v536_v0, %v553_v7  ;;  %v556_v10 = vshll.u32 %v516_v60, 8  ;;  %v545_v12 = vsel %vm543_vm10, %v533_v63, 2102212464 }
 0x10c   :  { %6961 = vst [vmem:[#allocation9_spill] sm:$0xff] %v4465_v2  ;;  %v551_v15 = vsel %vm541_vm12, %v548_v3, %v550_v8  ;;  %v555_v16 = vsel %vm541_vm12, %v552_v6, %v554_v9  ;;  %v418_v17 = vand.u32 31, %v416_v4  ;;  %v363_v22 = vshll.u32 %v4465_v2, 30 }
 0x10d   :  { %v524_v25 = vshrl.u32 %v6912_v39, %v523_v40  ;;  %v4485_v27 = vmul.u32.u64.low %v556_v10, %v555_v16  ;;  %v4486_v28 = vmul.u32.u64.high %v556_v10, %v555_v16, %v4485_v27  ;;  %v411_v34 = vand.u32 8388607, %v6905_v35 }
 0x10e   :  { %v4488_v30 = vmul.u32.u64.low %v556_v10, %v551_v15  ;;  %v4489_v32 = vmul.u32.u64.high %v556_v10, %v551_v15, %v4488_v30  ;;  %v419_v37 = vsub.s32 32, %v418_v17  ;;  %v546_v14 = vsel %vm542_vm11, %v530_v62, %v545_v12 }
 0x10f   :  { %v544_v42 = vsel %vm540_vm9, %v524_v25, %v527_v61  ;;  %v417_v43 = vshrl.u32 %v416_v4, 5  ;;  %v421_v40 = vshll.u32 %v6912_v39, %v418_v17  ;;  %v424_v48 = vshll.u32 %v6909_v41, %v418_v17 }
 0x110   :  { %v422_v45 = vshrl.u32 %v6909_v41, %v419_v37  ;;  %v425_v50 = vshrl.u32 %v6907_v46, %v419_v37  ;;  %v428_v52 = vshrl.u32 %v6922_v49, %v419_v37  ;;  %v4503_v54 = vsub.s32 %v360_v47, %v363_v22 }
 0x111   :  { %v427_v55 = vshll.u32 %v6907_v46, %v418_v17  ;;  %v430_v57 = vshll.u32 %v6922_v49, %v418_v17  ;;  %v431_v58 = vshrl.u32 %v6924_v53, %v419_v37  ;;  %vm565_vm13 = vc.u32 %v4486_v28, %v4488_v30 }
 0x112   :  { %v566_v59 = vadd.s32 1, %v4489_v32  ;;  %v423_v60 = vor.u32 %v422_v45, %v421_v40  ;;  %v426_v61 = vor.u32 %v425_v50, %v424_v48  ;;  %v434_v0 = vshrl.u32 %v6914_v56, %v419_v37 }
 0x113   :  { %v429_v62 = vor.u32 %v428_v52, %v427_v55  ;;  %v432_v63 = vor.u32 %v431_v58, %v430_v57  ;;  %v199_v47 = vand.u32 2139095040, %v4443_v29  ;;  %v547_v1 = vsel %vm541_vm12, %v544_v42, %v546_v14 }
 0x114   :  { %v412_v3 = vor.u32 8388608, %v411_v34  ;;  %v433_v4 = vshll.u32 %v6924_v53, %v418_v17  ;;  %v366_v5 = vsub.s32 0, %v4503_v54  ;;  %v567_v6 = vsel %vm565_vm13, %v566_v59, %v4489_v32 }
 0x115   :  { %vm436_vm14 = vcmp.lt.s32.totalorder %v417_v43, 1  ;;  %vm439_vm15 = vcmp.lt.s32.totalorder %v417_v43, 4  ;;  %vm438_vm0 = vcmp.lt.s32.totalorder %v417_v43, 3  ;;  %v563_v12 = vmul.u32 %v556_v10, %v547_v1 }
 0x116   :  { %v435_v7 = vor.u32 %v434_v0, %v433_v4  ;;  %v444_v8 = vsel %vm436_vm14, %v423_v60, %v426_v61  ;;  %v445_v9 = vsel %vm439_vm15, %v432_v63, 920167782  ;;  %vm437_vm1 = vcmp.lt.s32.totalorder %v417_v43, 2 }
 0x117   :  { %v446_v38 = vsel %vm438_vm0, %v429_v62, %v445_v9  ;;  %v200_v15 = vshrl.u32 %v199_v47, 23  ;;  %v452_v17 = vshll.u32 %v412_v3, 8  ;;  %v4524_v22 = vadd.f32 %v4407_v24, %v4391_v11 }
 0x118   :  { %v447_v16 = vsel %vm437_vm1, %v444_v8, %v446_v38  ;;  %v568_v25 = vadd.s32 %v567_v6, %v563_v12  ;;  %v420_v27 = vshrl.u32 %v6912_v39, %v419_v37  ;;  %v441_v32 = vsel %vm439_vm15, %v429_v62, 2102212464 }
 0x119   :  { %v448_v34 = vsel %vm436_vm14, %v426_v61, %v429_v62  ;;  %v3638_v10 = vmin.u32 %v366_v5, %v4503_v54  ;;  %v449_v42 = vsel %vm439_vm15, %v435_v7, 1326507024  ;;  %v442_v48 = vsel %vm438_vm0, %v426_v61, %v441_v32 }
 0x11a   :  { %v4531_v14 = vmul.u32.u64.low %v452_v17, %v447_v16  ;;  %v4532_v40 = vmul.u32.u64.high %v452_v17, %v447_v16, %v4531_v14  ;;  %v450_v45 = vsel %vm438_vm0, %v432_v63, %v449_v42  ;;  %v440_v24 = vsel %vm436_vm14, %v420_v27, %v423_v60 }
 0x11b   :  { %v451_v37 = vsel %vm437_vm1, %v448_v34, %v450_v45  ;;  %v719_v50 = vand.u32 2139095040, %v4524_v22  ;;  %v3633_v52 = vadd.s32 4294967169, %v200_v15  ;;  %v569_v55 = vadd.s32 536870912, %v568_v25 }
 0x11c   :  { %v368_v57 = vclz %v3638_v10  ;;  %v4540_v58 = vmul.u32.u64.low %v452_v17, %v451_v37  ;;  %v4541_v59 = vmul.u32.u64.high %v452_v17, %v451_v37, %v4540_v58  ;;  %v443_v0 = vsel %vm437_vm1, %v440_v24, %v442_v48 }
 0x11d   :  { %v720_v62 = vshrl.u32 %v719_v50, 23  ;;  %v462_v47 = vadd.s32 1, %v4532_v40  ;;  %v4547_v60 = vadd.f32 %v4391_v11, %v4409_v26  ;;  %v206_v61 = vadd.s32 1, %v3633_v52 }
 0x11e   :  { %v4549_v1 = vshrl.u32 %v569_v55, 30  ;;  %v3639_v3 = vadd.s32 4294967294, %v368_v57  ;;  %v459_v4 = vmul.u32 %v452_v17, %v443_v0  ;;  %vm461_vm2 = vc.u32 %v4541_v59, %v4531_v14 }
 0x11f   :  { %v3653_v63 = vadd.s32 4294967169, %v720_v62  ;;  %v463_v6 = vsel %vm461_vm2, %v462_v47, %v4532_v40  ;;  %v6902_v43 = vand.u32 2147483647, %v4524_v22  ;;  %v615_v8 = vand.u32 2139095040, %v4547_v60 }
 0x120   :  { %6962 = vst [vmem:[#allocation10_spill] sm:$0xff] %v4549_v1  ;;  %v464_v7 = vadd.s32 %v463_v6, %v459_v4  ;;  %v571_v26 = vshll.u32 %v4549_v1, 30  ;;  %vm3640_vm4 = vcmp.lt.s32.totalorder %v3639_v3, 0  ;;  %vm207_vm5 = vcmp.gt.s32.totalorder %v206_v61, 0 }
 0x121   :  { %v726_v5 = vadd.s32 1, %v3653_v63  ;;  %v723_v15 = vand.u32 8388607, %v6902_v43  ;;  %v616_v27 = vshrl.u32 %v615_v8, 23  ;;  %v4561_v32 = vsel %vm3640_vm4, 0, %v3639_v3 }
 0x122   :  { %v465_v12 = vadd.s32 536870912, %v464_v7  ;;  %v208_v34 = vsel %vm207_vm5, %v206_v61, 0  ;;  %v4563_v10 = vsub.s32 %v568_v25, %v571_v26  ;;  %v372_v6 = vsub.s32 32, %v4561_v32 }
 0x123   :  { %vm727_vm3 = vcmp.gt.s32.totalorder %v726_v5, 0  ;;  %v724_v48 = vor.u32 8388608, %v723_v15  ;;  %v3649_v58 = vadd.s32 4294967169, %v616_v27  ;;  %v4576_v61 = vand.u32 31, %v208_v34 }
 0x124   :  { %v728_v9 = vsel %vm727_vm3, %v726_v5, 0  ;;  %v4559_v16 = vshrl.u32 %v465_v12, 30  ;;  %v356_v5 = vadd.s32 %v4437_v21, %v4435_v19  ;;  %v574_v26 = vsub.s32 0, %v4563_v10 }
 0x125   :  { %v730_v38 = vand.u32 31, %v728_v9  ;;  %v729_v57 = vshrl.u32 %v728_v9, 5  ;;  %v764_v27 = vshll.u32 %v724_v48, 8  ;;  %v6969_v1 = vmov 1326507024  }
 0x126   :  { %6963 = vst [vmem:[#allocation11_spill] sm:$0xff] %v4559_v16  ;;  %v467_v42 = vshll.u32 %v4559_v16, 30 }
 0x127   :  { %v731_v17 = vsub.s32 32, %v730_v38  ;;  %v733_v40 = vshll.u32 %v6912_v39, %v730_v38  ;;  %v736_v37 = vshll.u32 %v6909_v41, %v730_v38  ;;  %v739_v50 = vshll.u32 %v6907_v46, %v730_v38 }
 0x128   :  { %v4572_v55 = vsub.s32 %v464_v7, %v467_v42  ;;  %v742_v47 = vshll.u32 %v6922_v49, %v730_v38  ;;  %v745_v3 = vshll.u32 %v6924_v53, %v730_v38  ;;  %vm748_vm6 = vcmp.lt.s32.totalorder %v729_v57, 1 }
 0x129   :  { %v734_v45 = vshrl.u32 %v6909_v41, %v731_v17  ;;  %v737_v24 = vshrl.u32 %v6907_v46, %v731_v17  ;;  %v740_v52 = vshrl.u32 %v6922_v49, %v731_v17  ;;  %v743_v63 = vshrl.u32 %v6924_v53, %v731_v17 }
 0x12a   :  { %v746_v4 = vshrl.u32 %v6914_v56, %v731_v17  ;;  %v470_v7 = vsub.s32 0, %v4572_v55  ;;  %vm751_vm7 = vcmp.lt.s32.totalorder %v729_v57, 4  ;;  %v622_v42 = vadd.s32 1, %v3649_v58 }
 0x12b   :  { %v735_v25 = vor.u32 %v734_v45, %v733_v40  ;;  %v738_v62 = vor.u32 %v737_v24, %v736_v37  ;;  %v741_v0 = vor.u32 %v740_v52, %v739_v50  ;;  %v744_v8 = vor.u32 %v743_v63, %v742_v47 }
 0x12c   :  { %v747_v9 = vor.u32 %v746_v4, %v745_v3  ;;  %v732_v38 = vshrl.u32 %v6912_v39, %v731_v17  ;;  %vm750_vm8 = vcmp.lt.s32.totalorder %v729_v57, 3  ;;  %v3642_v19 = vmin.u32 %v470_v7, %v4572_v55 }
 0x12d   :  { %v753_v12 = vsel %vm751_vm7, %v741_v0, 2102212464  ;;  %v756_v15 = vsel %vm748_vm6, %v735_v25, %v738_v62  ;;  %v757_v40 = vsel %vm751_vm7, %v744_v8, 920167782  ;;  %v760_v45 = vsel %vm748_vm6, %v738_v62, %v741_v0 }
 0x12e   :  { %vm749_vm9 = vcmp.lt.s32.totalorder %v729_v57, 2  ;;  %v758_v21 = vsel %vm750_vm8, %v741_v0, %v757_v40  ;;  %v761_v24 = vsel %vm751_vm7, %v747_v9, 1326507024  ;;  %v752_v37 = vsel %vm748_vm6, %v732_v38, %v735_v25 }
 0x12f   :  { %v754_v50 = vsel %vm750_vm8, %v738_v62, %v753_v12  ;;  %v759_v52 = vsel %vm749_vm9, %v756_v15, %v758_v21  ;;  %v762_v47 = vsel %vm750_vm8, %v744_v8, %v761_v24  ;;  %v376_v63 = vsub.s32 4294967266, %v4561_v32 }
 0x130   :  { %v763_v3 = vsel %vm749_vm9, %v760_v45, %v762_v47  ;;  %v4588_v4 = vmul.u32.u64.low %v764_v27, %v759_v52  ;;  %v4589_v48 = vmul.u32.u64.high %v764_v27, %v759_v52, %v4588_v4  ;;  %vm623_vm10 = vcmp.gt.s32.totalorder %v622_v42, 0 }
 0x131   :  { %v4592_v17 = vmul.u32.u64.low %v764_v27, %v763_v3  ;;  %v4593_v58 = vmul.u32.u64.high %v764_v27, %v763_v3, %v4592_v17  ;;  %v4597_v57 = vadd.f32 %v4414_v31, %v4391_v11  ;;  %v3646_v25 = vmin.u32 %v574_v26, %v4563_v10 }
 0x132   :  { %v755_v62 = vsel %vm749_vm9, %v752_v37, %v754_v50  ;;  %v6903_v0 = vand.u32 2147483647, %v4547_v60  ;;  %v624_v7 = vsel %vm623_vm10, %v622_v42, 0  ;;  %v4601_v8 = vshrl.u32 %v208_v34, 5 }
 0x133   :  { %6964 = vst [vmem:[#allocation12_spill] sm:$0xff] %v4597_v57  ;;  %v4604_v9 = vsub.s32 32, %v4576_v61  ;;  %v472_v12 = vclz %v3642_v19  ;;  %v373_v15 = vshll.u32 %v4503_v54, %v4561_v32  ;;  %v4608_v38 = vshrl.u32 %v356_v5, %v372_v6 }
 0x134   :  { %v774_v31 = vadd.s32 1, %v4589_v48  ;;  %v626_v40 = vand.u32 31, %v624_v7  ;;  %v4611_v45 = vadd.s32 127, %v376_v63  ;;  %v771_v26 = vmul.u32 %v764_v27, %v755_v62 }
 0x135   :  { %vm773_vm11 = vc.u32 %v4593_v58, %v4588_v4  ;;  %v927_v34 = vand.u32 2139095040, %v4597_v57  ;;  %v576_v42 = vclz %v3646_v25  ;;  %v619_v19 = vand.u32 8388607, %v6903_v0 }
 0x136   :  { %v775_v21 = vsel %vm773_vm11, %v774_v31, %v4589_v48  ;;  %v627_v24 = vsub.s32 32, %v626_v40  ;;  %v3643_v5 = vadd.s32 4294967294, %v472_v12  ;;  %v629_v37 = vshll.u32 %v6912_v39, %v626_v40 }
 0x137   :  { %v4619_v6 = vadd.s32 %v775_v21, %v771_v26  ;;  %v632_v50 = vshll.u32 %v6909_v41, %v626_v40  ;;  %v635_v47 = vshll.u32 %v6907_v46, %v626_v40  ;;  %v378_v3 = vshll.u32 %v4611_v45, 23 }
 0x138   :  { %v630_v27 = vshrl.u32 %v6909_v41, %v627_v24  ;;  %v633_v52 = vshrl.u32 %v6907_v46, %v627_v24  ;;  %v636_v63 = vshrl.u32 %v6922_v49, %v627_v24  ;;  %v625_v48 = vshrl.u32 %v624_v7, 5 }
 0x139   :  { %v638_v17 = vshll.u32 %v6922_v49, %v626_v40  ;;  %v928_v25 = vshrl.u32 %v927_v34, 23  ;;  %v639_v26 = vshrl.u32 %v6924_v53, %v627_v24  ;;  %v777_v21 = vadd.s32 536870912, %v4619_v6 }
 0x13a   :  { %v631_v62 = vor.u32 %v630_v27, %v629_v37  ;;  %v634_v12 = vor.u32 %v633_v52, %v632_v50  ;;  %v637_v31 = vor.u32 %v636_v63, %v635_v47  ;;  %v620_v43 = vor.u32 8388608, %v619_v19 }
 0x13b   :  { %v641_v0 = vshll.u32 %v6924_v53, %v626_v40  ;;  %v642_v36 = vshrl.u32 %v6914_v56, %v627_v24  ;;  %v3647_v35 = vadd.s32 4294967294, %v576_v42  ;;  %vm3644_vm12 = vcmp.lt.s32.totalorder %v3643_v5, 0 }
 0x13c   :  { %v640_v20 = vor.u32 %v639_v26, %v638_v17  ;;  %v6911_v7 = vand.u32 2147483647, %v4597_v57  ;;  %vm644_vm13 = vcmp.lt.s32.totalorder %v625_v48, 1  ;;  %vm647_vm14 = vcmp.lt.s32.totalorder %v625_v48, 4  ;;  %v1236_v26 = vld [vmem:[#allocation2] sm:$0xff] }
 0x13d   :  { %v643_v45 = vor.u32 %v642_v36, %v641_v0  ;;  %v3661_v34 = vadd.s32 4294967169, %v928_v25  ;;  %vm646_vm15 = vcmp.lt.s32.totalorder %v625_v48, 3  ;;  %v649_v37 = vsel %vm647_vm14, %v637_v31, 2102212464 }
 0x13e   :  { %v652_v50 = vsel %vm644_vm13, %v631_v62, %v634_v12  ;;  %v653_v27 = vsel %vm647_vm14, %v640_v20, 920167782  ;;  %v4635_v52 = vshrl.u32 %v777_v21, 30  ;;  %v628_v40 = vshrl.u32 %v6912_v39, %v627_v24 }
 0x13f   :  { %vm645_vm0 = vcmp.lt.s32.totalorder %v625_v48, 2  ;;  %v654_v19 = vsel %vm646_vm15, %v637_v31, %v653_v27  ;;  %v656_v47 = vsel %vm644_vm13, %v634_v12, %v637_v31  ;;  %v657_v63 = vsel %vm647_vm14, %v643_v45, 1326507024  ;;  %v1238_v27 = vld [vmem:[#allocation2 + $0x10] sm:$0xff]  ;;  %v1239_v31 = vld [vmem:[#allocation2 + $0x18] sm:$0xff] }
 0x140   :  { %6965 = vst [vmem:[#allocation13_spill] sm:$0xff] %v4635_v52  ;;  %v655_v42 = vsel %vm645_vm0, %v652_v50, %v654_v19  ;;  %v660_v36 = vshll.u32 %v620_v43, 8  ;;  %vm3648_vm1 = vcmp.lt.s32.totalorder %v3647_v35, 0  ;;  %v648_v0 = vsel %vm644_vm13, %v628_v40, %v631_v62  ;;  %v1237_v50 = vld [vmem:[#allocation2 + $0x8] sm:$0xff] }
 0x141   :  { %v650_v17 = vsel %vm646_vm15, %v634_v12, %v649_v37  ;;  %v658_v25 = vsel %vm646_vm15, %v640_v20, %v657_v63  ;;  %v4642_v46 = vsel %vm3644_vm12, 0, %v3643_v5  ;;  %v779_v43 = vshll.u32 %v4635_v52, 30 }
 0x142   :  { %v659_v21 = vsel %vm645_vm0, %v656_v47, %v658_v25  ;;  %v4645_v24 = vmul.u32.u64.low %v660_v36, %v655_v42  ;;  %v4646_v41 = vmul.u32.u64.high %v660_v36, %v655_v42, %v4645_v24  ;;  %v934_v62 = vadd.s32 1, %v3661_v34 }
 0x143   :  { %v4650_v45 = vmul.u32.u64.low %v660_v36, %v659_v21  ;;  %v4651_v19 = vmul.u32.u64.high %v660_v36, %v659_v21, %v4650_v45  ;;  %v4657_v20 = vor.u32 %v4608_v38, %v373_v15  ;;  %v222_v5 = vshll.u32 %v6922_v49, %v4576_v61 }
 0x144   :  { %v223_v12 = vshrl.u32 %v6924_v53, %v4604_v9  ;;  %v651_v37 = vsel %vm645_vm0, %v648_v0, %v650_v17  ;;  %v4664_v40 = vor.u32 4788187, %v378_v3  ;;  %vm935_vm2 = vcmp.gt.s32.totalorder %v934_v62, 0 }
 0x145   :  { %v3931_v42 = vpack.c.bf16 %v1237_v50, %v1236_v26  ;;  %v3935_v47 = vpack.c.bf16 %v1239_v31, %v1238_v27  ;;  %v4667_v34 = vsel %vm3648_vm1, 0, %v3647_v35  ;;  %v480_v54 = vsub.s32 4294967266, %v4642_v46 }
 0x146   :  { %v670_v32 = vadd.s32 1, %v4646_v41  ;;  %v936_v15 = vsel %vm935_vm2, %v934_v62, 0  ;;  %v4672_v38 = vsub.s32 %v4619_v6, %v779_v43  ;;  %v667_v63 = vmul.u32 %v660_v36, %v651_v37 }
 0x147   :  { %vm669_vm3 = vc.u32 %v4651_v19, %v4645_v24  ;;  %v931_v3 = vand.u32 8388607, %v6911_v7  ;;  %3932 = vmatprep.subr.bf16.mxu1 %v3931_v42  ;;  %v4680_v35 = vshll.u32 %v6924_v53, %v4576_v61  ;;  %v4684_v48 = vshrl.u32 %v6914_v56, %v4604_v9 }
 0x148   :  { %v671_v0 = vsel %vm669_vm3, %v670_v32, %v4646_v41  ;;  %v938_v6 = vand.u32 31, %v936_v15  ;;  %3934 = vmatpush3.bf16.msra.mxu1 %v3931_v42  ;;  %v382_v36 = vcvt.s32.f32 %v4657_v20  ;;  %v4688_v17 = vor.u32 %v223_v12, %v222_v5 }
 0x149   :  { %v564_v25 = vadd.s32 %v4488_v30, %v4486_v28  ;;  %v4692_v26 = vadd.s32 %v671_v0, %v667_v63  ;;  %3936 = vmatprep.subr.bf16.mxu1 %v3935_v47  ;;  %v380_v21 = vand.u32 2147483647, %v4664_v40  ;;  %v584_v50 = vsub.s32 4294967266, %v4667_v34 }
 0x14a   :  { %v460_v27 = vadd.s32 %v4531_v14, %v4541_v59  ;;  %v939_v41 = vsub.s32 32, %v938_v6  ;;  %v476_v31 = vsub.s32 32, %v4642_v46  ;;  %v481_v43 = vadd.s32 127, %v480_v54 }
 0x14b   :  { %v782_v45 = vsub.s32 0, %v4672_v38  ;;  %v932_v62 = vor.u32 8388608, %v931_v3  ;;  %v941_v20 = vshll.u32 %v6912_v39, %v938_v6  ;;  %v6966_v28 = vmov 2475754826  }
 0x14c   :  { %v942_v30 = vshrl.u32 %v6966_v28, %v939_v41  ;;  %v944_v5 = vshll.u32 %v6966_v28, %v938_v6  ;;  %v6967_v12 = vmov 2131351028   ;;  %3938 = vmatpush3.bf16.msra.mxu1 %v3935_v47  ;;  %v673_v40 = vadd.s32 536870912, %v4692_v26 }
 0x14d   :  { %v945_v37 = vshrl.u32 %v6967_v12, %v939_v41  ;;  %v937_v42 = vshrl.u32 %v936_v15, 5  ;;  %v947_v14 = vshll.u32 %v6967_v12, %v938_v6  ;;  %v948_v59 = vshrl.u32 %v6922_v49, %v939_v41 }
 0x14e   :  { %v943_v54 = vor.u32 %v942_v30, %v941_v20  ;;  %v950_v63 = vshll.u32 %v6922_v49, %v938_v6  ;;  %v951_v3 = vshrl.u32 %v6924_v53, %v939_v41  ;;  %v580_v0 = vsub.s32 32, %v4667_v34 }
 0x14f   :  { %v946_v32 = vor.u32 %v945_v37, %v944_v5  ;;  %v585_v7 = vadd.s32 127, %v584_v50  ;;  %v478_v39 = vshrl.u32 %v460_v27, %v476_v31  ;;  %v4712_v47 = vadd.f32 %v4391_v11, %v4416_v33 }
 0x150   :  { %v949_v56 = vor.u32 %v948_v59, %v947_v14  ;;  %v952_v15 = vor.u32 %v951_v3, %v950_v63  ;;  %v953_v52 = vshll.u32 %v6924_v53, %v938_v6  ;;  %v954_v16 = vshrl.u32 %v6969_v1, %v939_v41 }
 0x151   :  { %6968 = vst [vmem:[#allocation14_spill] sm:$0xff] %v4712_v47  ;;  %v482_v20 = vshll.u32 %v481_v43, 23  ;;  %v3654_v30 = vmin.u32 %v782_v45, %v4672_v38  ;;  %vm956_vm4 = vcmp.lt.s32.totalorder %v937_v42, 1  ;;  %v972_v5 = vshll.u32 %v932_v62, 8 }
 0x152   :  { %v4717_v37 = vshrl.u32 %v673_v40, 30  ;;  %v955_v49 = vor.u32 %v954_v16, %v953_v52  ;;  %vm959_vm5 = vcmp.lt.s32.totalorder %v937_v42, 4  ;;  %v964_v50 = vsel %vm956_vm4, %v943_v54, %v946_v32 }
 0x153   :  { %vm957_vm6 = vcmp.lt.s32.totalorder %v937_v42, 2  ;;  %vm958_vm7 = vcmp.lt.s32.totalorder %v937_v42, 3  ;;  %v965_v33 = vsel %vm959_vm5, %v952_v15, 920167782  ;;  %v823_v27 = vand.u32 2139095040, %v4712_v47 }
 0x154   :  { %6970 = vst [vmem:[#allocation15_spill] sm:$0xff] %v4717_v37  ;;  %v961_v31 = vsel %vm959_vm5, %v949_v56, 2102212464  ;;  %v966_v6 = vsel %vm958_vm7, %v949_v56, %v965_v33  ;;  %v968_v14 = vsel %vm956_vm4, %v946_v32, %v949_v56  ;;  %v969_v43 = vsel %vm959_vm5, %v955_v49, 1326507024 }
 0x155   :  { %v6971_v59 = vmov 683565275   ;;  %v967_v62 = vsel %vm957_vm6, %v964_v50, %v966_v6  ;;  %v970_v40 = vsel %vm958_vm7, %v952_v15, %v969_v43  ;;  %v4726_v16 = vadd.f32 %v4421_v44, %v4391_v11 }
 0x156   :  { %v940_v45 = vshrl.u32 %v6971_v59, %v939_v41  ;;  %v675_v52 = vshll.u32 %v4717_v37, 30  ;;  %v971_v63 = vsel %vm957_vm6, %v968_v14, %v970_v40  ;;  %v962_v49 = vsel %vm958_vm7, %v946_v32, %v961_v31 }
 0x157   :  { %6972 = vst [vmem:[#allocation16_spill] sm:$0xff] %v4726_v16  ;;  %v4730_v3 = vmul.u32.u64.low %v972_v5, %v967_v62  ;;  %v4731_v53 = vmul.u32.u64.high %v972_v5, %v967_v62, %v4730_v3  ;;  %v4735_v33 = vmul.u32.u64.low %v972_v5, %v971_v63  ;;  %v4736_v41 = vmul.u32.u64.high %v972_v5, %v971_v63, %v4735_v33 }
 0x158   :  { %v960_v56 = vsel %vm956_vm4, %v940_v45, %v943_v54  ;;  %v383_v50 = vmul.f32 %v382_v36, %v380_v21  ;;  %v227_v15 = vor.u32 %v4684_v48, %v4680_v35  ;;  %v582_v44 = vshrl.u32 %v564_v25, %v580_v0 }
 0x159   :  { %v824_v6 = vshrl.u32 %v823_v27, 23  ;;  %v586_v43 = vshll.u32 %v585_v7, 23  ;;  %v477_v14 = vshll.u32 %v4572_v55, %v4642_v46  ;;  %v483_v40 = vor.u32 4788187, %v482_v20 }
 0x15a   :  { %v784_v62 = vclz %v3654_v30  ;;  %v4743_v37 = vsub.s32 %v4692_v26, %v675_v52  ;;  %v963_v54 = vsel %vm957_vm6, %v960_v56, %v962_v49  ;;  %v982_v32 = vadd.s32 1, %v4731_v53 }
 0x15b   :  { %v3657_v31 = vadd.s32 4294967169, %v824_v6  ;;  %v581_v36 = vshll.u32 %v4563_v10, %v4667_v34  ;;  %v479_v35 = vor.u32 %v478_v39, %v477_v14  ;;  %vm981_vm8 = vc.u32 %v4736_v41, %v4730_v3 }
 0x15c   :  { %v1135_v7 = vand.u32 2139095040, %v4726_v16  ;;  %v384_v46 = vxor.u32 2147483648, %v383_v50  ;;  %vm231_vm9 = vcmp.lt.s32.totalorder %v4601_v8, 4  ;;  %v983_v55 = vsel %vm981_vm8, %v982_v32, %v4731_v53 }
 0x15d   :  { %v830_v48 = vadd.s32 1, %v3657_v31  ;;  %v4754_v25 = vor.u32 %v582_v44, %v581_v36  ;;  %v4756_v26 = vor.u32 4788187, %v586_v43  ;;  %v484_v21 = vand.u32 2147483647, %v483_v40 }
 0x15e   :  { %v979_v42 = vmul.u32 %v972_v5, %v963_v54  ;;  %v3655_v0 = vadd.s32 4294967294, %v784_v62  ;;  %v678_v39 = vsub.s32 0, %v4743_v37  ;;  %v6928_v10 = vand.u32 2147483647, %v4712_v47 }
 0x15f   :  { %vm831_vm10 = vcmp.gt.s32.totalorder %v830_v48, 0  ;;  %v486_v34 = vcvt.s32.f32 %v479_v35  ;;  %v1136_v27 = vshrl.u32 %v1135_v7, 23  ;;  %vm302_vm11 = vcmp.lt.s32.totalorder %v4394_v13, 0  ;;  %v1250_v13 = vld [vmem:[#allocation2 + $0x70] sm:$0xff] }
 0x160   :  { %v4760_v20 = vadd.s32 %v983_v55, %v979_v42  ;;  %v832_v30 = vsel %vm831_vm10, %v830_v48, 0  ;;  %v4766_v53 = vsel %vm231_vm9, %v4688_v17, 920167782  ;;  %v4770_v5 = vsel %vm231_vm9, %v227_v15, 1326507024 }
 0x161   :  { %v834_v45 = vand.u32 31, %v832_v30  ;;  %v4774_v52 = vsel %vm302_vm11, %v384_v46, %v383_v50  ;;  %v588_v63 = vand.u32 2147483647, %v4756_v26  ;;  %v590_v56 = vcvt.s32.f32 %v4754_v25 }
 0x162   :  { %6973 = vst [vmem:[#allocation17_spill] sm:$0xff] %v4774_v52  ;;  %v4778_v49 = vmul.f32 %v486_v34, %v484_v21  ;;  %vm3656_vm12 = vcmp.lt.s32.totalorder %v3655_v0, 0  ;;  %v4781_v33 = vmin.u32 %v678_v39, %v4743_v37  ;;  %v827_v44 = vand.u32 8388607, %v6928_v10 }
 0x163   :  { %v835_v15 = vsub.s32 32, %v834_v45  ;;  %v985_v6 = vadd.s32 536870912, %v4760_v20  ;;  %v837_v43 = vshll.u32 %v6971_v59, %v834_v45  ;;  %v840_v50 = vshll.u32 %v6966_v28, %v834_v45 }
 0x164   :  { %v3669_v14 = vadd.s32 4294967169, %v1136_v27  ;;  %v843_v54 = vshll.u32 %v6967_v12, %v834_v45  ;;  %v6974_v32 = vmov 2102212464   ;;  %v833_v36 = vshrl.u32 %v832_v30, 5 }
 0x165   :  { %v838_v40 = vshrl.u32 %v6966_v28, %v835_v15  ;;  %v841_v62 = vshrl.u32 %v6967_v12, %v835_v15  ;;  %v844_v31 = vshrl.u32 %v6974_v32, %v835_v15  ;;  %v846_v35 = vshll.u32 %v6974_v32, %v834_v45 }
 0x166   :  { %v6975_v7 = vmov 920167782   ;;  %v850_v21 = vshrl.u32 %v6969_v1, %v835_v15  ;;  %v4797_v42 = vsel %vm3656_vm12, 0, %v3655_v0  ;;  %v828_v39 = vor.u32 8388608, %v827_v44 }
 0x167   :  { %v847_v46 = vshrl.u32 %v6975_v7, %v835_v15  ;;  %v849_v55 = vshll.u32 %v6975_v7, %v834_v45  ;;  %v839_v48 = vor.u32 %v838_v40, %v837_v43  ;;  %v842_v25 = vor.u32 %v841_v62, %v840_v50 }
 0x168   :  { %v845_v26 = vor.u32 %v844_v31, %v843_v54  ;;  %v4801_v27 = vadd.f32 %v4391_v11, %v4427_v51  ;;  %v680_v30 = vclz %v4781_v33  ;;  %v6931_v47 = vand.u32 2147483647, %v4726_v16 }
 0x169   :  { %v848_v34 = vor.u32 %v847_v46, %v846_v35  ;;  %v851_v10 = vor.u32 %v850_v21, %v849_v55  ;;  %v1142_v45 = vadd.s32 1, %v3669_v14  ;;  %v4805_v43 = vshrl.u32 %v985_v6, 30 }
 0x16a   :  { %6976 = vst [vmem:[#allocation18_spill] sm:$0xff] %v4801_v27  ;;  %v836_v50 = vshrl.u32 %v6971_v59, %v835_v15  ;;  %vm852_vm13 = vcmp.lt.s32.totalorder %v833_v36, 1  ;;  %vm855_vm14 = vcmp.lt.s32.totalorder %v833_v36, 4  ;;  %vm854_vm15 = vcmp.lt.s32.totalorder %v833_v36, 3 }
 0x16b   :  { %6977 = vst [vmem:[#allocation19_spill] sm:$0xff] %v4805_v43  ;;  %v857_v0 = vsel %vm855_vm14, %v845_v26, 2102212464  ;;  %v860_v44 = vsel %vm852_vm13, %v839_v48, %v842_v25  ;;  %v861_v40 = vsel %vm855_vm14, %v848_v34, 920167782  ;;  %vm853_vm0 = vcmp.lt.s32.totalorder %v833_v36, 2 }
 0x16c   :  { %v862_v62 = vsel %vm854_vm15, %v845_v26, %v861_v40  ;;  %v864_v11 = vsel %vm852_vm13, %v842_v25, %v845_v26  ;;  %v868_v51 = vshll.u32 %v828_v39, 8  ;;  %v856_v54 = vsel %vm852_vm13, %v836_v50, %v839_v48 }
 0x16d   :  { %v863_v33 = vsel %vm853_vm0, %v860_v44, %v862_v62  ;;  %v865_v31 = vsel %vm855_vm14, %v851_v10, 1326507024  ;;  %vm1143_vm1 = vcmp.gt.s32.totalorder %v1142_v45, 0  ;;  %v858_v14 = vsel %vm854_vm15, %v842_v25, %v857_v0 }
 0x16e   :  { %v866_v6 = vsel %vm854_vm15, %v848_v34, %v865_v31  ;;  %v4809_v35 = vmul.u32.u64.low %v868_v51, %v863_v33  ;;  %v4810_v46 = vmul.u32.u64.high %v868_v51, %v863_v33, %v4809_v35  ;;  %v987_v15 = vshll.u32 %v4805_v43, 30 }
 0x16f   :  { %v867_v55 = vsel %vm853_vm0, %v864_v11, %v866_v6  ;;  %v1139_v21 = vand.u32 8388607, %v6931_v47  ;;  %v1144_v26 = vsel %vm1143_vm1, %v1142_v45, 0  ;;  %v4817_v39 = vmul.f32 %v590_v56, %v588_v63 }
 0x170   :  { %v4819_v48 = vmul.u32.u64.low %v868_v51, %v867_v55  ;;  %v4820_v50 = vmul.u32.u64.high %v868_v51, %v867_v55, %v4819_v48  ;;  %v1031_v10 = vand.u32 2139095040, %v4801_v27  ;;  %v772_v34 = vadd.s32 %v4588_v4, %v4593_v58 }
 0x171   :  { %v859_v0 = vsel %vm853_vm0, %v856_v54, %v858_v14  ;;  %v1146_v44 = vand.u32 31, %v1144_v26  ;;  %v788_v40 = vsub.s32 32, %v4797_v42  ;;  %v792_v63 = vsub.s32 4294967266, %v4797_v42 }
 0x172   :  { %v878_v56 = vadd.s32 1, %v4810_v46  ;;  %v4832_v62 = vadd.s32 4294967294, %v680_v30  ;;  %v4835_v11 = vsub.s32 %v4760_v20, %v987_v15  ;;  %v1140_v33 = vor.u32 8388608, %v1139_v21 }
 0x173   :  { %v1147_v31 = vsub.s32 32, %v1146_v44  ;;  %v875_v4 = vmul.u32 %v868_v51, %v859_v0  ;;  %vm877_vm2 = vc.u32 %v4820_v50, %v4809_v35  ;;  %v1149_v58 = vshll.u32 %v6971_v59, %v1146_v44 }
 0x174   :  { %v1032_v36 = vshrl.u32 %v1031_v10, 23  ;;  %v879_v54 = vsel %vm877_vm2, %v878_v56, %v4810_v46  ;;  %v1152_v6 = vshll.u32 %v6966_v28, %v1146_v44  ;;  %v1145_v20 = vshrl.u32 %v1144_v26, 5 }
 0x175   :  { %v1150_v14 = vshrl.u32 %v6966_v28, %v1147_v31  ;;  %v1153_v30 = vshrl.u32 %v6967_v12, %v1147_v31  ;;  %v880_v55 = vadd.s32 %v879_v54, %v875_v4  ;;  %v1155_v15 = vshll.u32 %v6967_v12, %v1146_v44 }
 0x176   :  { %v1156_v51 = vshrl.u32 %v6974_v32, %v1147_v31  ;;  %v1158_v0 = vshll.u32 %v6974_v32, %v1146_v44  ;;  %v1159_v10 = vshrl.u32 %v6975_v7, %v1147_v31  ;;  %v790_v47 = vshrl.u32 %v772_v34, %v788_v40 }
 0x177   :  { %v1151_v21 = vor.u32 %v1150_v14, %v1149_v58  ;;  %v1154_v48 = vor.u32 %v1153_v30, %v1152_v6  ;;  %v793_v46 = vadd.s32 127, %v792_v63  ;;  %v881_v56 = vadd.s32 536870912, %v880_v55 }
 0x178   :  { %v1157_v25 = vor.u32 %v1156_v51, %v1155_v15  ;;  %vm3652_vm3 = vcmp.lt.s32.totalorder %v4832_v62, 0  ;;  %v1160_v45 = vor.u32 %v1159_v10, %v1158_v0  ;;  %v1161_v4 = vshll.u32 %v6975_v7, %v1146_v44  ;;  %v1240_v0 = vld [vmem:[#allocation2 + $0x20] sm:$0xff] }
 0x179   :  { %v1162_v26 = vshrl.u32 %v6969_v1, %v1147_v31  ;;  %v990_v54 = vsub.s32 0, %v4835_v11  ;;  %v4852_v43 = vshrl.u32 %v881_v56, 30  ;;  %vm1164_vm4 = vcmp.lt.s32.totalorder %v1145_v20, 1 }
 0x17a   :  { %v4854_v58 = vshll.u32 %v1140_v33, 8  ;;  %vm1167_vm5 = vcmp.lt.s32.totalorder %v1145_v20, 4  ;;  %v1172_v34 = vsel %vm1164_vm4, %v1151_v21, %v1154_v48  ;;  %v3665_v40 = vadd.s32 4294967169, %v1032_v36 }
 0x17b   :  { %6978 = vst [vmem:[#allocation20_spill] sm:$0xff] %v4852_v43  ;;  %v1163_v14 = vor.u32 %v1162_v26, %v1161_v4  ;;  %v1148_v63 = vshrl.u32 %v6971_v59, %v1147_v31  ;;  %vm1166_vm6 = vcmp.lt.s32.totalorder %v1145_v20, 3  ;;  %v1169_v6 = vsel %vm1167_vm5, %v1157_v25, 2102212464  ;;  %v1241_v4 = vld [vmem:[#allocation2 + $0x28] sm:$0xff]  ;;  %v1242_v31 = vld [vmem:[#allocation2 + $0x30] sm:$0xff] }
 0x17c   :  { %v1173_v30 = vsel %vm1167_vm5, %v1160_v45, 920167782  ;;  %vm1165_vm7 = vcmp.lt.s32.totalorder %v1145_v20, 2  ;;  %v1176_v15 = vsel %vm1164_vm4, %v1154_v48, %v1157_v25  ;;  %v3662_v33 = vmin.u32 %v990_v54, %v4835_v11  ;;  %v1243_v26 = vld [vmem:[#allocation2 + $0x38] sm:$0xff] }
 0x17d   :  { %v1174_v44 = vsel %vm1166_vm6, %v1157_v25, %v1173_v30  ;;  %v1177_v51 = vsel %vm1167_vm5, %v1163_v14, 1326507024  ;;  %v883_v10 = vshll.u32 %v4852_v43, 30  ;;  %v1168_v56 = vsel %vm1164_vm4, %v1148_v63, %v1151_v21 }
 0x17e   :  { %v1175_v36 = vsel %vm1165_vm7, %v1172_v34, %v1174_v44  ;;  %v1170_v16 = vsel %vm1166_vm6, %v1154_v48, %v1169_v6  ;;  %v1178_v52 = vsel %vm1166_vm6, %v1160_v45, %v1177_v51  ;;  %v794_v14 = vshll.u32 %v793_v46, 23  ;;  %v1244_v46 = vld [vmem:[#allocation2 + $0x40] sm:$0xff] }
 0x17f   :  { %v4867_v30 = vmul.u32.u64.low %v4854_v58, %v1175_v36  ;;  %v4868_v25 = vmul.u32.u64.high %v4854_v58, %v1175_v36, %v4867_v30  ;;  %v1179_v54 = vsel %vm1165_vm7, %v1176_v15, %v1178_v52  ;;  %v6940_v43 = vand.u32 2147483647, %v4801_v27  ;;  %v1245_v52 = vld [vmem:[#allocation2 + $0x48] sm:$0xff] }
 0x180   :  { %v1038_v21 = vadd.s32 1, %v3665_v40  ;;  %v4874_v34 = vmul.u32.u64.low %v4854_v58, %v1179_v54  ;;  %v4875_v63 = vmul.u32.u64.high %v4854_v58, %v1179_v54, %v4874_v34  ;;  %v3939_v44 = vpack.c.bf16 %v1241_v4, %v1240_v0 }
 0x181   :  { %v3943_v2 = vpack.c.bf16 %v1243_v26, %v1242_v31  ;;  %v4880_v45 = vsel %vm3652_vm3, 0, %v4832_v62  ;;  %v992_v48 = vclz %v3662_v33  ;;  %v1171_v6 = vsel %vm1165_vm7, %v1168_v56, %v1170_v16 }
 0x182   :  { %vm1039_vm8 = vcmp.gt.s32.totalorder %v1038_v21, 0  ;;  %v4885_v40 = vadd.s32 %v4645_v24, %v4651_v19  ;;  %v4887_v15 = vsub.s32 %v880_v55, %v883_v10  ;;  %v1190_v51 = vadd.s32 1, %v4868_v25  ;;  %3940 = vmatprep.subr.bf16.mxu1 %v3939_v44  ;;  %v1246_v24 = vld [vmem:[#allocation2 + $0x50] sm:$0xff]  ;;  %v1247_v19 = vld [vmem:[#allocation2 + $0x58] sm:$0xff] }
 0x183   :  { %v1040_v0 = vsel %vm1039_vm8, %v1038_v21, 0  ;;  %v6979_v62 = vshll.u32 %v4672_v38, %v4797_v42  ;;  %v4895_v20 = vor.u32 4788187, %v794_v14  ;;  %v4899_v16 = vadd.s32 %v4730_v3, %v4736_v41  ;;  %3942 = vmatpush3.bf16.msra.mxu1 %v3939_v44 }
 0x184   :  { %v1042_v33 = vand.u32 31, %v1040_v0  ;;  %v1187_v10 = vmul.u32 %v4854_v58, %v1171_v6  ;;  %vm1189_vm10 = vc.u32 %v4875_v63, %v4867_v30  ;;  %3944 = vmatprep.subr.bf16.mxu1 %v3943_v2  ;;  %v3947_v38 = vpack.c.bf16 %v1245_v52, %v1244_v46 }
 0x185   :  { %v4893_v36 = vor.u32 %v790_v47, %v6979_v62  ;;  %v3663_v47 = vadd.s32 4294967294, %v992_v48  ;;  %v1191_v42 = vsel %vm1189_vm10, %v1190_v51, %v4868_v25  ;;  %v1035_v3 = vand.u32 8388607, %v6940_v43  ;;  %v1248_v51 = vld [vmem:[#allocation2 + $0x60] sm:$0xff]  ;;  %v1249_v62 = vld [vmem:[#allocation2 + $0x68] sm:$0xff] }
 0x186   :  { %v1043_v41 = vsub.s32 32, %v1042_v33  ;;  %v688_v56 = vsub.s32 4294967266, %v4880_v45  ;;  %v886_v4 = vsub.s32 0, %v4887_v15  ;;  %v1192_v31 = vadd.s32 %v1191_v42, %v1187_v10 }
 0x187   :  { %v3951_v26 = vpack.c.bf16 %v1247_v19, %v1246_v24  ;;  %v1045_v58 = vshll.u32 %v6971_v59, %v1042_v33  ;;  %v1048_v54 = vshll.u32 %v6966_v28, %v1042_v33  ;;  %3946 = vmatpush3.bf16.msra.mxu1 %v3943_v2  ;;  %v1051_v34 = vshll.u32 %v6967_v12, %v1042_v33 }
 0x188   :  { %v1046_v14 = vshrl.u32 %v6966_v28, %v1043_v41  ;;  %v1049_v21 = vshrl.u32 %v6967_v12, %v1043_v41  ;;  %v1193_v25 = vadd.s32 536870912, %v1192_v31  ;;  %v1052_v44 = vshrl.u32 %v6974_v32, %v1043_v41  ;;  %3948 = vmatprep.subr.bf16.mxu1 %v3947_v38 }
 0x189   :  { %v1055_v48 = vshrl.u32 %v6975_v7, %v1043_v41  ;;  %vm3664_vm12 = vcmp.lt.s32.totalorder %v3663_v47, 0  ;;  %v1036_v6 = vor.u32 8388608, %v1035_v3  ;;  %v1041_v46 = vshrl.u32 %v1040_v0, 5  ;;  %v1251_v3 = vld [vmem:[#allocation2 + $0x78] sm:$0xff] }
 0x18a   :  { %v1054_v52 = vshll.u32 %v6974_v32, %v1042_v33  ;;  %v4918_v24 = vshrl.u32 %v1193_v25, 30  ;;  %v1047_v19 = vor.u32 %v1046_v14, %v1045_v58  ;;  %v1050_v10 = vor.u32 %v1049_v21, %v1048_v54 }
 0x18b   :  { %v1053_v2 = vor.u32 %v1052_v44, %v1051_v34  ;;  %v3658_v42 = vmin.u32 %v886_v4, %v4887_v15  ;;  %v1057_v55 = vshll.u32 %v6975_v7, %v1042_v33  ;;  %v1058_v27 = vshrl.u32 %v6969_v1, %v1043_v41  ;;  %3950 = vmatpush3.bf16.msra.mxu1 %v3947_v38 }
 0x18c   :  { %v1056_v43 = vor.u32 %v1055_v48, %v1054_v52  ;;  %v4923_v0 = vadd.s32 127, %v688_v56  ;;  %v4926_v57 = vsel %vm3664_vm12, 0, %v3663_v47  ;;  %v1195_v25 = vshll.u32 %v4918_v24, 30  ;;  %3952 = vmatprep.subr.bf16.mxu1 %v3951_v26 }
 0x18d   :  { %v3955_v58 = vpack.c.bf16 %v1249_v62, %v1248_v51  ;;  %v1059_v14 = vor.u32 %v1058_v27, %v1057_v55  ;;  %vm1060_vm13 = vcmp.lt.s32.totalorder %v1041_v46, 1  ;;  %vm1063_vm14 = vcmp.lt.s32.totalorder %v1041_v46, 4 }
 0x18e   :  { %v1076_v4 = vshll.u32 %v1036_v6, 8  ;;  %v4929_v54 = vsub.s32 %v1192_v31, %v1195_v25  ;;  %v1065_v33 = vsel %vm1063_vm14, %v1053_v2, 2102212464  ;;  %v1068_v38 = vsel %vm1060_vm13, %v1047_v19, %v1050_v10 }
 0x18f   :  { %v3959_v21 = vpack.c.bf16 %v1251_v3, %v1250_v13  ;;  %v888_v56 = vclz %v3658_v42  ;;  %v1044_v34 = vshrl.u32 %v6971_v59, %v1043_v41  ;;  %vm1062_vm15 = vcmp.lt.s32.totalorder %v1041_v46, 3  ;;  %3954 = vmatpush3.bf16.msra.mxu1 %v3951_v26 }
 0x190   :  { %v1069_v47 = vsel %vm1063_vm14, %v1056_v43, 920167782  ;;  %v1198_v44 = vsub.s32 0, %v4929_v54  ;;  %vm1061_vm0 = vcmp.lt.s32.totalorder %v1041_v46, 2  ;;  %v1072_v55 = vsel %vm1060_vm13, %v1050_v10, %v1053_v2  ;;  %3956 = vmatprep.subr.bf16.mxu1 %v3955_v58 }
 0x191   :  { %v1070_v27 = vsel %vm1062_vm15, %v1053_v2, %v1069_v47  ;;  %v1064_v31 = vsel %vm1060_vm13, %v1044_v34, %v1047_v19  ;;  %v1066_v48 = vsel %vm1062_vm15, %v1050_v10, %v1065_v33  ;;  %v1073_v13 = vsel %vm1063_vm14, %v1059_v14, 1326507024 }
 0x192   :  { %v1071_v6 = vsel %vm1061_vm0, %v1068_v38, %v1070_v27  ;;  %v3670_v41 = vmin.u32 %v1198_v44, %v4929_v54  ;;  %v1074_v52 = vsel %vm1062_vm15, %v1056_v43, %v1073_v13  ;;  %v685_v26 = vshll.u32 %v4743_v37, %v4880_v45 }
 0x193   :  { %v4941_v51 = vmul.u32.u64.low %v1076_v4, %v1071_v6  ;;  %v4942_v62 = vmul.u32.u64.high %v1076_v4, %v1071_v6, %v4941_v51  ;;  %v690_v2 = vshll.u32 %v4923_v0, 23  ;;  %v1075_v42 = vsel %vm1061_vm0, %v1072_v55, %v1074_v52  ;;  %3958 = vmatpush3.bf16.msra.mxu1 %v3955_v58 }
 0x194   :  { %v196_v19 = vand.u32 2147483647, %v4443_v29  ;;  %v3659_v10 = vadd.s32 4294967294, %v888_v56  ;;  %v1200_v3 = vclz %v3670_v41  ;;  %3960 = vmatprep.subr.bf16.mxu1 %v3959_v21  ;;  %v1000_v43 = vsub.s32 4294967266, %v4926_v57 }
 0x195   :  { %v4950_v25 = vmul.u32.u64.low %v1076_v4, %v1075_v42  ;;  %v4951_v14 = vmul.u32.u64.high %v1076_v4, %v1075_v42, %v4950_v25  ;;  %v1067_v33 = vsel %vm1061_vm0, %v1064_v31, %v1066_v48  ;;  %v213_v38 = vshll.u32 %v6971_v59, %v4576_v61 }
 0x196   :  { %v214_v0 = vshrl.u32 %v6966_v28, %v4604_v9  ;;  %v3671_v34 = vadd.s32 4294967294, %v1200_v3  ;;  %v1086_v58 = vadd.s32 1, %v4942_v62  ;;  %v216_v56 = vshll.u32 %v6966_v28, %v4576_v61 }
 0x197   :  { %v217_v47 = vshrl.u32 %v6967_v12, %v4604_v9  ;;  %3962 = vmatpush3.bf16.msra.mxu1 %v3959_v21  ;;  %v203_v46 = vand.u32 8388607, %v196_v19  ;;  %v219_v27 = vshll.u32 %v6967_v12, %v4576_v61  ;;  %v220_v55 = vshrl.u32 %v6974_v32, %v4604_v9 }
 0x198   :  { %v215_v44 = vor.u32 %v214_v0, %v213_v38  ;;  %vm3660_vm1 = vcmp.lt.s32.totalorder %v3659_v10, 0  ;;  %v1083_v31 = vmul.u32 %v1076_v4, %v1067_v33  ;;  %vm1085_vm2 = vc.u32 %v4951_v14, %v4941_v51 }
 0x199   :  { %v218_v48 = vor.u32 %v217_v47, %v216_v56  ;;  %v6980_v6 = vsub.s32 32, %v4880_v45  ;;  %vm3672_vm3 = vcmp.lt.s32.totalorder %v3671_v34, 0  ;;  %v1087_v13 = vsel %vm1085_vm2, %v1086_v58, %v4942_v62 }
 0x19a   :  { %v221_v41 = vor.u32 %v220_v55, %v219_v27  ;;  %vm406_vm4 = vcmp.lt.s32.totalorder %v4405_v23, 0  ;;  %v4977_v61 = vor.u32 4788187, %v690_v2  ;;  %v1001_v52 = vadd.s32 127, %v1000_v43 }
 0x19b   :  { %v686_v21 = vshrl.u32 %v4885_v40, %v6980_v6  ;;  %v1088_v42 = vadd.s32 %v1087_v13, %v1083_v31  ;;  %vm228_vm5 = vcmp.lt.s32.totalorder %v4601_v8, 1  ;;  %v996_v4 = vsub.s32 32, %v4926_v57 }
 0x19c   :  { %v4981_v3 = vsel %vm3660_vm1, 0, %v3659_v10  ;;  %v204_v25 = vor.u32 8388608, %v203_v46  ;;  %v236_v40 = vsel %vm228_vm5, %v215_v44, %v218_v48  ;;  %v4985_v33 = vsel %vm3672_vm3, 0, %v3671_v34 }
 0x19d   :  { %v1089_v62 = vadd.s32 536870912, %v1088_v42  ;;  %vm229_vm6 = vcmp.lt.s32.totalorder %v4601_v8, 2  ;;  %vm230_vm7 = vcmp.lt.s32.totalorder %v4601_v8, 3  ;;  %v233_v2 = vsel %vm231_vm9, %v221_v41, 2102212464 }
 0x19e   :  { %v238_v43 = vsel %vm230_vm7, %v221_v41, %v4766_v53  ;;  %v240_v10 = vsel %vm228_vm5, %v218_v48, %v221_v41  ;;  %v242_v38 = vsel %vm230_vm7, %v4688_v17, %v4770_v5  ;;  %v1002_v0 = vshll.u32 %v1001_v52, 23 }
 0x19f   :  { %v5000_v34 = vshrl.u32 %v1089_v62, 30  ;;  %v212_v58 = vshrl.u32 %v6971_v59, %v4604_v9  ;;  %v239_v56 = vsel %vm229_vm6, %v236_v40, %v238_v43  ;;  %v998_v47 = vshrl.u32 %v4899_v16, %v996_v4 }
 0x1a0   :  { %v896_v53 = vsub.s32 4294967266, %v4981_v3  ;;  %v243_v46 = vsel %vm229_vm6, %v240_v10, %v242_v38  ;;  %v244_v27 = vshll.u32 %v204_v25, 8  ;;  %v1208_v55 = vsub.s32 4294967266, %v4985_v33 }
 0x1a1   :  { %v1091_v17 = vshll.u32 %v5000_v34, 30  ;;  %v232_v5 = vsel %vm228_vm5, %v212_v58, %v215_v44  ;;  %v234_v9 = vsel %vm230_vm7, %v218_v48, %v233_v2  ;;  %v592_v41 = vxor.u32 2147483648, %v4817_v39 }
 0x1a2   :  { %v5016_v31 = vmul.u32.u64.low %v244_v27, %v243_v46  ;;  %v5017_v6 = vmul.u32.u64.high %v244_v27, %v243_v46, %v5016_v31  ;;  %v5019_v16 = vmul.u32.u64.low %v244_v27, %v239_v56  ;;  %v5020_v13 = vmul.u32.u64.high %v244_v27, %v239_v56, %v5019_v16 }
 0x1a3   :  { %v997_v52 = vshll.u32 %v4835_v11, %v4926_v57  ;;  %v1003_v4 = vor.u32 4788187, %v1002_v0  ;;  %v5026_v25 = vsub.s32 %v1088_v42, %v1091_v17  ;;  %v6981_v44 = vxor.u32 2147483648, %v4778_v49 }
 0x1a4   :  { %v798_v40 = vcvt.s32.f32 %v4893_v36  ;;  %v687_v62 = vor.u32 %v686_v21, %v685_v26  ;;  %v235_v2 = vsel %vm229_vm6, %v232_v5, %v234_v9  ;;  %v796_v57 = vand.u32 2147483647, %v4895_v20 }
 0x1a5   :  { %v5033_v48 = vsel %vm406_vm4, %v6981_v44, %v4778_v49  ;;  %v999_v11 = vor.u32 %v998_v47, %v997_v52  ;;  %v897_v42 = vadd.s32 127, %v896_v53  ;;  %v1094_v43 = vsub.s32 0, %v5026_v25  ;;  %v6983_v52 = vld [vmem:[#allocation8_spill] sm:$0xff] }
 0x1a6   :  { %v692_v10 = vand.u32 2147483647, %v4977_v61  ;;  %v1209_v38 = vadd.s32 127, %v1208_v55  ;;  %vm253_vm9 = vc.u32 %v5017_v6, %v5019_v16  ;;  %v254_v49 = vadd.s32 1, %v5020_v13 }
 0x1a7   :  { %v1004_v36 = vand.u32 2147483647, %v1003_v4  ;;  %v892_v37 = vsub.s32 32, %v4981_v3  ;;  %v3666_v8 = vmin.u32 %v1094_v43, %v5026_v25  ;;  %v251_v45 = vmul.u32 %v244_v27, %v235_v2  ;;  %v6988_v2 = vld [vmem:[#allocation17_spill] sm:$0xff] }
 0x1a8   :  { %v694_v26 = vcvt.s32.f32 %v687_v62  ;;  %v876_v20 = vadd.s32 %v4809_v35, %v4820_v50  ;;  %v1204_v21 = vsub.s32 32, %v4985_v33  ;;  %v255_v61 = vsel %vm253_vm9, %v254_v49, %v5020_v13  ;;  %v6982_v35 = vld [vmem:[#allocation12_spill] sm:$0xff] }
 0x1a9   :  { %vm510_vm8 = vcmp.lt.s32.totalorder %v4400_v18, 0  ;;  %v1006_v0 = vcvt.s32.f32 %v999_v11  ;;  %v898_v58 = vshll.u32 %v897_v42, 23  ;;  %v1096_v56 = vclz %v3666_v8  ;;  %v6989_v42 = vld [vmem:[#allocation11_spill] sm:$0xff] }
 0x1aa   :  { %v256_v47 = vadd.s32 %v255_v61, %v251_v45  ;;  %v799_v53 = vmul.f32 %v798_v40, %v796_v57  ;;  %v695_v46 = vmul.f32 %v694_v26, %v692_v10  ;;  %v1188_v55 = vadd.s32 %v4867_v30, %v4875_v63  ;;  %v6987_v30 = vld [vmem:[#allocation9_spill] sm:$0xff] }
 0x1ab   :  { %v1210_v27 = vshll.u32 %v1209_v38, 23  ;;  %vm718_vm10 = vcmp.lt.s32.totalorder %v4524_v22, 0  ;;  %vm614_vm12 = vcmp.lt.s32.totalorder %v4547_v60, 0  ;;  %vm926_vm13 = vcmp.lt.s32.totalorder %v6982_v35, 0 }
 0x1ac   :  { %v1007_v50 = vmul.f32 %v1006_v0, %v1004_v36  ;;  %v894_v17 = vshrl.u32 %v876_v20, %v892_v37  ;;  %v3667_v5 = vadd.s32 4294967294, %v1096_v56  ;;  %v257_v9 = vadd.s32 536870912, %v256_v47 }
 0x1ad   :  { %v893_v31 = vshll.u32 %v4887_v15, %v4981_v3  ;;  %v1206_v13 = vshrl.u32 %v1188_v55, %v1204_v21  ;;  %v6984_v4 = vand.u32 2147483647, %v6983_v52  ;;  %v386_v63 = vsub.s32 4, %v6987_v30 }
 0x1ae   :  { %v899_v40 = vor.u32 4788187, %v898_v58  ;;  %vm3668_vm15 = vcmp.lt.s32.totalorder %v3667_v5, 0  ;;  %v5068_v62 = vshrl.u32 %v257_v9, 30  ;;  %v1205_v15 = vshll.u32 %v4929_v54, %v4985_v33 }
 0x1af   :  { %vm5063_vm14 = vcmp.le.f32.partialorder %v6984_v4, 0.7853982  ;;  %v1211_v3 = vor.u32 4788187, %v1210_v27  ;;  %v5076_v11 = vsel %vm3668_vm15, 0, %v3667_v5  ;;  %v490_v43 = vsub.s32 4, %v6989_v42 }
 0x1b0   :  { %v388_v57 = vsel %vm5063_vm14, %v6983_v52, %v6988_v2  ;;  %v800_v10 = vxor.u32 2147483648, %v799_v53  ;;  %v696_v38 = vxor.u32 2147483648, %v695_v46  ;;  %v895_v49 = vor.u32 %v894_v17, %v893_v31  ;;  %v6998_v2 = vld [vmem:[#allocation10_spill] sm:$0xff] }
 0x1b1   :  { %v259_v36 = vshll.u32 %v5068_v62, 30  ;;  %v1008_v37 = vxor.u32 2147483648, %v1007_v50  ;;  %v1207_v8 = vor.u32 %v1206_v13, %v1205_v15  ;;  %v387_v45 = vsel %vm302_vm11, %v386_v63, %v6987_v30  ;;  %v6993_v30 = vld [vmem:[#allocation14_spill] sm:$0xff] }
 0x1b2   :  { %4125 = vcosq.f32 %v388_v57  ;;  %v900_v26 = vand.u32 2147483647, %v899_v40  ;;  %v1104_v54 = vsub.s32 4294967266, %v5076_v11  ;;  %v593_v20 = vsel %vm510_vm8, %v592_v41, %v4817_v39 }
 0x1b3   :  { %v5084_v33 = vsub.s32 %v256_v47, %v259_v36  ;;  %4127 = vsinq.f32 %v388_v57  ;;  %v1212_v21 = vand.u32 2147483647, %v1211_v3  ;;  %v6990_v61 = vand.u32 2147483647, %v4405_v23 }
 0x1b4   :  { %v491_v58 = vsel %vm406_vm4, %v490_v43, %v6989_v42  ;;  %v902_v56 = vcvt.s32.f32 %v895_v49  ;;  %v389_v55 = vsel %vm5063_vm14, 0, %v387_v45  ;;  %v5109_v41 = vsel %vm718_vm10, %v800_v10, %v799_v53 }
 0x1b5   :  { %vm5093_vm0 = vcmp.le.f32.partialorder %v6990_v61, 0.7853982  ;;  %v262_v47 = vsub.s32 0, %v5084_v33  ;;  %v5113_v27 = vsel %vm614_vm12, %v696_v38, %v695_v46  ;;  %v5117_v17 = vsel %vm926_vm13, %v1008_v37, %v1007_v50  ;;  %v6994_v46 = vld [vmem:[#allocation16_spill] sm:$0xff] }
 0x1b6   :  { %v492_v39 = vsel %vm5093_vm0, %v4405_v23, %v5033_v48  ;;  %v1214_v5 = vcvt.s32.f32 %v1207_v8  ;;  %v903_v9 = vmul.f32 %v902_v56, %v900_v26  ;;  %v1105_v31 = vadd.s32 127, %v1104_v54 }
 0x1b7   :  { %v3634_v13 = vmin.u32 %v262_v47, %v5084_v33  ;;  %v493_v48 = vsel %vm5093_vm0, 0, %v491_v58  ;;  %v1100_v53 = vsub.s32 32, %v5076_v11  ;;  %v393_v44 = vadd.s32 3, %v389_v55 }
 0x1b8   :  { %v1215_v4 = vmul.f32 %v1214_v5, %v1212_v21  ;;  %4129 = vcosq.f32 %v492_v39  ;;  %vm822_vm11 = vcmp.lt.s32.totalorder %v6993_v30, 0  ;;  %vm1134_vm1 = vcmp.lt.s32.totalorder %v6994_v46, 0 }
 0x1b9   :  { %v264_v63 = vclz %v3634_v13  ;;  %4131 = vsinq.f32 %v492_v39  ;;  %v6995_v50 = vand.u32 2147483647, %v4400_v18  ;;  %v594_v57 = vsub.s32 4, %v6998_v2 }
 0x1ba   :  { %v1084_v15 = vadd.s32 %v4941_v51, %v4951_v14  ;;  %v282_v3 = vsub.s32 4, %v5068_v62  ;;  %v497_v42 = vadd.s32 3, %v493_v48  ;;  %v1106_v10 = vshll.u32 %v1105_v31, 23 }
 0x1bb   :  { %vm5127_vm2 = vcmp.le.f32.partialorder %v6995_v50, 0.7853982  ;;  %vm5140_vm3 = vcmp.le.f32.partialorder %v196_v19, 0.7853982  ;;  %vm198_vm4 = vcmp.lt.s32.totalorder %v4443_v29, 0  ;;  %v3635_v49 = vadd.s32 4294967294, %v264_v63 }
 0x1bc   :  { %v596_v43 = vsel %vm5127_vm2, %v4400_v18, %v593_v20  ;;  %v4126_v36 = vpop.eup %4125  ;;  %v904_v37 = vxor.u32 2147483648, %v903_v9  ;;  %v1216_v51 = vxor.u32 2147483648, %v1215_v4  ;;  %v1102_v14 = vshrl.u32 %v1084_v15, %v1100_v53 }
 0x1bd   :  { %v252_v8 = vadd.s32 %v5019_v16, %v5017_v6  ;;  %v4128_v45 = vpop.eup %4127  ;;  %vm3636_vm5 = vcmp.lt.s32.totalorder %v3635_v49, 0  ;;  %v394_v26 = vand.u32 3, %v393_v44  ;;  %v595_v19 = vsel %vm510_vm8, %v594_v57, %v6998_v2 }
 0x1be   :  { %4133 = vcosq.f32 %v596_v43  ;;  %v1101_v54 = vshll.u32 %v5026_v25, %v5076_v11  ;;  %v267_v20 = vsel %vm3636_vm5, 0, %v3635_v49  ;;  %v283_v21 = vsel %vm198_vm4, %v282_v3, %v5068_v62  ;;  %v7004_v3 = vld [vmem:[#allocation18_spill] sm:$0xff] }
 0x1bf   :  { %v5155_v61 = vand.u32 3, %v497_v42  ;;  %v1107_v0 = vor.u32 4788187, %v1106_v10  ;;  %v268_v6 = vsub.s32 32, %v267_v20  ;;  %v272_v16 = vsub.s32 4294967266, %v267_v20  ;;  %v7005_v10 = vld [vmem:[#allocation15_spill] sm:$0xff] }
 0x1c0   :  { %4135 = vsinq.f32 %v596_v43  ;;  %v1103_v58 = vor.u32 %v1102_v14, %v1101_v54  ;;  %v397_v56 = vxor.u32 2147483648, %v4128_v45  ;;  %v400_v47 = vxor.u32 2147483648, %v4126_v36 }
 0x1c1   :  { %v597_v55 = vsel %vm5127_vm2, 0, %v595_v19  ;;  %v269_v39 = vshll.u32 %v5084_v33, %v267_v20  ;;  %v270_v25 = vshrl.u32 %v252_v8, %v268_v6  ;;  %v273_v11 = vadd.s32 127, %v272_v16  ;;  %v7009_v16 = vld [vmem:[#allocation13_spill] sm:$0xff] }
 0x1c2   :  { %v285_v5 = vsel %vm5140_vm3, 0, %v283_v21  ;;  %v4130_v62 = vpop.eup %4129  ;;  %v905_v31 = vsel %vm822_vm11, %v904_v37, %v903_v9  ;;  %v5166_v13 = vsel %vm1134_vm1, %v1216_v51, %v1215_v4  ;;  %vm395_vm6 = vcmp.lt.s32.totalorder %v394_v26, 2 }
 0x1c3   :  { %vm396_vm7 = vcmp.eq.s32.totalorder %v394_v26, 0  ;;  %v4132_v48 = vpop.eup %4131  ;;  %v1108_v53 = vand.u32 2147483647, %v1107_v0  ;;  %v271_v44 = vor.u32 %v270_v25, %v269_v39  ;;  %v274_v63 = vshll.u32 %v273_v11, 23 }
 0x1c4   :  { %vm399_vm9 = vcmp.eq.s32.totalorder %v394_v26, 2  ;;  %v289_v33 = vadd.s32 3, %v285_v5  ;;  %vm500_vm8 = vcmp.eq.s32.totalorder %v5155_v61, 0  ;;  %v601_v50 = vadd.s32 3, %v597_v55 }
 0x1c5   :  { %v7001_v40 = vand.u32 2147483647, %v4547_v60  ;;  %v1110_v9 = vcvt.s32.f32 %v1103_v58  ;;  %v275_v4 = vor.u32 4788187, %v274_v63  ;;  %v398_v57 = vsel %vm396_vm7, %v4126_v36, %v397_v56  ;;  %v7013_v63 = vld [vmem:[#allocation20_spill] sm:$0xff] }
 0x1c6   :  { %v401_v15 = vsel %vm399_vm9, %v400_v47, %v4128_v45  ;;  %vm1030_vm15 = vcmp.lt.s32.totalorder %v7004_v3, 0  ;;  %v501_v42 = vxor.u32 2147483648, %v4132_v48  ;;  %vm503_vm0 = vcmp.eq.s32.totalorder %v5155_v61, 2 }
 0x1c7   :  { %vm5171_vm14 = vcmp.le.f32.partialorder %v7001_v40, 0.7853982  ;;  %v504_v43 = vxor.u32 2147483648, %v4130_v62  ;;  %v698_v49 = vsub.s32 4, %v7005_v10  ;;  %v1111_v51 = vmul.f32 %v1110_v9, %v1108_v53 }
 0x1c8   :  { %v4134_v37 = vpop.eup %4133  ;;  %v276_v14 = vand.u32 2147483647, %v275_v4  ;;  %v278_v8 = vcvt.s32.f32 %v271_v44  ;;  %v700_v19 = vsel %vm5171_vm14, %v4547_v60, %v5113_v27  ;;  %v5182_v54 = vand.u32 3, %v289_v33 }
 0x1c9   :  { %v402_v36 = vsel %vm395_vm6, %v398_v57, %v401_v15  ;;  %v602_v45 = vand.u32 3, %v601_v50  ;;  %v7006_v20 = vand.u32 2147483647, %v4524_v22  ;;  %v802_v58 = vsub.s32 4, %v7009_v16 }
 0x1ca   :  { %v4136_v0 = vpop.eup %4135  ;;  %v279_v6 = vmul.f32 %v278_v8, %v276_v14  ;;  %v7010_v56 = vand.u32 2147483647, %v6993_v30  ;;  %vm392_vm6 = vweird.f32 %v6983_v52  ;;  %v502_v47 = vsel %vm500_vm8, %v4130_v62, %v501_v42 }
 0x1cb   :  { %vm5187_vm2 = vcmp.le.f32.partialorder %v7006_v20, 0.7853982  ;;  %v699_v55 = vsel %vm614_vm12, %v698_v49, %v7005_v10  ;;  %4137 = vcosq.f32 %v700_v19  ;;  %v1112_v39 = vxor.u32 2147483648, %v1111_v51 }
 0x1cc   :  { %v804_v27 = vsel %vm5187_vm2, %v4524_v22, %v5109_v41  ;;  %vm5198_vm5 = vcmp.le.f32.partialorder %v7010_v56, 0.7853982  ;;  %v280_v25 = vxor.u32 2147483648, %v279_v6  ;;  %v505_v11 = vsel %vm503_vm0, %v504_v43, %v4132_v48  ;;  %v7017_v43 = vld [vmem:[#allocation19_spill] sm:$0xff] }
 0x1cd   :  { %v908_v41 = vsel %vm5198_vm5, %v6993_v30, %v905_v31  ;;  %4139 = vsinq.f32 %v700_v19  ;;  %vm604_vm7 = vcmp.eq.s32.totalorder %v602_v45, 0  ;;  %v605_v5 = vxor.u32 2147483648, %v4136_v0 }
 0x1ce   :  { %v608_v53 = vxor.u32 2147483648, %v4134_v37  ;;  %4141 = vcosq.f32 %v804_v27  ;;  %v281_v62 = vsel %vm198_vm4, %v280_v25, %v279_v6  ;;  %v803_v44 = vsel %vm718_vm10, %v802_v58, %v7009_v16 }
 0x1cf   :  { %v906_v33 = vsub.s32 4, %v7013_v63  ;;  %4143 = vcosq.f32 %v908_v41  ;;  %v284_v31 = vsel %vm5140_vm3, %v4443_v29, %v281_v62  ;;  %vm496_vm12 = vweird.f32 %v4405_v23 }
 0x1d0   :  { %vm607_vm9 = vcmp.eq.s32.totalorder %v602_v45, 2  ;;  %4145 = vsinq.f32 %v908_v41  ;;  %v7014_v48 = vand.u32 2147483647, %v6982_v35  ;;  %v1113_v40 = vsel %vm1030_vm15, %v1112_v39, %v1111_v51 }
 0x1d1   :  { %4147 = vcosq.f32 %v284_v31  ;;  %vm600_vm10 = vweird.f32 %v4400_v18  ;;  %v701_v38 = vsel %vm5171_vm14, 0, %v699_v55  ;;  %v606_v4 = vsel %vm604_vm7, %v4134_v37, %v605_v5 }
 0x1d2   :  { %vm5225_vm8 = vcmp.le.f32.partialorder %v7014_v48, 0.7853982  ;;  %4149 = vsinq.f32 %v284_v31  ;;  %v609_v57 = vsel %vm607_vm9, %v608_v53, %v4136_v0  ;;  %v805_v15 = vsel %vm5187_vm2, 0, %v803_v44 }
 0x1d3   :  { %v1012_v9 = vsel %vm5225_vm8, %v6982_v35, %v5117_v17  ;;  %4151 = vsinq.f32 %v804_v27  ;;  %v907_v42 = vsel %vm822_vm11, %v906_v33, %v7013_v63  ;;  %v1010_v2 = vsub.s32 4, %v7017_v43 }
 0x1d4   :  { %v7018_v10 = vand.u32 2147483647, %v7004_v3  ;;  %v705_v17 = vadd.s32 3, %v701_v38  ;;  %4153 = vcosq.f32 %v1012_v9  ;;  %v1114_v37 = vsub.s32 4, %v5000_v34 }
 0x1d5   :  { %v5257_v14 = vsel %vm392_vm6, nan, %v402_v36  ;;  %vm499_vm11 = vcmp.lt.s32.totalorder %v5155_v61, 2  ;;  %vm603_vm4 = vcmp.lt.s32.totalorder %v602_v45, 2  ;;  %v4138_v8 = vpop.eup %4137  ;;  %v809_v20 = vadd.s32 3, %v805_v15 }
 0x1d6   :  { %vm5247_vm3 = vcmp.le.f32.partialorder %v7018_v10, 0.7853982  ;;  %v506_v19 = vsel %vm499_vm11, %v502_v47, %v505_v11  ;;  %v909_v21 = vsel %vm5198_vm5, 0, %v907_v42  ;;  %vm291_vm14 = vcmp.lt.s32.totalorder %v5182_v54, 2 }
 0x1d7   :  { %v1116_v51 = vsel %vm5247_vm3, %v7004_v3, %v1113_v40  ;;  %v4140_v0 = vpop.eup %4139  ;;  %v610_v6 = vsel %vm603_vm4, %v606_v4, %v609_v57  ;;  %v1011_v52 = vsel %vm926_vm13, %v1010_v2, %v7017_v43  ;;  %v7021_v61 = vand.u32 2147483647, %v6994_v46 }
 0x1d8   :  { %4155 = vcosq.f32 %v1116_v51  ;;  %v5272_v45 = vpop.eup %4141  ;;  %vm288_vm2 = vweird.f32 %v4443_v29  ;;  %vm292_vm5 = vcmp.eq.s32.totalorder %v5182_v54, 0  ;;  %v706_v16 = vand.u32 3, %v705_v17 }
 0x1d9   :  { %4157 = vsinq.f32 %v1116_v51  ;;  %vm5268_vm0 = vcmp.le.f32.partialorder %v7021_v61, 0.7853982  ;;  %v1115_v58 = vsel %vm1030_vm15, %v1114_v37, %v5000_v34  ;;  %v4144_v56 = vpop.eup %4143  ;;  %vm295_vm13 = vcmp.eq.s32.totalorder %v5182_v54, 2 }
 0x1da   :  { %4159 = vsinq.f32 %v1012_v9  ;;  %v1220_v27 = vsel %vm5268_vm0, %v6994_v46, %v5166_v13  ;;  %v507_v26 = vsel %vm496_vm12, nan, %v506_v19  ;;  %v913_v47 = vadd.s32 3, %v909_v21  ;;  %v4146_v41 = vpop.eup %4145 }
 0x1db   :  { %v1218_v55 = vsub.s32 4, %v4918_v24  ;;  %v5289_v39 = vsel %vm600_vm10, nan, %v610_v6  ;;  %v5291_v34 = vand.u32 3, %v809_v20  ;;  %v1013_v25 = vsel %vm5225_vm8, 0, %v1011_v52  ;;  %v4148_v13 = vpop.eup %4147 }
 0x1dc   :  { %4161 = vcosq.f32 %v1220_v27  ;;  %v709_v11 = vxor.u32 2147483648, %v4140_v0  ;;  %v712_v5 = vxor.u32 2147483648, %v4138_v8  ;;  %v1117_v23 = vsel %vm5247_vm3, 0, %v1115_v58  ;;  %v4150_v53 = vpop.eup %4149 }
 0x1dd   :  { %4163 = vsinq.f32 %v1220_v27  ;;  %v296_v62 = vxor.u32 2147483648, %v4148_v13  ;;  %vm704_vm15 = vweird.f32 %v4547_v60  ;;  %vm707_vm6 = vcmp.lt.s32.totalorder %v706_v16, 2  ;;  %v4152_v18 = vpop.eup %4151 }
 0x1de   :  { %vm708_vm7 = vcmp.eq.s32.totalorder %v706_v16, 0  ;;  %vm711_vm12 = vcmp.eq.s32.totalorder %v706_v16, 2  ;;  %v293_v44 = vxor.u32 2147483648, %v4150_v53  ;;  %v914_v63 = vand.u32 3, %v913_v47  ;;  %v4154_v48 = vpop.eup %4153 }
 0x1df   :  { %v1017_v33 = vadd.s32 3, %v1013_v25  ;;  %v1219_v31 = vsel %vm1134_vm1, %v1218_v55, %v4918_v24  ;;  %v297_v50 = vsel %vm295_vm13, %v296_v62, %v4150_v53  ;;  %vm812_vm9 = vcmp.eq.s32.totalorder %v5291_v34, 0 }
 0x1e0   :  { %v920_v40 = vxor.u32 2147483648, %v4144_v56  ;;  %v1121_v38 = vadd.s32 3, %v1117_v23  ;;  %v294_v4 = vsel %vm292_vm5, %v4148_v13, %v293_v44  ;;  %v710_v57 = vsel %vm708_vm7, %v4138_v8, %v709_v11 }
 0x1e1   :  { %v713_v15 = vsel %vm711_vm12, %v712_v5, %v4140_v0  ;;  %v917_v42 = vxor.u32 2147483648, %v4146_v41  ;;  %v298_v2 = vsel %vm291_vm14, %v294_v4, %v297_v50  ;;  %v813_v24 = vxor.u32 2147483648, %v4152_v18 }
 0x1e2   :  { %v4156_v9 = vpop.eup %4155  ;;  %v816_v10 = vxor.u32 2147483648, %v5272_v45  ;;  %vm912_vm1 = vweird.f32 %v6993_v30  ;;  %v1221_v49 = vsel %vm5268_vm0, 0, %v1219_v31  ;;  %v299_v37 = vsel %vm288_vm2, nan, %v298_v2 }
 0x1e3   :  { %v4158_v43 = vpop.eup %4157  ;;  %vm815_vm8 = vcmp.eq.s32.totalorder %v5291_v34, 2  ;;  %vm919_vm10 = vcmp.eq.s32.totalorder %v914_v63, 2  ;;  %v1018_v51 = vand.u32 3, %v1017_v33  ;;  %3869 = vmatprep.mubr.f32.mxu1 %v299_v37  ;;  %v714_v54 = vsel %vm707_vm6, %v710_v57, %v713_v15 }
 0x1e4   :  { %v4160_v17 = vpop.eup %4159  ;;  %vm916_vm3 = vcmp.eq.s32.totalorder %v914_v63, 0  ;;  %v921_v8 = vsel %vm919_vm10, %v920_v40, %v4146_v41  ;;  %v1122_v19 = vand.u32 3, %v1121_v38  ;;  %3870 = vmatmul.mubr.f32.vlgmr.msra.gmra.mrb[0].mxu1 %v5257_v14  ;;  %v1125_v21 = vxor.u32 2147483648, %v4158_v43 }
 0x1e5   :  { %v918_v20 = vsel %vm916_vm3, %v4144_v56, %v917_v42  ;;  %v1128_v0 = vxor.u32 2147483648, %v4156_v9  ;;  %v1225_v6 = vadd.s32 3, %v1221_v49  ;;  %3872 = vmatprep.mubr.f32.mxu1 %v507_v26  ;;  %v814_v29 = vsel %vm812_vm9, %v5272_v45, %v813_v24 }
 0x1e6   :  { %v4162_v52 = vpop.eup %4161  ;;  %v817_v61 = vsel %vm815_vm8, %v816_v10, %v4152_v18  ;;  %v1021_v36 = vxor.u32 2147483648, %v4160_v17  ;;  %v1024_v16 = vxor.u32 2147483648, %v4154_v48  ;;  %v715_v27 = vsel %vm704_vm15, nan, %v714_v54  ;;  %v5335_v18 = vld [vmem:[%s6900_s3 + $0x1] ss:$0 sm:$0xff] }
 0x1e7   :  { %v4164_v58 = vpop.eup %4163  ;;  %vm811_vm11 = vcmp.lt.s32.totalorder %v5291_v34, 2  ;;  %vm915_vm4 = vcmp.lt.s32.totalorder %v914_v63, 2  ;;  %vm1020_vm14 = vcmp.eq.s32.totalorder %v1018_v51, 0  ;;  %vm1023_vm0 = vcmp.eq.s32.totalorder %v1018_v51, 2 }
 0x1e8   :  { %v922_v14 = vsel %vm915_vm4, %v918_v20, %v921_v8  ;;  %vm1124_vm2 = vcmp.eq.s32.totalorder %v1122_v19, 0  ;;  %vm1127_vm5 = vcmp.eq.s32.totalorder %v1122_v19, 2  ;;  %3873 = vmatmul.mubr.f32.gmra.mrb[2].mxu1 %v5289_v39  ;;  %v818_v45 = vsel %vm811_vm11, %v814_v29, %v817_v61 }
 0x1e9   :  { %v1126_v56 = vsel %vm1124_vm2, %v4156_v9, %v1125_v21  ;;  %v1129_v26 = vsel %vm1127_vm5, %v1128_v0, %v4158_v43  ;;  %v1226_v47 = vand.u32 3, %v1225_v6  ;;  %3875 = vmatprep.mubr.f32.mxu1 %v715_v27  ;;  %v1022_v55 = vsel %vm1020_vm14, %v4154_v48, %v1021_v36 }
 0x1ea   :  { %v1025_v41 = vsel %vm1023_vm0, %v1024_v16, %v4160_v17  ;;  %v1229_v25 = vxor.u32 2147483648, %v4164_v58  ;;  %v1232_v60 = vxor.u32 2147483648, %v4162_v52  ;;  %vm808_vm13 = vweird.f32 %v4524_v22 }
 0x1eb   :  { %v923_v34 = vsel %vm912_vm1, nan, %v922_v14  ;;  %vm1123_vm15 = vcmp.lt.s32.totalorder %v1122_v19, 2  ;;  %v819_v13 = vsel %vm808_vm13, nan, %v818_v45  ;;  %vm1019_vm6 = vcmp.lt.s32.totalorder %v1018_v51, 2 }
 0x1ec   :  { %v1130_v11 = vsel %vm1123_vm15, %v1126_v56, %v1129_v26  ;;  %3876 = vmatmul.mubr.f32.gmra.mrb[4].mxu1 %v819_v13  ;;  %v1026_v39 = vsel %vm1019_vm6, %v1022_v55, %v1025_v41  ;;  %vm1228_vm7 = vcmp.eq.s32.totalorder %v1226_v47, 0  ;;  %vm1231_vm12 = vcmp.eq.s32.totalorder %v1226_v47, 2 }
 0x1ed   :  { %3878 = vmatprep.mubr.f32.mxu1 %v923_v34  ;;  %vm1120_vm9 = vweird.f32 %v7004_v3  ;;  %v1230_v5 = vsel %vm1228_vm7, %v4162_v52, %v1229_v25  ;;  %v1233_v23 = vsel %vm1231_vm12, %v1232_v60, %v4164_v58  ;;  %vm1016_vm8 = vweird.f32 %v6982_v35 }
 0x1ee   :  { %v1131_v53 = vsel %vm1120_vm9, nan, %v1130_v11  ;;  %v1027_v22 = vsel %vm1016_vm8, nan, %v1026_v39  ;;  %vm1227_vm10 = vcmp.lt.s32.totalorder %v1226_v47, 2  ;;  %vm1224_vm1 = vweird.f32 %v6994_v46 }
 0x1ef   :  { %v1234_v30 = vsel %vm1227_vm10, %v1230_v5, %v1233_v23 }
 0x1f0   :  { %3879 = vmatmul.mubr.f32.gmra.mrb[6].mxu1 %v1027_v22  ;;  %v1235_v62 = vsel %vm1224_vm1, nan, %v1234_v30 }
 0x1f1   :  { %3881 = vmatprep.mubr.f32.mxu1 %v1131_v53 }
 0x1f4   :  { %3882 = vmatmul.mubr.f32.gmra.mrb[8].mxu1 %v1235_v62 }
 0x2b7   :  { %v3871_v3 = vpop.f32.mrb[0].mxu1 }
 0x2b8   :  { %v5338_v44 = vadd.f32 %v3871_v3, %v5335_v18  ;;  %v1326_v35 = vpop.f32.mrb[1].mxu1 }
 0x2b9   :  { %v5341_v63 = vadd.f32 %v5335_v18, %v1326_v35 }
 0x2ba   :  { %v1479_v33 = vand.u32 2147483647, %v5338_v44  ;;  %v1482_v31 = vand.u32 2139095040, %v5338_v44 }
 0x2bb   :  { %v6953_v46 = vand.u32 2147483647, %v5341_v63  ;;  %v1378_v48 = vand.u32 2139095040, %v5341_v63  ;;  %v3874_v50 = vpop.f32.mrb[2].mxu1 }
 0x2bc   :  { %v1483_v40 = vshrl.u32 %v1482_v31, 23  ;;  %v1486_v38 = vand.u32 8388607, %v1479_v33  ;;  %v5350_v9 = vadd.f32 %v3874_v50, %v5335_v18  ;;  %v1336_v4 = vpop.f32.mrb[3].mxu1 }
 0x2bd   :  { %v1379_v57 = vshrl.u32 %v1378_v48, 23  ;;  %v1382_v15 = vand.u32 8388607, %v6953_v46  ;;  %v5365_v20 = vadd.f32 %v5335_v18, %v1336_v4  ;;  %v2416_v46 = vld [vmem:[#allocation2 + $0x80] sm:$0xff] }
 0x2be   :  { %v3679_v42 = vadd.s32 4294967169, %v1483_v40  ;;  %v6951_v43 = vand.u32 2147483647, %v5350_v9  ;;  %v1487_v2 = vor.u32 8388608, %v1486_v38  ;;  %v1690_v10 = vand.u32 2139095040, %v5350_v9 }
 0x2bf   :  { %v3675_v24 = vadd.s32 4294967169, %v1379_v57  ;;  %v5356_v49 = vpop.f32.mrb[4].mxu1  ;;  %v1383_v37 = vor.u32 8388608, %v1382_v15  ;;  %v1586_v56 = vand.u32 2139095040, %v5365_v20 }
 0x2c0   :  { %v1489_v17 = vadd.s32 1, %v3679_v42  ;;  %v5358_v51 = vpop.f32.mrb[5].mxu1  ;;  %v1691_v8 = vshrl.u32 %v1690_v10, 23  ;;  %v5362_v19 = vand.u32 8388607, %v6951_v43  ;;  %v5367_v0 = vshll.u32 %v1487_v2, 8 }
 0x2c1   :  { %v1385_v54 = vadd.s32 1, %v3675_v24  ;;  %v5371_v16 = vshll.u32 %v1383_v37, 8 }
 0x2c2   :  { %vm1490_vm3 = vcmp.gt.s32.totalorder %v1489_v17, 0  ;;  %v3687_v6 = vadd.s32 4294967169, %v1691_v8  ;;  %v1695_v45 = vor.u32 8388608, %v5362_v19 }
 0x2c3   :  { %v1491_v21 = vsel %vm1490_vm3, %v1489_v17, 0  ;;  %vm1386_vm11 = vcmp.gt.s32.totalorder %v1385_v54, 0  ;;  %v5369_v52 = vpop.f32.mrb[6].mxu1 }
 0x2c4   :  { %v1492_v29 = vshrl.u32 %v1491_v21, 5  ;;  %v1493_v61 = vand.u32 31, %v1491_v21  ;;  %v1387_v36 = vsel %vm1386_vm11, %v1385_v54, 0  ;;  %v5373_v58 = vpop.f32.mrb[7].mxu1  ;;  %v5381_v41 = vadd.s32 1, %v3687_v6 }
 0x2c5   :  { %v5375_v27 = vshrl.u32 %v1387_v36, 5  ;;  %v1389_v14 = vand.u32 31, %v1387_v36 }
 0x2c6   :  { %v1494_v26 = vsub.s32 32, %v1493_v61  ;;  %v1496_v47 = vshll.u32 %v6971_v59, %v1493_v61  ;;  %v1499_v55 = vshll.u32 %v6966_v28, %v1493_v61  ;;  %v1502_v25 = vshll.u32 %v6967_v12, %v1493_v61 }
 0x2c7   :  { %v1505_v60 = vshll.u32 %v6974_v32, %v1493_v61  ;;  %v1508_v34 = vshll.u32 %v6975_v7, %v1493_v61  ;;  %vm1511_vm4 = vcmp.lt.s32.totalorder %v1492_v29, 1  ;;  %v5386_v13 = vpop.f32.mrb[8].mxu1  ;;  %vm1512_vm14 = vcmp.lt.s32.totalorder %v1492_v29, 2 }
 0x2c8   :  { %v1497_v11 = vshrl.u32 %v6966_v28, %v1494_v26  ;;  %v1500_v39 = vshrl.u32 %v6967_v12, %v1494_v26  ;;  %v1503_v5 = vshrl.u32 %v6974_v32, %v1494_v26  ;;  %v1495_v23 = vshrl.u32 %v6971_v59, %v1494_v26 }
 0x2c9   :  { %v1506_v53 = vshrl.u32 %v6975_v7, %v1494_v26  ;;  %v1509_v22 = vshrl.u32 %v6969_v1, %v1494_v26  ;;  %vm1513_vm0 = vcmp.lt.s32.totalorder %v1492_v29, 3  ;;  %v1390_v35 = vsub.s32 32, %v1389_v14 }
 0x2ca   :  { %v1498_v30 = vor.u32 %v1497_v11, %v1496_v47  ;;  %v1501_v62 = vor.u32 %v1500_v39, %v1499_v55  ;;  %v1504_v3 = vor.u32 %v1503_v5, %v1502_v25  ;;  %vm1514_vm2 = vcmp.lt.s32.totalorder %v1492_v29, 4 }
 0x2cb   :  { %v1507_v31 = vor.u32 %v1506_v53, %v1505_v60  ;;  %v1510_v48 = vor.u32 %v1509_v22, %v1508_v34  ;;  %v1392_v50 = vshll.u32 %v6971_v59, %v1389_v14  ;;  %v1395_v24 = vshll.u32 %v6966_v28, %v1389_v14  ;;  %v5422_v53 = vpop.f32.mrb[9].mxu1 }
 0x2cc   :  { %v1515_v40 = vsel %vm1511_vm4, %v1495_v23, %v1498_v30  ;;  %v1516_v38 = vsel %vm1514_vm2, %v1504_v3, 2102212464  ;;  %v1519_v4 = vsel %vm1511_vm4, %v1498_v30, %v1501_v62  ;;  %v1523_v57 = vsel %vm1511_vm4, %v1501_v62, %v1504_v3 }
 0x2cd   :  { %v1517_v15 = vsel %vm1513_vm0, %v1501_v62, %v1516_v38  ;;  %v1520_v42 = vsel %vm1514_vm2, %v1507_v31, 920167782  ;;  %v1524_v2 = vsel %vm1514_vm2, %v1510_v48, 1326507024  ;;  %v1391_v37 = vshrl.u32 %v6971_v59, %v1390_v35 }
 0x2ce   :  { %v1521_v10 = vsel %vm1513_vm0, %v1504_v3, %v1520_v42  ;;  %v1525_v17 = vsel %vm1513_vm0, %v1507_v31, %v1524_v2  ;;  %v1393_v54 = vshrl.u32 %v6966_v28, %v1390_v35  ;;  %v1518_v8 = vsel %vm1512_vm14, %v1515_v40, %v1517_v15 }
 0x2cf   :  { %v1522_v21 = vsel %vm1512_vm14, %v1519_v4, %v1521_v10  ;;  %v1526_v6 = vsel %vm1512_vm14, %v1523_v57, %v1525_v17  ;;  %v1396_v61 = vshrl.u32 %v6967_v12, %v1390_v35  ;;  %v1398_v34 = vshll.u32 %v6967_v12, %v1389_v14 }
 0x2d0   :  { %v5409_v36 = vmul.u32.u64.low %v5367_v0, %v1526_v6  ;;  %v5410_v26 = vmul.u32.u64.high %v5367_v0, %v1526_v6, %v5409_v36  ;;  %v5413_v47 = vmul.u32.u64.low %v5367_v0, %v1522_v21  ;;  %v5414_v55 = vmul.u32.u64.high %v5367_v0, %v1522_v21, %v5413_v47 }
 0x2d1   :  { %v1394_v25 = vor.u32 %v1393_v54, %v1392_v50  ;;  %v1397_v60 = vor.u32 %v1396_v61, %v1395_v24  ;;  %v1399_v11 = vshrl.u32 %v6974_v32, %v1390_v35  ;;  %v1534_v39 = vmul.u32 %v5367_v0, %v1518_v8 }
 0x2d2   :  { %v1401_v29 = vshll.u32 %v6974_v32, %v1389_v14  ;;  %v1402_v5 = vshrl.u32 %v6975_v7, %v1390_v35  ;;  %v1405_v23 = vshrl.u32 %v6969_v1, %v1390_v35  ;;  %v1404_v30 = vshll.u32 %v6975_v7, %v1389_v14 }
 0x2d3   :  { %v1400_v22 = vor.u32 %v1399_v11, %v1398_v34  ;;  %vm1407_vm5 = vcmp.lt.s32.totalorder %v5375_v27, 1  ;;  %vm1408_vm13 = vcmp.lt.s32.totalorder %v5375_v27, 2  ;;  %vm1536_vm15 = vc.u32 %v5410_v26, %v5413_v47 }
 0x2d4   :  { %v1537_v62 = vadd.s32 1, %v5414_v55  ;;  %v1403_v0 = vor.u32 %v1402_v5, %v1401_v29  ;;  %vm1409_vm6 = vcmp.lt.s32.totalorder %v5375_v27, 3  ;;  %v1406_v3 = vor.u32 %v1405_v23, %v1404_v30 }
 0x2d5   :  { %vm1410_vm7 = vcmp.lt.s32.totalorder %v5375_v27, 4  ;;  %v1411_v35 = vsel %vm1407_vm5, %v1391_v37, %v1394_v25  ;;  %v1415_v31 = vsel %vm1407_vm5, %v1394_v25, %v1397_v60  ;;  %v1419_v40 = vsel %vm1407_vm5, %v1397_v60, %v1400_v22 }
 0x2d6   :  { %v1538_v48 = vsel %vm1536_vm15, %v1537_v62, %v5414_v55  ;;  %v1412_v50 = vsel %vm1410_vm7, %v1400_v22, 2102212464  ;;  %v1416_v14 = vsel %vm1410_vm7, %v1403_v0, 920167782  ;;  %v1420_v15 = vsel %vm1410_vm7, %v1406_v3, 1326507024 }
 0x2d7   :  { %v1539_v38 = vadd.s32 %v1538_v48, %v1534_v39  ;;  %v1413_v4 = vsel %vm1409_vm6, %v1397_v60, %v1412_v50  ;;  %v1417_v57 = vsel %vm1409_vm6, %v1400_v22, %v1416_v14  ;;  %v1421_v2 = vsel %vm1409_vm6, %v1403_v0, %v1420_v15 }
 0x2d8   :  { %v1418_v42 = vsel %vm1408_vm13, %v1415_v31, %v1417_v57  ;;  %vm1698_vm12 = vcmp.gt.s32.totalorder %v5381_v41, 0  ;;  %v1587_v24 = vshrl.u32 %v1586_v56, 23  ;;  %v1422_v17 = vsel %vm1408_vm13, %v1419_v40, %v1421_v2 }
 0x2d9   :  { %v1540_v10 = vadd.s32 536870912, %v1539_v38  ;;  %v5440_v37 = vmul.u32.u64.low %v5371_v16, %v1418_v42  ;;  %v5441_v54 = vmul.u32.u64.high %v5371_v16, %v1418_v42, %v5440_v37  ;;  %v1414_v8 = vsel %vm1408_vm13, %v1411_v35, %v1413_v4 }
 0x2da   :  { %v5447_v21 = vmul.u32.u64.low %v5371_v16, %v1422_v17  ;;  %v5448_v6 = vmul.u32.u64.high %v5371_v16, %v1422_v17, %v5447_v21  ;;  %v1699_v61 = vsel %vm1698_vm12, %v5381_v41, 0  ;;  %v5454_v55 = vadd.s32 %v5413_v47, %v5410_v26 }
 0x2db   :  { %v5451_v36 = vshrl.u32 %v1540_v10, 30  ;;  %v1701_v56 = vand.u32 31, %v1699_v61  ;;  %v5458_v25 = vshll.u32 %v1695_v45, 8  ;;  %v6952_v60 = vand.u32 2147483647, %v5365_v20 }
 0x2dc   :  { %v3683_v27 = vadd.s32 4294967169, %v1587_v24  ;;  %v1430_v11 = vmul.u32 %v5371_v16, %v1414_v8  ;;  %v1433_v39 = vadd.s32 1, %v5441_v54  ;;  %vm1432_vm9 = vc.u32 %v5448_v6, %v5440_v37 }
 0x2dd   :  { %v1542_v34 = vshll.u32 %v5451_v36, 30  ;;  %v1702_v41 = vsub.s32 32, %v1701_v56  ;;  %v1700_v29 = vshrl.u32 %v1699_v61, 5  ;;  %v1704_v26 = vshll.u32 %v6971_v59, %v1701_v56 }
 0x2de   :  { %v1707_v19 = vshll.u32 %v6966_v28, %v1701_v56  ;;  %v1434_v47 = vsel %vm1432_vm9, %v1433_v39, %v5441_v54  ;;  %v1710_v23 = vshll.u32 %v6967_v12, %v1701_v56  ;;  %v1713_v62 = vshll.u32 %v6974_v32, %v1701_v56 }
 0x2df   :  { %v5468_v45 = vsub.s32 %v1539_v38, %v1542_v34  ;;  %v1705_v5 = vshrl.u32 %v6966_v28, %v1702_v41  ;;  %v1435_v16 = vadd.s32 %v1434_v47, %v1430_v11  ;;  %v1708_v22 = vshrl.u32 %v6967_v12, %v1702_v41 }
 0x2e0   :  { %v1711_v30 = vshrl.u32 %v6974_v32, %v1702_v41  ;;  %v1714_v35 = vshrl.u32 %v6975_v7, %v1702_v41  ;;  %v1716_v31 = vshll.u32 %v6975_v7, %v1701_v56  ;;  %v1717_v40 = vshrl.u32 %v6969_v1, %v1702_v41 }
 0x2e1   :  { %v1545_v0 = vsub.s32 0, %v5468_v45  ;;  %v1706_v3 = vor.u32 %v1705_v5, %v1704_v26  ;;  %v1436_v48 = vadd.s32 536870912, %v1435_v16  ;;  %v1709_v50 = vor.u32 %v1708_v22, %v1707_v19 }
 0x2e2   :  { %v1712_v14 = vor.u32 %v1711_v30, %v1710_v23  ;;  %v1703_v4 = vshrl.u32 %v6971_v59, %v1702_v41  ;;  %v1715_v57 = vor.u32 %v1714_v35, %v1713_v62  ;;  %v1593_v15 = vadd.s32 1, %v3683_v27 }
 0x2e3   :  { %v3680_v38 = vmin.u32 %v1545_v0, %v5468_v45  ;;  %v5482_v42 = vshrl.u32 %v1436_v48, 30  ;;  %v1718_v2 = vor.u32 %v1717_v40, %v1716_v31  ;;  %vm1719_vm8 = vcmp.lt.s32.totalorder %v1700_v29, 1 }
 0x2e4   :  { %vm1722_vm10 = vcmp.lt.s32.totalorder %v1700_v29, 4  ;;  %vm1720_vm1 = vcmp.lt.s32.totalorder %v1700_v29, 2  ;;  %v1727_v17 = vsel %vm1719_vm8, %v1706_v3, %v1709_v50  ;;  %vm1721_vm3 = vcmp.lt.s32.totalorder %v1700_v29, 3 }
 0x2e5   :  { %v1547_v24 = vclz %v3680_v38  ;;  %v1724_v10 = vsel %vm1722_vm10, %v1712_v14, 2102212464  ;;  %v1438_v54 = vshll.u32 %v5482_v42, 30  ;;  %v1728_v8 = vsel %vm1722_vm10, %v1715_v57, 920167782 }
 0x2e6   :  { %v1731_v21 = vsel %vm1719_vm8, %v1709_v50, %v1712_v14  ;;  %v1723_v56 = vsel %vm1719_vm8, %v1703_v4, %v1706_v3  ;;  %v1729_v34 = vsel %vm1721_vm3, %v1712_v14, %v1728_v8  ;;  %v1732_v11 = vsel %vm1722_vm10, %v1718_v2, 1326507024 }
 0x2e7   :  { %v3681_v61 = vadd.s32 4294967294, %v1547_v24  ;;  %v5485_v39 = vsub.s32 %v1435_v16, %v1438_v54  ;;  %v1725_v27 = vsel %vm1721_vm3, %v1709_v50, %v1724_v10  ;;  %v1730_v41 = vsel %vm1720_vm1, %v1727_v17, %v1729_v34 }
 0x2e8   :  { %v1733_v26 = vsel %vm1721_vm3, %v1715_v57, %v1732_v11  ;;  %v5490_v47 = vmul.u32.u64.low %v5458_v25, %v1730_v41  ;;  %v5491_v5 = vmul.u32.u64.high %v5458_v25, %v1730_v41, %v5490_v47  ;;  %v1726_v3 = vsel %vm1720_vm1, %v1723_v56, %v1725_v27 }
 0x2e9   :  { %vm3682_vm11 = vcmp.lt.s32.totalorder %v3681_v61, 0  ;;  %v1734_v19 = vsel %vm1720_vm1, %v1731_v21, %v1733_v26  ;;  %v1441_v22 = vsub.s32 0, %v5485_v39  ;;  %vm1594_vm4 = vcmp.gt.s32.totalorder %v1593_v15, 0 }
 0x2ea   :  { %v1550_v23 = vsel %vm3682_vm11, 0, %v3681_v61  ;;  %v5496_v30 = vmul.u32.u64.low %v5458_v25, %v1734_v19  ;;  %v5497_v62 = vmul.u32.u64.high %v5458_v25, %v1734_v19, %v5496_v30  ;;  %v1590_v31 = vand.u32 8388607, %v6952_v60 }
 0x2eb   :  { %v1551_v16 = vsub.s32 32, %v1550_v23  ;;  %v1555_v0 = vsub.s32 4294967266, %v1550_v23  ;;  %v3676_v35 = vmin.u32 %v1441_v22, %v5485_v39  ;;  %v1595_v48 = vsel %vm1594_vm4, %v1593_v15, 0 }
 0x2ec   :  { %v5505_v50 = vadd.f32 %v5356_v49, %v5335_v18  ;;  %v1552_v14 = vshll.u32 %v5468_v45, %v1550_v23  ;;  %v1745_v4 = vadd.s32 1, %v5491_v5  ;;  %v1742_v57 = vmul.u32 %v5458_v25, %v1726_v3 }
 0x2ed   :  { %v1553_v40 = vshrl.u32 %v5454_v55, %v1551_v16  ;;  %v1556_v38 = vadd.s32 127, %v1555_v0  ;;  %v1443_v29 = vclz %v3676_v35  ;;  %vm1744_vm14 = vc.u32 %v5497_v62, %v5490_v47 }
 0x2ee   :  { %v1597_v2 = vand.u32 31, %v1595_v48  ;;  %v1746_v10 = vsel %vm1744_vm14, %v1745_v4, %v5491_v5  ;;  %v1591_v8 = vor.u32 8388608, %v1590_v31  ;;  %v1898_v55 = vand.u32 2139095040, %v5505_v50 }
 0x2ef   :  { %v1554_v24 = vor.u32 %v1553_v40, %v1552_v14  ;;  %v1557_v15 = vshll.u32 %v1556_v38, 23  ;;  %v3677_v49 = vadd.s32 4294967294, %v1443_v29  ;;  %v1747_v17 = vadd.s32 %v1746_v10, %v1742_v57 }
 0x2f0   :  { %v1598_v54 = vsub.s32 32, %v1597_v2  ;;  %v1431_v21 = vadd.s32 %v5440_v37, %v5448_v6  ;;  %v5517_v61 = vshrl.u32 %v1595_v48, 5  ;;  %vm1481_vm2 = vcmp.lt.s32.totalorder %v5338_v44, 0 }
 0x2f1   :  { %v1558_v45 = vor.u32 4788187, %v1557_v15  ;;  %vm3678_vm0 = vcmp.lt.s32.totalorder %v3677_v49, 0  ;;  %v1748_v25 = vadd.s32 536870912, %v1747_v17  ;;  %v1561_v34 = vcvt.s32.f32 %v1554_v24 }
 0x2f2   :  { %v1446_v11 = vsel %vm3678_vm0, 0, %v3677_v49  ;;  %v1601_v27 = vshrl.u32 %v6966_v28, %v1598_v54  ;;  %v1604_v5 = vshrl.u32 %v6967_v12, %v1598_v54  ;;  %v1600_v23 = vshll.u32 %v6971_v59, %v1597_v2 }
 0x2f3   :  { %v1559_v56 = vand.u32 2147483647, %v1558_v45  ;;  %v1447_v41 = vsub.s32 32, %v1446_v11  ;;  %v1451_v26 = vsub.s32 4294967266, %v1446_v11  ;;  %v5520_v19 = vshrl.u32 %v1748_v25, 30 }
 0x2f4   :  { %v1603_v37 = vshll.u32 %v6966_v28, %v1597_v2  ;;  %v1606_v6 = vshll.u32 %v6967_v12, %v1597_v2  ;;  %v1607_v22 = vshrl.u32 %v6974_v32, %v1598_v54  ;;  %v1609_v35 = vshll.u32 %v6974_v32, %v1597_v2 }
 0x2f5   :  { %v1562_v30 = vmul.f32 %v1561_v34, %v1559_v56  ;;  %v1449_v16 = vshrl.u32 %v1431_v21, %v1447_v41  ;;  %v1452_v0 = vadd.s32 127, %v1451_v26  ;;  %v1750_v3 = vshll.u32 %v5520_v19, 30 }
 0x2f6   :  { %v1610_v31 = vshrl.u32 %v6975_v7, %v1598_v54  ;;  %v1612_v48 = vshll.u32 %v6975_v7, %v1597_v2  ;;  %v1613_v14 = vshrl.u32 %v6969_v1, %v1598_v54  ;;  %v1602_v38 = vor.u32 %v1601_v27, %v1600_v23 }
 0x2f7   :  { %v5533_v40 = vsub.s32 %v1747_v17, %v1750_v3  ;;  %v1605_v4 = vor.u32 %v1604_v5, %v1603_v37  ;;  %v6948_v29 = vand.u32 2147483647, %v5505_v50  ;;  %v1448_v57 = vshll.u32 %v5485_v39, %v1446_v11 }
 0x2f8   :  { %v1608_v24 = vor.u32 %v1607_v22, %v1606_v6  ;;  %v1611_v15 = vor.u32 %v1610_v31, %v1609_v35  ;;  %v1614_v10 = vor.u32 %v1613_v14, %v1612_v48  ;;  %v1563_v49 = vxor.u32 2147483648, %v1562_v30 }
 0x2f9   :  { %v1753_v45 = vsub.s32 0, %v5533_v40  ;;  %v1631_v21 = vshll.u32 %v1591_v8, 8  ;;  %v1899_v25 = vshrl.u32 %v1898_v55, 23  ;;  %v1450_v56 = vor.u32 %v1449_v16, %v1448_v57 }
 0x2fa   :  { %v1453_v2 = vshll.u32 %v1452_v0, 23  ;;  %v1599_v34 = vshrl.u32 %v6971_v59, %v1598_v54  ;;  %vm1615_vm5 = vcmp.lt.s32.totalorder %v5517_v61, 1  ;;  %vm1617_vm13 = vcmp.lt.s32.totalorder %v5517_v61, 3 }
 0x2fb   :  { %v3688_v17 = vmin.u32 %v1753_v45, %v5533_v40  ;;  %vm1618_vm15 = vcmp.lt.s32.totalorder %v5517_v61, 4  ;;  %v1623_v39 = vsel %vm1615_vm5, %v1602_v38, %v1605_v4  ;;  %v1627_v8 = vsel %vm1615_vm5, %v1605_v4, %v1608_v24 }
 0x2fc   :  { %v1620_v11 = vsel %vm1618_vm15, %v1608_v24, 2102212464  ;;  %v1624_v27 = vsel %vm1618_vm15, %v1611_v15, 920167782  ;;  %v1628_v55 = vsel %vm1618_vm15, %v1614_v10, 1326507024  ;;  %v1564_v54 = vsel %vm1481_vm2, %v1563_v49, %v1562_v30 }
 0x2fd   :  { %v1755_v41 = vclz %v3688_v17  ;;  %vm1616_vm6 = vcmp.lt.s32.totalorder %v5517_v61, 2  ;;  %v1625_v26 = vsel %vm1617_vm13, %v1608_v24, %v1624_v27  ;;  %v1454_v5 = vor.u32 4788187, %v1453_v2 }
 0x2fe   :  { %v1626_v23 = vsel %vm1616_vm6, %v1623_v39, %v1625_v26  ;;  %v1629_v37 = vsel %vm1617_vm13, %v1611_v15, %v1628_v55  ;;  %v3695_v6 = vadd.s32 4294967169, %v1899_v25  ;;  %v1619_v16 = vsel %vm1615_vm5, %v1599_v34, %v1602_v38 }
 0x2ff   :  { %v3689_v22 = vadd.s32 4294967294, %v1755_v41  ;;  %v1621_v30 = vsel %vm1617_vm13, %v1605_v4, %v1620_v11  ;;  %v1630_v0 = vsel %vm1616_vm6, %v1627_v8, %v1629_v37  ;;  %vm5571_vm7 = vcmp.le.f32.partialorder %v1479_v33, 0.7853982 }
 0x300   :  { %v5562_v3 = vmul.u32.u64.low %v1631_v21, %v1630_v0  ;;  %v5563_v35 = vmul.u32.u64.high %v1631_v21, %v1630_v0, %v5562_v3  ;;  %v5565_v31 = vmul.u32.u64.low %v1631_v21, %v1626_v23  ;;  %v5566_v48 = vmul.u32.u64.high %v1631_v21, %v1626_v23, %v5565_v31 }
 0x301   :  { %vm3690_vm12 = vcmp.lt.s32.totalorder %v3689_v22, 0  ;;  %v1905_v38 = vadd.s32 1, %v3695_v6  ;;  %v1455_v57 = vand.u32 2147483647, %v1454_v5  ;;  %v1622_v24 = vsel %vm1616_vm6, %v1619_v16, %v1621_v30 }
 0x302   :  { %v5575_v4 = vsel %vm3690_vm12, 0, %v3689_v22  ;;  %v1902_v15 = vand.u32 8388607, %v6948_v29  ;;  %v5584_v10 = vsel %vm5571_vm7, %v5338_v44, %v1564_v54  ;;  %v1457_v33 = vcvt.s32.f32 %v1450_v56 }
 0x303   :  { %vm1906_vm9 = vcmp.gt.s32.totalorder %v1905_v38, 0  ;;  %v1763_v49 = vsub.s32 4294967266, %v5575_v4  ;;  %vm1640_vm8 = vc.u32 %v5563_v35, %v5565_v31  ;;  %v1641_v45 = vadd.s32 1, %v5566_v48 }
 0x304   :  { %v1907_v25 = vsel %vm1906_vm9, %v1905_v38, 0  ;;  %v1743_v61 = vadd.s32 %v5490_v47, %v5497_v62  ;;  %v1638_v2 = vmul.u32 %v1631_v21, %v1622_v24  ;;  %4165 = vcosq.f32 %v5584_v10 }
 0x305   :  { %v1909_v34 = vand.u32 31, %v1907_v25  ;;  %v5593_v17 = vmul.f32 %v1457_v33, %v1455_v57  ;;  %v1642_v56 = vsel %vm1640_vm8, %v1641_v45, %v5566_v48  ;;  %v1903_v39 = vor.u32 8388608, %v1902_v15 }
 0x306   :  { %v1643_v11 = vadd.s32 %v1642_v56, %v1638_v2  ;;  %v5598_v8 = vadd.f32 %v5335_v18, %v5358_v51  ;;  %v5602_v55 = vadd.f32 %v5369_v52, %v5335_v18  ;;  %v1759_v47 = vsub.s32 32, %v5575_v4 }
 0x307   :  { %v1910_v27 = vsub.s32 32, %v1909_v34  ;;  %v1764_v62 = vadd.s32 127, %v1763_v49  ;;  %v1908_v21 = vshrl.u32 %v1907_v25, 5  ;;  %v1912_v54 = vshll.u32 %v6971_v59, %v1909_v34 }
 0x308   :  { %v1644_v41 = vadd.s32 536870912, %v1643_v11  ;;  %v1915_v26 = vshll.u32 %v6966_v28, %v1909_v34  ;;  %v1918_v5 = vshll.u32 %v6967_v12, %v1909_v34  ;;  %v1921_v23 = vshll.u32 %v6974_v32, %v1909_v34 }
 0x309   :  { %v1913_v51 = vshrl.u32 %v6966_v28, %v1910_v27  ;;  %v1916_v37 = vshrl.u32 %v6967_v12, %v1910_v27  ;;  %v1919_v52 = vshrl.u32 %v6974_v32, %v1910_v27  ;;  %v1922_v6 = vshrl.u32 %v6975_v7, %v1910_v27 }
 0x30a   :  { %v1760_v22 = vshll.u32 %v5533_v40, %v5575_v4  ;;  %v5615_v16 = vshrl.u32 %v1644_v41, 30  ;;  %v1924_v30 = vshll.u32 %v6975_v7, %v1909_v34  ;;  %v1925_v0 = vshrl.u32 %v6969_v1, %v1910_v27 }
 0x30b   :  { %v1914_v3 = vor.u32 %v1913_v51, %v1912_v54  ;;  %v1917_v48 = vor.u32 %v1916_v37, %v1915_v26  ;;  %v1920_v38 = vor.u32 %v1919_v52, %v1918_v5  ;;  %v1923_v57 = vor.u32 %v1922_v6, %v1921_v23 }
 0x30c   :  { %v1761_v24 = vshrl.u32 %v1743_v61, %v1759_v47  ;;  %v1646_v15 = vshll.u32 %v5615_v16, 30  ;;  %v1926_v33 = vor.u32 %v1925_v0, %v1924_v30  ;;  %v1943_v49 = vshll.u32 %v1903_v39, 8 }
 0x30d   :  { %v1765_v45 = vshll.u32 %v1764_v62, 23  ;;  %vm1927_vm10 = vcmp.lt.s32.totalorder %v1908_v21, 1  ;;  %vm1930_vm1 = vcmp.lt.s32.totalorder %v1908_v21, 4  ;;  %v6949_v40 = vand.u32 2147483647, %v5598_v8 }
 0x30e   :  { %v5621_v4 = vsub.s32 %v1643_v11, %v1646_v15  ;;  %v1911_v25 = vshrl.u32 %v6971_v59, %v1910_v27  ;;  %v1932_v2 = vsel %vm1930_vm1, %v1920_v38, 2102212464  ;;  %v1935_v34 = vsel %vm1927_vm10, %v1914_v3, %v1917_v48  ;;  %v5624_v56 = vpop.eup %4165 }
 0x30f   :  { %vm1929_vm3 = vcmp.lt.s32.totalorder %v1908_v21, 3  ;;  %v1936_v54 = vsel %vm1930_vm1, %v1923_v57, 920167782  ;;  %v1939_v61 = vsel %vm1927_vm10, %v1917_v48, %v1920_v38  ;;  %v1940_v47 = vsel %vm1930_vm1, %v1926_v33, 1326507024 }
 0x310   :  { %v1649_v41 = vsub.s32 0, %v5621_v4  ;;  %vm1928_vm11 = vcmp.lt.s32.totalorder %v1908_v21, 2  ;;  %v1931_v39 = vsel %vm1927_vm10, %v1911_v25, %v1914_v3  ;;  %v1937_v62 = vsel %vm1929_vm3, %v1920_v38, %v1936_v54 }
 0x311   :  { %v1933_v26 = vsel %vm1929_vm3, %v1917_v48, %v1932_v2  ;;  %v1938_v5 = vsel %vm1928_vm11, %v1935_v34, %v1937_v62  ;;  %v1941_v23 = vsel %vm1929_vm3, %v1923_v57, %v1940_v47  ;;  %v1794_v11 = vand.u32 2139095040, %v5598_v8 }
 0x312   :  { %vm1377_vm4 = vcmp.lt.s32.totalorder %v5341_v63, 0  ;;  %v3684_v27 = vmin.u32 %v1649_v41, %v5621_v4  ;;  %v1942_v51 = vsel %vm1928_vm11, %v1939_v61, %v1941_v23  ;;  %v1766_v6 = vor.u32 4788187, %v1765_v45 }
 0x313   :  { %v5630_v37 = vmul.u32.u64.low %v1943_v49, %v1938_v5  ;;  %v5631_v52 = vmul.u32.u64.high %v1943_v49, %v1938_v5, %v5630_v37  ;;  %v5634_v30 = vmul.u32.u64.low %v1943_v49, %v1942_v51  ;;  %v5635_v0 = vmul.u32.u64.high %v1943_v49, %v1942_v51, %v5634_v30 }
 0x314   :  { %v1795_v21 = vshrl.u32 %v1794_v11, 23  ;;  %v1651_v3 = vclz %v3684_v27  ;;  %v1934_v48 = vsel %vm1928_vm11, %v1931_v39, %v1933_v26  ;;  %v1798_v38 = vand.u32 8388607, %v6949_v40 }
 0x315   :  { %v2106_v57 = vand.u32 2139095040, %v5602_v55  ;;  %4167 = vsinq.f32 %v5584_v10  ;;  %v1459_v15 = vxor.u32 2147483648, %v5593_v17  ;;  %v1762_v33 = vor.u32 %v1761_v24, %v1760_v22 }
 0x316   :  { %v3691_v25 = vadd.s32 4294967169, %v1795_v21  ;;  %v3685_v2 = vadd.s32 4294967294, %v1651_v3  ;;  %v1953_v45 = vadd.s32 1, %v5631_v52  ;;  %v5645_v54 = vadd.f32 %v5335_v18, %v5373_v58 }
 0x317   :  { %v2107_v34 = vshrl.u32 %v2106_v57, 23  ;;  %v1767_v61 = vand.u32 2147483647, %v1766_v6  ;;  %v1950_v47 = vmul.u32 %v1943_v49, %v1934_v48  ;;  %vm1952_vm14 = vc.u32 %v5635_v0, %v5630_v37 }
 0x318   :  { %v1801_v41 = vadd.s32 1, %v3691_v25  ;;  %vm3686_vm0 = vcmp.lt.s32.totalorder %v3685_v2, 0  ;;  %v1954_v10 = vsel %vm1952_vm14, %v1953_v45, %v5631_v52  ;;  %v1799_v39 = vor.u32 8388608, %v1798_v38 }
 0x319   :  { %v6947_v22 = vand.u32 2147483647, %v5602_v55  ;;  %v1769_v24 = vcvt.s32.f32 %v1762_v33  ;;  %v1654_v62 = vsel %vm3686_vm0, 0, %v3685_v2  ;;  %v1955_v26 = vadd.s32 %v1954_v10, %v1950_v47 }
 0x31a   :  { %vm1802_vm5 = vcmp.gt.s32.totalorder %v1801_v41, 0  ;;  %v1655_v5 = vsub.s32 32, %v1654_v62  ;;  %v1659_v23 = vsub.s32 4294967266, %v1654_v62  ;;  %v3703_v58 = vadd.s32 4294967169, %v2107_v34 }
 0x31b   :  { %v1803_v18 = vsel %vm1802_vm5, %v1801_v41, 0  ;;  %v5654_v49 = vsel %vm1377_vm4, %v1459_v15, %v5593_v17  ;;  %v1639_v11 = vadd.s32 %v5565_v31, %v5563_v35  ;;  %v1956_v27 = vadd.s32 536870912, %v1955_v26 }
 0x31c   :  { %v1805_v51 = vand.u32 31, %v1803_v18  ;;  %v5658_v52 = vmul.f32 %v1769_v24, %v1767_v61  ;;  %v5660_v6 = vshll.u32 %v1799_v39, 8  ;;  %v5664_v30 = vand.u32 8388607, %v6947_v22 }
 0x31d   :  { %v2002_v21 = vand.u32 2139095040, %v5645_v54  ;;  %v1656_v3 = vshll.u32 %v5621_v4, %v1654_v62  ;;  %v1660_v48 = vadd.s32 127, %v1659_v23  ;;  %v5668_v17 = vshrl.u32 %v1956_v27, 30 }
 0x31e   :  { %v1806_v38 = vsub.s32 32, %v1805_v51  ;;  %v1657_v57 = vshrl.u32 %v1639_v11, %v1655_v5  ;;  %v1804_v35 = vshrl.u32 %v1803_v18, 5  ;;  %v1808_v31 = vshll.u32 %v6971_v59, %v1805_v51 }
 0x31f   :  { %v2113_v15 = vadd.s32 1, %v3703_v58  ;;  %v5671_v33 = vpop.eup %4167  ;;  %v1958_v25 = vshll.u32 %v5668_v17, 30  ;;  %v1811_v45 = vshll.u32 %v6966_v28, %v1805_v51  ;;  %v1814_v4 = vshll.u32 %v6967_v12, %v1805_v51 }
 0x320   :  { %v1809_v2 = vshrl.u32 %v6966_v28, %v1806_v38  ;;  %v1812_v34 = vshrl.u32 %v6967_v12, %v1806_v38  ;;  %v1815_v61 = vshrl.u32 %v6974_v32, %v1806_v38  ;;  %v1817_v47 = vshll.u32 %v6974_v32, %v1805_v51 }
 0x321   :  { %v1818_v41 = vshrl.u32 %v6975_v7, %v1806_v38  ;;  %v1661_v10 = vshll.u32 %v1660_v48, 23  ;;  %v5681_v39 = vsub.s32 %v1955_v26, %v1958_v25  ;;  %v1820_v18 = vshll.u32 %v6975_v7, %v1805_v51 }
 0x322   :  { %v1810_v24 = vor.u32 %v1809_v2, %v1808_v31  ;;  %v1813_v62 = vor.u32 %v1812_v34, %v1811_v45  ;;  %v1816_v5 = vor.u32 %v1815_v61, %v1814_v4  ;;  %v1821_v58 = vshrl.u32 %v6969_v1, %v1806_v38 }
 0x323   :  { %v1819_v23 = vor.u32 %v1818_v41, %v1817_v47  ;;  %v1658_v11 = vor.u32 %v1657_v57, %v1656_v3  ;;  %v1961_v27 = vsub.s32 0, %v5681_v39  ;;  %v1807_v22 = vshrl.u32 %v6971_v59, %v1806_v38 }
 0x324   :  { %v2003_v29 = vshrl.u32 %v2002_v21, 23  ;;  %v1822_v40 = vor.u32 %v1821_v58, %v1820_v18  ;;  %vm1823_vm13 = vcmp.lt.s32.totalorder %v1804_v35, 1  ;;  %vm1825_vm15 = vcmp.lt.s32.totalorder %v1804_v35, 3 }
 0x325   :  { %vm1826_vm6 = vcmp.lt.s32.totalorder %v1804_v35, 4  ;;  %v3696_v26 = vmin.u32 %v1961_v27, %v5681_v39  ;;  %v1831_v31 = vsel %vm1823_vm13, %v1810_v24, %v1813_v62  ;;  %v1662_v2 = vor.u32 4788187, %v1661_v10 }
 0x326   :  { %v1828_v48 = vsel %vm1826_vm6, %v1816_v5, 2102212464  ;;  %v1832_v25 = vsel %vm1826_vm6, %v1819_v23, 920167782  ;;  %vm1824_vm12 = vcmp.lt.s32.totalorder %v1804_v35, 2  ;;  %v1835_v45 = vsel %vm1823_vm13, %v1813_v62, %v1816_v5 }
 0x327   :  { %v1833_v51 = vsel %vm1825_vm15, %v1816_v5, %v1832_v25  ;;  %v1963_v34 = vclz %v3696_v26  ;;  %v1827_v3 = vsel %vm1823_vm13, %v1807_v22, %v1810_v24  ;;  %v1836_v4 = vsel %vm1826_vm6, %v1822_v40, 1326507024 }
 0x328   :  { %v1834_v57 = vsel %vm1824_vm12, %v1831_v31, %v1833_v51  ;;  %v1829_v38 = vsel %vm1825_vm15, %v1813_v62, %v1828_v48  ;;  %v1837_v21 = vsel %vm1825_vm15, %v1819_v23, %v1836_v4  ;;  %v2111_v10 = vor.u32 8388608, %v5664_v30 }
 0x329   :  { %v5690_v61 = vmul.u32.u64.low %v5660_v6, %v1834_v57  ;;  %v5691_v47 = vmul.u32.u64.high %v5660_v6, %v1834_v57, %v5690_v61  ;;  %v3697_v41 = vadd.s32 4294967294, %v1963_v34  ;;  %v1838_v18 = vsel %vm1824_vm12, %v1835_v45, %v1837_v21 }
 0x32a   :  { %vm2114_vm9 = vcmp.gt.s32.totalorder %v2113_v15, 0  ;;  %v1663_v58 = vand.u32 2147483647, %v1662_v2  ;;  %v5697_v5 = vmul.u32.u64.low %v5660_v6, %v1838_v18  ;;  %v5698_v22 = vmul.u32.u64.high %v5660_v6, %v1838_v18, %v5697_v5 }
 0x32b   :  { %v2115_v24 = vsel %vm2114_vm9, %v2113_v15, 0  ;;  %vm3698_vm8 = vcmp.lt.s32.totalorder %v3697_v41, 0  ;;  %v1830_v40 = vsel %vm1824_vm12, %v1827_v3, %v1829_v38  ;;  %v3699_v23 = vadd.s32 4294967169, %v2003_v29 }
 0x32c   :  { %v2117_v62 = vand.u32 31, %v2115_v24  ;;  %v1771_v27 = vxor.u32 2147483648, %v5658_v52  ;;  %v1665_v26 = vcvt.s32.f32 %v1658_v11  ;;  %v1966_v48 = vsel %vm3698_vm8, 0, %v3697_v41 }
 0x32d   :  { %v1849_v31 = vadd.s32 1, %v5691_v47  ;;  %v1951_v30 = vadd.s32 %v5630_v37, %v5635_v0  ;;  %v1971_v25 = vsub.s32 4294967266, %v1966_v48  ;;  %v6950_v51 = vand.u32 2147483647, %v5645_v54 }
 0x32e   :  { %v2118_v2 = vsub.s32 32, %v2117_v62  ;;  %v5706_v45 = vmul.f32 %v1665_v26, %v1663_v58  ;;  %v1846_v35 = vmul.u32 %v5660_v6, %v1830_v40  ;;  %vm1848_vm10 = vc.u32 %v5698_v22, %v5690_v61 }
 0x32f   :  { %v5711_v29 = vshll.u32 %v2111_v10, 8  ;;  %v1967_v15 = vsub.s32 32, %v1966_v48  ;;  %v1850_v11 = vsel %vm1848_vm10, %v1849_v31, %v5691_v47  ;;  %v2116_v34 = vshrl.u32 %v2115_v24, 5 }
 0x330   :  { %v2009_v3 = vadd.s32 1, %v3699_v23  ;;  %v1851_v57 = vadd.s32 %v1850_v11, %v1846_v35  ;;  %v2120_v37 = vshll.u32 %v6971_v59, %v2117_v62  ;;  %v2121_v0 = vshrl.u32 %v6966_v28, %v2118_v2 }
 0x331   :  { %v2124_v4 = vshrl.u32 %v6967_v12, %v2118_v2  ;;  %v1972_v38 = vadd.s32 127, %v1971_v25  ;;  %v2123_v6 = vshll.u32 %v6966_v28, %v2117_v62  ;;  %v2126_v21 = vshll.u32 %v6967_v12, %v2117_v62 }
 0x332   :  { %v2127_v41 = vshrl.u32 %v6974_v32, %v2118_v2  ;;  %v1968_v18 = vshll.u32 %v5681_v39, %v1966_v48  ;;  %v1852_v10 = vadd.s32 536870912, %v1851_v57  ;;  %v2129_v47 = vshll.u32 %v6974_v32, %v2117_v62 }
 0x333   :  { %v2130_v58 = vshrl.u32 %v6975_v7, %v2118_v2  ;;  %v1969_v5 = vshrl.u32 %v1951_v30, %v1967_v15  ;;  %v2122_v24 = vor.u32 %v2121_v0, %v2120_v37  ;;  %v2125_v40 = vor.u32 %v2124_v4, %v2123_v6 }
 0x334   :  { %v2128_v23 = vor.u32 %v2127_v41, %v2126_v21  ;;  %vm1689_vm1 = vcmp.lt.s32.totalorder %v5350_v9, 0  ;;  %v5724_v26 = vshrl.u32 %v1852_v10, 30  ;;  %v2132_v25 = vshll.u32 %v6975_v7, %v2117_v62 }
 0x335   :  { %v2131_v31 = vor.u32 %v2130_v58, %v2129_v47  ;;  %v2133_v35 = vshrl.u32 %v6969_v1, %v2118_v2  ;;  %v1973_v11 = vshll.u32 %v1972_v38, 23  ;;  %v2119_v39 = vshrl.u32 %v6971_v59, %v2118_v2 }
 0x336   :  { %vm2135_vm3 = vcmp.lt.s32.totalorder %v2116_v34, 1  ;;  %vm2138_vm11 = vcmp.lt.s32.totalorder %v2116_v34, 4  ;;  %v1854_v48 = vshll.u32 %v5724_v26, 30  ;;  %vm2136_vm14 = vcmp.lt.s32.totalorder %v2116_v34, 2 }
 0x337   :  { %v2134_v30 = vor.u32 %v2133_v35, %v2132_v25  ;;  %v2140_v15 = vsel %vm2138_vm11, %v2128_v23, 2102212464  ;;  %vm2137_vm0 = vcmp.lt.s32.totalorder %v2116_v34, 3  ;;  %v2139_v37 = vsel %vm2135_vm3, %v2119_v39, %v2122_v24  ;;  %v5759_v34 = vld [vmem:[%s6900_s3 + $0x1] ss:$0 sm:$0xff] }
 0x338   :  { %v2143_v0 = vsel %vm2135_vm3, %v2122_v24, %v2125_v40  ;;  %v2144_v4 = vsel %vm2138_vm11, %v2131_v31, 920167782  ;;  %v5730_v6 = vsub.s32 %v1851_v57, %v1854_v48  ;;  %v2141_v21 = vsel %vm2137_vm0, %v2125_v40, %v2140_v15 }
 0x339   :  { %v2145_v62 = vsel %vm2137_vm0, %v2128_v23, %v2144_v4  ;;  %v2147_v41 = vsel %vm2135_vm3, %v2125_v40, %v2128_v23  ;;  %v1970_v10 = vor.u32 %v1969_v5, %v1968_v18  ;;  %v2148_v2 = vsel %vm2138_vm11, %v2134_v30, 1326507024 }
 0x33a   :  { %v2146_v38 = vsel %vm2136_vm14, %v2143_v0, %v2145_v62  ;;  %v2006_v47 = vand.u32 8388607, %v6950_v51  ;;  %v1857_v58 = vsub.s32 0, %v5730_v6  ;;  %v2149_v25 = vsel %vm2137_vm0, %v2131_v31, %v2148_v2 }
 0x33b   :  { %v5737_v35 = vmul.u32.u64.low %v5711_v29, %v2146_v38  ;;  %v5738_v39 = vmul.u32.u64.high %v5711_v29, %v2146_v38, %v5737_v35  ;;  %v1974_v57 = vor.u32 4788187, %v1973_v11  ;;  %v2142_v24 = vsel %vm2136_vm14, %v2139_v37, %v2141_v21 }
 0x33c   :  { %v2150_v40 = vsel %vm2136_vm14, %v2147_v41, %v2149_v25  ;;  %vm2010_vm5 = vcmp.gt.s32.totalorder %v2009_v3, 0  ;;  %v3692_v18 = vmin.u32 %v1857_v58, %v5730_v6  ;;  %v5753_v31 = vsel %vm1689_vm1, %v1771_v27, %v5658_v52 }
 0x33d   :  { %v5745_v5 = vmul.u32.u64.low %v5711_v29, %v2150_v40  ;;  %v5746_v23 = vmul.u32.u64.high %v5711_v29, %v2150_v40, %v5745_v5  ;;  %v2011_v48 = vsel %vm2010_vm5, %v2009_v3, 0  ;;  %v5763_v15 = vadd.f32 %v5759_v34, %v5386_v13 }
 0x33e   :  { %v2013_v30 = vand.u32 31, %v2011_v48  ;;  %v1977_v3 = vcvt.s32.f32 %v1970_v10  ;;  %v1847_v37 = vadd.s32 %v5690_v61, %v5698_v22  ;;  %v1859_v0 = vclz %v3692_v18 }
 0x33f   :  { %7026 = vst [vmem:[#allocation12_spill] sm:$0xff] %v5763_v15  ;;  %v2161_v52 = vadd.s32 1, %v5738_v39  ;;  %v1975_v27 = vand.u32 2147483647, %v1974_v57  ;;  %v2158_v4 = vmul.u32 %v5711_v29, %v2142_v24  ;;  %v2007_v21 = vor.u32 8388608, %v2006_v47 }
 0x340   :  { %v2014_v62 = vsub.s32 32, %v2013_v30  ;;  %v3693_v41 = vadd.s32 4294967294, %v1859_v0  ;;  %vm2160_vm13 = vc.u32 %v5746_v23, %v5737_v35  ;;  %v2012_v38 = vshrl.u32 %v2011_v48, 5 }
 0x341   :  { %v2016_v13 = vshll.u32 %v6971_v59, %v2013_v30  ;;  %v2162_v10 = vsel %vm2160_vm13, %v2161_v52, %v5738_v39  ;;  %v2019_v61 = vshll.u32 %v6966_v28, %v2013_v30  ;;  %v2022_v24 = vshll.u32 %v6967_v12, %v2013_v30 }
 0x342   :  { %v2017_v2 = vshrl.u32 %v6966_v28, %v2014_v62  ;;  %v2020_v22 = vshrl.u32 %v6967_v12, %v2014_v62  ;;  %vm3694_vm15 = vcmp.lt.s32.totalorder %v3693_v41, 0  ;;  %v2163_v58 = vadd.s32 %v2162_v10, %v2158_v4 }
 0x343   :  { %v2023_v29 = vshrl.u32 %v6974_v32, %v2014_v62  ;;  %v2026_v47 = vshrl.u32 %v6975_v7, %v2014_v62  ;;  %v1862_v25 = vsel %vm3694_vm15, 0, %v3693_v41  ;;  %v2025_v40 = vshll.u32 %v6974_v32, %v2013_v30 }
 0x344   :  { %v2018_v57 = vor.u32 %v2017_v2, %v2016_v13  ;;  %v1863_v18 = vsub.s32 32, %v1862_v25  ;;  %v1867_v39 = vsub.s32 4294967266, %v1862_v25  ;;  %v2164_v5 = vadd.s32 536870912, %v2163_v58  ;;  %v2417_v13 = vld [vmem:[#allocation2 + $0x88] sm:$0xff] }
 0x345   :  { %v2021_v48 = vor.u32 %v2020_v22, %v2019_v61  ;;  %v2024_v0 = vor.u32 %v2023_v29, %v2022_v24  ;;  %v2027_v52 = vor.u32 %v2026_v47, %v2025_v40  ;;  %v2028_v51 = vshll.u32 %v6975_v7, %v2013_v30 }
 0x346   :  { %v2029_v4 = vshrl.u32 %v6969_v1, %v2014_v62  ;;  %v5782_v10 = vmul.f32 %v1977_v3, %v1975_v27  ;;  %v5784_v43 = vshrl.u32 %v2164_v5, 30  ;;  %v5786_v41 = vshll.u32 %v2007_v21, 8 }
 0x347   :  { %v1868_v2 = vadd.s32 127, %v1867_v39  ;;  %v2015_v60 = vshrl.u32 %v6971_v59, %v2014_v62  ;;  %v2314_v61 = vand.u32 2139095040, %v5763_v15  ;;  %v1865_v22 = vshrl.u32 %v1847_v37, %v1863_v18 }
 0x348   :  { %7027 = vst [vmem:[#allocation8_spill] sm:$0xff] %v5784_v43  ;;  %v2030_v11 = vor.u32 %v2029_v4, %v2028_v51  ;;  %v2166_v29 = vshll.u32 %v5784_v43, 30  ;;  %vm2031_vm6 = vcmp.lt.s32.totalorder %v2012_v38, 1  ;;  %vm2034_vm12 = vcmp.lt.s32.totalorder %v2012_v38, 4 }
 0x349   :  { %vm2032_vm9 = vcmp.lt.s32.totalorder %v2012_v38, 2  ;;  %v2036_v30 = vsel %vm2034_vm12, %v2024_v0, 2102212464  ;;  %v2039_v3 = vsel %vm2031_vm6, %v2018_v57, %v2021_v48  ;;  %v2040_v27 = vsel %vm2034_vm12, %v2027_v52, 920167782 }
 0x34a   :  { %v5792_v47 = vsub.s32 %v2163_v58, %v2166_v29  ;;  %vm2033_vm8 = vcmp.lt.s32.totalorder %v2012_v38, 3  ;;  %v2035_v21 = vsel %vm2031_vm6, %v2015_v60, %v2018_v57  ;;  %v2043_v24 = vsel %vm2031_vm6, %v2021_v48, %v2024_v0  ;;  %v2418_v57 = vld [vmem:[#allocation2 + $0x90] sm:$0xff] }
 0x34b   :  { %v1869_v40 = vshll.u32 %v1868_v2, 23  ;;  %v2041_v39 = vsel %vm2033_vm8, %v2024_v0, %v2040_v27  ;;  %v2044_v62 = vsel %vm2034_vm12, %v2030_v11, 1326507024  ;;  %v2315_v51 = vshrl.u32 %v2314_v61, 23  ;;  %v2419_v0 = vld [vmem:[#allocation2 + $0x98] sm:$0xff] }
 0x34c   :  { %v2169_v5 = vsub.s32 0, %v5792_v47  ;;  %v2037_v37 = vsel %vm2033_vm8, %v2021_v48, %v2036_v30  ;;  %v2042_v18 = vsel %vm2032_vm9, %v2039_v3, %v2041_v39  ;;  %v2045_v4 = vsel %vm2033_vm8, %v2027_v52, %v2044_v62 }
 0x34d   :  { %v2046_v43 = vsel %vm2032_vm9, %v2043_v24, %v2045_v4  ;;  %v5798_v58 = vmul.u32.u64.low %v5786_v41, %v2042_v18  ;;  %v5799_v29 = vmul.u32.u64.high %v5786_v41, %v2042_v18, %v5798_v58  ;;  %v3711_v60 = vadd.s32 4294967169, %v2315_v51 }
 0x34e   :  { %v1864_v11 = vshll.u32 %v5730_v6, %v1862_v25  ;;  %v3704_v2 = vmin.u32 %v2169_v5, %v5792_v47  ;;  %v5805_v48 = vmul.u32.u64.low %v5786_v41, %v2046_v43  ;;  %v5806_v61 = vmul.u32.u64.high %v5786_v41, %v2046_v43, %v5805_v48  ;;  %v2420_v6 = vld [vmem:[#allocation2 + $0xa0] sm:$0xff]  ;;  %v2421_v25 = vld [vmem:[#allocation2 + $0xa8] sm:$0xff] }
 0x34f   :  { %v2038_v52 = vsel %vm2032_vm9, %v2035_v21, %v2037_v37  ;;  %v7028_v30 = vand.u32 2147483647, %v5763_v15  ;;  %v2321_v27 = vadd.s32 1, %v3711_v60  ;;  %v3963_v24 = vpack.c.bf16 %v2417_v13, %v2416_v46 }
 0x350   :  { %v5811_v39 = vor.u32 %v1865_v22, %v1864_v11  ;;  %v5813_v62 = vor.u32 4788187, %v1869_v40  ;;  %v2171_v51 = vclz %v3704_v2  ;;  %v3967_v18 = vpack.c.bf16 %v2419_v0, %v2418_v57  ;;  %v2422_v57 = vld [vmem:[#allocation2 + $0xb0] sm:$0xff]  ;;  %v2423_v0 = vld [vmem:[#allocation2 + $0xb8] sm:$0xff] }
 0x351   :  { %v2318_v3 = vand.u32 8388607, %v7028_v30  ;;  %v2057_v5 = vadd.s32 1, %v5799_v29  ;;  %vm2322_vm10 = vcmp.gt.s32.totalorder %v2321_v27, 0  ;;  %v5818_v43 = vadd.f32 %v5759_v34, %v5422_v53  ;;  %3964 = vmatprep.subr.bf16.mxu0 %v3963_v24 }
 0x352   :  { %v3705_v46 = vadd.s32 4294967294, %v2171_v51  ;;  %v2054_v13 = vmul.u32 %v5786_v41, %v2038_v52  ;;  %vm2056_vm3 = vc.u32 %v5806_v61, %v5798_v58  ;;  %3966 = vmatpush3.bf16.msra.mxu0 %v3963_v24  ;;  %v2159_v22 = vadd.s32 %v5737_v35, %v5746_v23 }
 0x353   :  { %v2319_v4 = vor.u32 8388608, %v2318_v3  ;;  %v2058_v21 = vsel %vm2056_vm3, %v2057_v5, %v5799_v29  ;;  %v2323_v40 = vsel %vm2322_vm10, %v2321_v27, 0  ;;  %3968 = vmatprep.subr.bf16.mxu0 %v3967_v18  ;;  %v3971_v37 = vpack.c.bf16 %v2421_v25, %v2420_v6 }
 0x354   :  { %vm3706_vm11 = vcmp.lt.s32.totalorder %v3705_v46, 0  ;;  %v2059_v34 = vadd.s32 %v2058_v21, %v2054_v13  ;;  %v2325_v60 = vand.u32 31, %v2323_v40  ;;  %v2324_v52 = vshrl.u32 %v2323_v40, 5 }
 0x355   :  { %v2174_v11 = vsel %vm3706_vm11, 0, %v3705_v46  ;;  %v5829_v2 = vshll.u32 %v2319_v4, 8  ;;  %v3975_v24 = vpack.c.bf16 %v2423_v0, %v2422_v57  ;;  %vm1897_vm8 = vcmp.lt.s32.totalorder %v5505_v50, 0 }
 0x356   :  { %v2175_v35 = vsub.s32 32, %v2174_v11  ;;  %v2179_v23 = vsub.s32 4294967266, %v2174_v11  ;;  %v2060_v29 = vadd.s32 536870912, %v2059_v34  ;;  %3970 = vmatpush3.bf16.msra.mxu0 %v3967_v18  ;;  %v2176_v30 = vshll.u32 %v5792_v47, %v2174_v11 }
 0x357   :  { %v2326_v3 = vsub.s32 32, %v2325_v60  ;;  %v2328_v27 = vshll.u32 %v6971_v59, %v2325_v60  ;;  %3972 = vmatprep.subr.bf16.mxu0 %v3971_v37  ;;  %v2331_v5 = vshll.u32 %v6966_v28, %v2325_v60  ;;  %v2334_v13 = vshll.u32 %v6967_v12, %v2325_v60 }
 0x358   :  { %v2177_v51 = vshrl.u32 %v2159_v22, %v2175_v35  ;;  %v2180_v6 = vadd.s32 127, %v2179_v23  ;;  %v5834_v25 = vshrl.u32 %v2060_v29, 30  ;;  %v2337_v40 = vshll.u32 %v6974_v32, %v2325_v60 }
 0x359   :  { %v2329_v4 = vshrl.u32 %v6966_v28, %v2326_v3  ;;  %v2332_v46 = vshrl.u32 %v6967_v12, %v2326_v3  ;;  %v2335_v18 = vshrl.u32 %v6974_v32, %v2326_v3  ;;  %v2338_v22 = vshrl.u32 %v6975_v7, %v2326_v3 }
 0x35a   :  { %7029 = vst [vmem:[#allocation9_spill] sm:$0xff] %v5834_v25  ;;  %v2181_v47 = vshll.u32 %v2180_v6, 23  ;;  %v2062_v21 = vshll.u32 %v5834_v25, 30  ;;  %3974 = vmatpush3.bf16.msra.mxu0 %v3971_v37  ;;  %v2210_v35 = vand.u32 2139095040, %v5818_v43  ;;  %v2178_v23 = vor.u32 %v2177_v51, %v2176_v30 }
 0x35b   :  { %v2330_v57 = vor.u32 %v2329_v4, %v2328_v27  ;;  %v2333_v0 = vor.u32 %v2332_v46, %v2331_v5  ;;  %v2336_v11 = vor.u32 %v2335_v18, %v2334_v13  ;;  %3976 = vmatprep.subr.bf16.mxu0 %v3975_v24  ;;  %v2327_v38 = vshrl.u32 %v6971_v59, %v2326_v3 }
 0x35c   :  { %v5845_v29 = vsub.s32 %v2059_v34, %v2062_v21  ;;  %v2339_v53 = vor.u32 %v2338_v22, %v2337_v40  ;;  %v2182_v6 = vor.u32 4788187, %v2181_v47  ;;  %v2340_v41 = vshll.u32 %v6975_v7, %v2325_v60  ;;  %v2424_v40 = vld [vmem:[#allocation2 + $0xc0] sm:$0xff]  ;;  %v2425_v22 = vld [vmem:[#allocation2 + $0xc8] sm:$0xff] }
 0x35d   :  { %v2341_v48 = vshrl.u32 %v6969_v1, %v2326_v3  ;;  %vm2343_vm14 = vcmp.lt.s32.totalorder %v2324_v52, 1  ;;  %vm2345_vm0 = vcmp.lt.s32.totalorder %v2324_v52, 3  ;;  %vm2346_vm5 = vcmp.lt.s32.totalorder %v2324_v52, 4 }
 0x35e   :  { %v2065_v37 = vsub.s32 0, %v5845_v29  ;;  %v2347_v27 = vsel %vm2343_vm14, %v2327_v38, %v2330_v57  ;;  %3978 = vmatpush3.bf16.msra.mxu0 %v3975_v24  ;;  %v2348_v4 = vsel %vm2346_vm5, %v2336_v11, 2102212464  ;;  %v2351_v30 = vsel %vm2343_vm14, %v2330_v57, %v2333_v0  ;;  %v2426_v57 = vld [vmem:[#allocation2 + $0xd0] sm:$0xff] }
 0x35f   :  { %v2342_v5 = vor.u32 %v2341_v48, %v2340_v41  ;;  %v2352_v34 = vsel %vm2346_vm5, %v2339_v53, 920167782  ;;  %vm2344_vm13 = vcmp.lt.s32.totalorder %v2324_v52, 2  ;;  %v2349_v46 = vsel %vm2345_vm0, %v2333_v0, %v2348_v4 }
 0x360   :  { %v3700_v51 = vmin.u32 %v2065_v37, %v5845_v29  ;;  %v2353_v60 = vsel %vm2345_vm0, %v2336_v11, %v2352_v34  ;;  %v2355_v3 = vsel %vm2343_vm14, %v2333_v0, %v2336_v11  ;;  %v7030_v47 = vand.u32 2147483647, %v5818_v43  ;;  %v2427_v37 = vld [vmem:[#allocation2 + $0xd8] sm:$0xff] }
 0x361   :  { %v2354_v13 = vsel %vm2344_vm13, %v2351_v30, %v2353_v60  ;;  %v2356_v18 = vsel %vm2346_vm5, %v2342_v5, 1326507024  ;;  %v2183_v38 = vand.u32 2147483647, %v2182_v6  ;;  %v2350_v41 = vsel %vm2344_vm13, %v2347_v27, %v2349_v46  ;;  %v2428_v60 = vld [vmem:[#allocation2 + $0xe0] sm:$0xff] }
 0x362   :  { %v2214_v21 = vand.u32 8388607, %v7030_v47  ;;  %v2067_v24 = vclz %v3700_v51  ;;  %v2357_v48 = vsel %vm2345_vm0, %v2339_v53, %v2356_v18  ;;  %v2211_v0 = vshrl.u32 %v2210_v35, 23 }
 0x363   :  { %v2358_v15 = vsel %vm2344_vm13, %v2355_v3, %v2357_v48  ;;  %v5858_v4 = vmul.u32.u64.low %v5829_v2, %v2354_v13  ;;  %v5859_v25 = vmul.u32.u64.high %v5829_v2, %v2354_v13, %v5858_v4  ;;  %v2185_v11 = vcvt.s32.f32 %v2178_v23  ;;  %v2429_v13 = vld [vmem:[#allocation2 + $0xe8] sm:$0xff] }
 0x364   :  { %v3701_v5 = vadd.s32 4294967294, %v2067_v24  ;;  %v5863_v30 = vmul.u32.u64.low %v5829_v2, %v2358_v15  ;;  %v5864_v34 = vmul.u32.u64.high %v5829_v2, %v2358_v15, %v5863_v30  ;;  %v7031_v6 = vand.u32 2147483647, %v5813_v62 }
 0x365   :  { %v7032_v53 = vcvt.s32.f32 %v5811_v39  ;;  %v3707_v27 = vadd.s32 4294967169, %v2211_v0  ;;  %v3979_v51 = vpack.c.bf16 %v2425_v22, %v2424_v40  ;;  %v3983_v46 = vpack.c.bf16 %v2427_v37, %v2426_v57 }
 0x366   :  { %v5872_v3 = vmul.f32 %v2185_v11, %v2183_v38  ;;  %v2055_v35 = vadd.s32 %v5798_v58, %v5806_v61  ;;  %vm3702_vm15 = vcmp.lt.s32.totalorder %v3701_v5, 0  ;;  %v2366_v15 = vmul.u32 %v5829_v2, %v2350_v41  ;;  %v2430_v61 = vld [vmem:[#allocation2 + $0xf0] sm:$0xff]  ;;  %v2431_v2 = vld [vmem:[#allocation2 + $0xf8] sm:$0xff] }
 0x367   :  { %v5870_v52 = vmul.f32 %v7032_v53, %v7031_v6  ;;  %v2070_v23 = vsel %vm3702_vm15, 0, %v3701_v5  ;;  %v2369_v62 = vadd.s32 1, %v5859_v25  ;;  %v2215_v18 = vor.u32 8388608, %v2214_v21  ;;  %3980 = vmatprep.subr.bf16.mxu0 %v3979_v51 }
 0x368   :  { %v2217_v39 = vadd.s32 1, %v3707_v27  ;;  %v2071_v47 = vsub.s32 32, %v2070_v23  ;;  %v2075_v24 = vsub.s32 4294967266, %v2070_v23  ;;  %3982 = vmatpush3.bf16.msra.mxu0 %v3979_v51  ;;  %v3987_v40 = vpack.c.bf16 %v2429_v13, %v2428_v60 }
 0x369   :  { %v7033_v48 = vand.u32 2147483647, %v5341_v63  ;;  %v2072_v58 = vshll.u32 %v5845_v29, %v2070_v23  ;;  %vm2368_vm12 = vc.u32 %v5864_v34, %v5858_v4  ;;  %3984 = vmatprep.subr.bf16.mxu0 %v3983_v46  ;;  %v1461_v21 = vsub.s32 4, %v5482_v42 }
 0x36a   :  { %vm2218_vm9 = vcmp.gt.s32.totalorder %v2217_v39, 0  ;;  %v2073_v41 = vshrl.u32 %v2055_v35, %v2071_v47  ;;  %v2076_v22 = vadd.s32 127, %v2075_v24  ;;  %v2370_v57 = vsel %vm2368_vm12, %v2369_v62, %v5859_v25 }
 0x36b   :  { %vm5880_vm6 = vcmp.le.f32.partialorder %v7033_v48, 0.7853982  ;;  %v2219_v37 = vsel %vm2218_vm9, %v2217_v39, 0  ;;  %v2371_v0 = vadd.s32 %v2370_v57, %v2366_v15  ;;  %v5892_v29 = vsel %vm1377_vm4, %v1461_v21, %v5482_v42 }
 0x36c   :  { %v2221_v11 = vand.u32 31, %v2219_v37  ;;  %v1463_v5 = vsel %vm5880_vm6, %v5341_v63, %v5654_v49  ;;  %v2077_v30 = vshll.u32 %v2076_v22, 23  ;;  %v2220_v6 = vshrl.u32 %v2219_v37, 5  ;;  %3986 = vmatpush3.bf16.msra.mxu0 %v3983_v46 }
 0x36d   :  { %v5898_v53 = vshll.u32 %v2215_v18, 8  ;;  %v3991_v27 = vpack.c.bf16 %v2431_v2, %v2430_v61  ;;  %v2074_v25 = vor.u32 %v2073_v41, %v2072_v58  ;;  %v2372_v51 = vadd.s32 536870912, %v2371_v0  ;;  %3988 = vmatprep.subr.bf16.mxu0 %v3987_v40 }
 0x36e   :  { %v2222_v60 = vsub.s32 32, %v2221_v11  ;;  %v1464_v42 = vsel %vm5880_vm6, 0, %v5892_v29  ;;  %v2078_v13 = vor.u32 4788187, %v2077_v30  ;;  %v2224_v35 = vshll.u32 %v6971_v59, %v2221_v11 }
 0x36f   :  { %v2227_v15 = vshll.u32 %v6966_v28, %v2221_v11  ;;  %4169 = vcosq.f32 %v1463_v5  ;;  %v5905_v49 = vshrl.u32 %v2372_v51, 30  ;;  %v2230_v62 = vshll.u32 %v6967_v12, %v2221_v11 }
 0x370   :  { %v2225_v23 = vshrl.u32 %v6966_v28, %v2222_v60  ;;  %v2228_v46 = vshrl.u32 %v6967_v12, %v2222_v60  ;;  %v2231_v18 = vshrl.u32 %v6974_v32, %v2222_v60  ;;  %v2233_v39 = vshll.u32 %v6974_v32, %v2221_v11  ;;  %3990 = vmatpush3.bf16.msra.mxu0 %v3987_v40 }
 0x371   :  { %v2234_v47 = vshrl.u32 %v6975_v7, %v2222_v60  ;;  %v2236_v24 = vshll.u32 %v6975_v7, %v2221_v11  ;;  %vm1585_vm4 = vcmp.lt.s32.totalorder %v5365_v20, 0  ;;  %v2374_v48 = vshll.u32 %v5905_v49, 30  ;;  %3992 = vmatprep.subr.bf16.mxu0 %v3991_v27 }
 0x372   :  { %v2226_v38 = vor.u32 %v2225_v23, %v2224_v35  ;;  %v2229_v58 = vor.u32 %v2228_v46, %v2227_v15  ;;  %v2237_v61 = vshrl.u32 %v6969_v1, %v2222_v60  ;;  %v2081_v2 = vcvt.s32.f32 %v2074_v25 }
 0x373   :  { %v2223_v21 = vshrl.u32 %v6971_v59, %v2222_v60  ;;  %v2232_v41 = vor.u32 %v2231_v18, %v2230_v62  ;;  %v2235_v22 = vor.u32 %v2234_v47, %v2233_v39  ;;  %v2079_v57 = vand.u32 2147483647, %v2078_v13 }
 0x374   :  { %v5919_v37 = vsub.s32 %v2371_v0, %v2374_v48  ;;  %v2238_v40 = vor.u32 %v2237_v61, %v2236_v24  ;;  %vm2239_vm10 = vcmp.lt.s32.totalorder %v2220_v6, 1  ;;  %vm2241_vm3 = vcmp.lt.s32.totalorder %v2220_v6, 3  ;;  %3994 = vmatpush3.bf16.msra.mxu0 %v3991_v27 }
 0x375   :  { %vm2242_vm11 = vcmp.lt.s32.totalorder %v2220_v6, 4  ;;  %v2243_v11 = vsel %vm2239_vm10, %v2223_v21, %v2226_v38  ;;  %v2247_v29 = vsel %vm2239_vm10, %v2226_v38, %v2229_v58  ;;  %v2251_v15 = vsel %vm2239_vm10, %v2229_v58, %v2232_v41 }
 0x376   :  { %v2377_v30 = vsub.s32 0, %v5919_v37  ;;  %v2244_v51 = vsel %vm2242_vm11, %v2232_v41, 2102212464  ;;  %v2248_v35 = vsel %vm2242_vm11, %v2235_v22, 920167782  ;;  %vm2240_vm14 = vcmp.lt.s32.totalorder %v2220_v6, 2 }
 0x377   :  { %v2245_v25 = vsel %vm2241_vm3, %v2229_v58, %v2244_v51  ;;  %v2249_v60 = vsel %vm2241_vm3, %v2232_v41, %v2248_v35  ;;  %v2252_v13 = vsel %vm2242_vm11, %v2238_v40, 1326507024  ;;  %v5924_v0 = vmul.f32 %v2081_v2, %v2079_v57 }
 0x378   :  { %v3712_v23 = vmin.u32 %v2377_v30, %v5919_v37  ;;  %v2250_v46 = vsel %vm2240_vm14, %v2247_v29, %v2249_v60  ;;  %v2253_v62 = vsel %vm2241_vm3, %v2235_v22, %v2252_v13  ;;  %v2246_v27 = vsel %vm2240_vm14, %v2243_v11, %v2245_v25 }
 0x379   :  { %v5928_v18 = vpop.eup %4169  ;;  %v2254_v39 = vsel %vm2240_vm14, %v2251_v15, %v2253_v62  ;;  %v5931_v47 = vmul.u32.u64.low %v5898_v53, %v2250_v46  ;;  %v5932_v24 = vmul.u32.u64.high %v5898_v53, %v2250_v46, %v5931_v47  ;;  %4171 = vsinq.f32 %v1463_v5 }
 0x37a   :  { %v2379_v48 = vclz %v3712_v23  ;;  %v5936_v38 = vmul.u32.u64.low %v5898_v53, %v2254_v39  ;;  %v5937_v58 = vmul.u32.u64.high %v5898_v53, %v2254_v39, %v5936_v38  ;;  %v7036_v61 = vxor.u32 2147483648, %v5706_v45 }
 0x37b   :  { %v7037_v2 = vxor.u32 2147483648, %v5782_v10  ;;  %v1468_v41 = vadd.s32 3, %v1464_v42  ;;  %v1565_v22 = vsub.s32 4, %v5451_v36  ;;  %v1875_v57 = vxor.u32 2147483648, %v5870_v52 }
 0x37c   :  { %v1668_v6 = vsel %vm1585_vm4, %v7036_v61, %v5706_v45  ;;  %v2187_v5 = vxor.u32 2147483648, %v5872_v3  ;;  %v2367_v40 = vadd.s32 %v5858_v4, %v5864_v34  ;;  %v3713_v11 = vadd.s32 4294967294, %v2379_v48 }
 0x37d   :  { %v5949_v21 = vsel %vm1897_vm8, %v7037_v2, %v5782_v10  ;;  %v2083_v45 = vxor.u32 2147483648, %v5924_v0  ;;  %v2262_v29 = vmul.u32 %v5898_v53, %v2246_v27  ;;  %v2265_v30 = vadd.s32 1, %v5932_v24 }
 0x37e   :  { %v1566_v10 = vsel %vm1481_vm2, %v1565_v22, %v5451_v36  ;;  %vm3714_vm0 = vcmp.lt.s32.totalorder %v3713_v11, 0  ;;  %vm2264_vm5 = vc.u32 %v5937_v58, %v5931_v47  ;;  %v1475_v42 = vxor.u32 2147483648, %v5928_v18 }
 0x37f   :  { %v1568_v4 = vsel %vm5571_vm7, 0, %v1566_v10  ;;  %v2382_v34 = vsel %vm3714_vm0, 0, %v3713_v11  ;;  %v2266_v51 = vsel %vm2264_vm5, %v2265_v30, %v5932_v24  ;;  %v1469_v35 = vand.u32 3, %v1468_v41 }
 0x380   :  { %v1576_v53 = vxor.u32 2147483648, %v5671_v33  ;;  %v2383_v15 = vsub.s32 32, %v2382_v34  ;;  %v2387_v25 = vsub.s32 4294967266, %v2382_v34  ;;  %v2267_v60 = vadd.s32 %v2266_v51, %v2262_v29 }
 0x381   :  { %vm1467_vm2 = vweird.f32 %v5341_v63  ;;  %v7038_v36 = vand.u32 2147483647, %v5365_v20  ;;  %vm1571_vm15 = vweird.f32 %v5338_v44  ;;  %v1572_v14 = vadd.s32 3, %v1568_v4 }
 0x382   :  { %v1579_v23 = vxor.u32 2147483648, %v5624_v56  ;;  %v1669_v46 = vsub.s32 4, %v5615_v16  ;;  %vm1793_vm7 = vcmp.lt.s32.totalorder %v5598_v8, 0  ;;  %vm2105_vm6 = vcmp.lt.s32.totalorder %v5602_v55, 0 }
 0x383   :  { %vm5972_vm13 = vcmp.le.f32.partialorder %v7038_v36, 0.7853982  ;;  %vm2001_vm12 = vcmp.lt.s32.totalorder %v5645_v54, 0  ;;  %v2385_v27 = vshrl.u32 %v2367_v40, %v2383_v15  ;;  %v2388_v39 = vadd.s32 127, %v2387_v25  ;;  %v4172_v2 = vpop.eup %4171 }
 0x384   :  { %v1671_v62 = vsel %vm5972_vm13, %v5365_v20, %v1668_v6  ;;  %v2268_v24 = vadd.s32 536870912, %v2267_v60  ;;  %v2384_v48 = vshll.u32 %v5919_v37, %v2382_v34  ;;  %v1573_v38 = vand.u32 3, %v1572_v14 }
 0x385   :  { %4173 = vcosq.f32 %v1671_v62  ;;  %v1670_v61 = vsel %vm1585_vm4, %v1669_v46, %v5615_v16  ;;  %v2389_v6 = vshll.u32 %v2388_v39, 23  ;;  %vm1474_vm9 = vcmp.eq.s32.totalorder %v1469_v35, 2 }
 0x386   :  { %4175 = vsinq.f32 %v1671_v62  ;;  %v5989_v41 = vshrl.u32 %v2268_v24, 30  ;;  %v1672_v22 = vsel %vm5972_vm13, 0, %v1670_v61  ;;  %vm1470_vm10 = vcmp.lt.s32.totalorder %v1469_v35, 2 }
 0x387   :  { %v1472_v40 = vxor.u32 2147483648, %v4172_v2  ;;  %v1476_v11 = vsel %vm1474_vm9, %v1475_v42, %v4172_v2  ;;  %vm1575_vm3 = vcmp.eq.s32.totalorder %v1573_v38, 0  ;;  %v2386_v29 = vor.u32 %v2385_v27, %v2384_v48 }
 0x388   :  { %v2270_v37 = vshll.u32 %v5989_v41, 30  ;;  %vm1471_vm11 = vcmp.eq.s32.totalorder %v1469_v35, 0  ;;  %v1577_v30 = vsel %vm1575_vm3, %v5624_v56, %v1576_v53  ;;  %vm1574_vm4 = vcmp.lt.s32.totalorder %v1573_v38, 2 }
 0x389   :  { %v1473_v16 = vsel %vm1471_vm11, %v5928_v18, %v1472_v40  ;;  %vm1578_vm14 = vcmp.eq.s32.totalorder %v1573_v38, 2  ;;  %v1676_v10 = vadd.s32 3, %v1672_v22  ;;  %v2390_v4 = vor.u32 4788187, %v2389_v6 }
 0x38a   :  { %v5996_v34 = vsub.s32 %v2267_v60, %v2270_v37  ;;  %v1477_v51 = vsel %vm1470_vm10, %v1473_v16, %v1476_v11  ;;  %v1580_v15 = vsel %vm1578_vm14, %v1579_v23, %v5671_v33  ;;  %v7041_v36 = vand.u32 2147483647, %v5350_v9 }
 0x38b   :  { %v1478_v42 = vsel %vm1467_vm2, nan, %v1477_v51  ;;  %v1581_v25 = vsel %vm1574_vm4, %v1577_v30, %v1580_v15  ;;  %v1773_v56 = vsub.s32 4, %v5520_v19  ;;  %v1677_v60 = vand.u32 3, %v1676_v10 }
 0x38c   :  { %vm6003_vm0 = vcmp.le.f32.partialorder %v7041_v36, 0.7853982  ;;  %v2273_v18 = vsub.s32 0, %v5996_v34  ;;  %3916 = vmatprep.mubr.f32.mxu0 %v1478_v42  ;;  %v1582_v53 = vsel %vm1571_vm15, nan, %v1581_v25  ;;  %v1876_v33 = vsel %vm1793_vm7, %v1875_v57, %v5870_v52 }
 0x38d   :  { %v1775_v63 = vsel %vm6003_vm0, %v5350_v9, %v5753_v31  ;;  %v6025_v13 = vsel %vm2105_vm6, %v2187_v5, %v5872_v3  ;;  %v6032_v44 = vsel %vm2001_vm12, %v2083_v45, %v5924_v0  ;;  %3917 = vmatmul.mubr.f32.vlgmr.msra.gmra.mrb[10].mxu0 %v1582_v53  ;;  %v1774_v31 = vsel %vm1689_vm1, %v1773_v56, %v5520_v19 }
 0x38e   :  { %v2393_v57 = vcvt.s32.f32 %v2386_v29  ;;  %v3708_v14 = vmin.u32 %v2273_v18, %v5996_v34  ;;  %v1776_v3 = vsel %vm6003_vm0, 0, %v1774_v31  ;;  %4177 = vcosq.f32 %v1775_v63 }
 0x38f   :  { %v4174_v52 = vpop.eup %4173  ;;  %v2391_v23 = vand.u32 2147483647, %v2390_v4  ;;  %4179 = vsinq.f32 %v1775_v63  ;;  %v1780_v62 = vadd.s32 3, %v1776_v3  ;;  %vm1682_vm5 = vcmp.eq.s32.totalorder %v1677_v60, 2 }
 0x390   :  { %v4176_v5 = vpop.eup %4175  ;;  %v1683_v46 = vxor.u32 2147483648, %v4174_v52  ;;  %v2275_v0 = vclz %v3708_v14  ;;  %v7044_v27 = vand.u32 2147483647, %v5598_v8  ;;  %vm1679_vm1 = vcmp.eq.s32.totalorder %v1677_v60, 0 }
 0x391   :  { %v1680_v45 = vxor.u32 2147483648, %v4176_v5  ;;  %v1877_v24 = vsub.s32 4, %v5724_v26  ;;  %vm1678_vm13 = vcmp.lt.s32.totalorder %v1677_v60, 2  ;;  %v6050_v2 = vmul.f32 %v2393_v57, %v2391_v23  ;;  %v7050_v60 = vld [vmem:[#allocation9_spill] sm:$0xff]  ;;  %v7051_v57 = vld [vmem:[#allocation12_spill] sm:$0xff] }
 0x392   :  { %vm6042_vm2 = vcmp.le.f32.partialorder %v7044_v27, 0.7853982  ;;  %v1684_v39 = vsel %vm1682_vm5, %v1683_v46, %v4176_v5  ;;  %v3709_v38 = vadd.s32 4294967294, %v2275_v0  ;;  %vm1675_vm15 = vweird.f32 %v5365_v20 }
 0x393   :  { %v1879_v48 = vsel %vm6042_vm2, %v5598_v8, %v1876_v33  ;;  %v1681_v61 = vsel %vm1679_vm1, %v4174_v52, %v1680_v45  ;;  %v1781_v22 = vand.u32 3, %v1780_v62  ;;  %v1878_v11 = vsel %vm1793_vm7, %v1877_v24, %v5724_v26 }
 0x394   :  { %4181 = vcosq.f32 %v1879_v48  ;;  %v1685_v6 = vsel %vm1678_vm13, %v1681_v61, %v1684_v39  ;;  %vm3710_vm9 = vcmp.lt.s32.totalorder %v3709_v38, 0  ;;  %v2263_v29 = vadd.s32 %v5931_v47, %v5937_v58 }
 0x395   :  { %v1686_v40 = vsel %vm1675_vm15, nan, %v1685_v6  ;;  %4183 = vsinq.f32 %v1879_v48  ;;  %v2278_v37 = vsel %vm3710_vm9, 0, %v3709_v38  ;;  %v1880_v30 = vsel %vm6042_vm2, 0, %v1878_v11 }
 0x396   :  { %3919 = vmatprep.mubr.f32.mxu0 %v1686_v40  ;;  %v1981_v16 = vsub.s32 4, %v5668_v17  ;;  %v2279_v20 = vsub.s32 32, %v2278_v37  ;;  %v2283_v10 = vsub.s32 4294967266, %v2278_v37  ;;  %v1884_v4 = vadd.s32 3, %v1880_v30 }
 0x397   :  { %v7047_v51 = vand.u32 2147483647, %v5505_v50  ;;  %v2395_v26 = vxor.u32 2147483648, %v6050_v2  ;;  %vm1779_vm7 = vweird.f32 %v5350_v9  ;;  %v2280_v25 = vshll.u32 %v5996_v34, %v2278_v37  ;;  %v7058_v9 = vld [vmem:[#allocation8_spill] sm:$0xff] }
 0x398   :  { %v1982_v47 = vsel %vm1897_vm8, %v1981_v16, %v5668_v17  ;;  %v4178_v42 = vpop.eup %4177  ;;  %v2281_v36 = vshrl.u32 %v2263_v29, %v2279_v20  ;;  %v2284_v35 = vadd.s32 127, %v2283_v10  ;;  %vm1786_vm3 = vcmp.eq.s32.totalorder %v1781_v22, 2 }
 0x399   :  { %vm6063_vm10 = vcmp.le.f32.partialorder %v7047_v51, 0.7853982  ;;  %v4180_v56 = vpop.eup %4179  ;;  %v1787_v18 = vxor.u32 2147483648, %v4178_v42  ;;  %v2085_v63 = vsub.s32 4, %v7050_v60  ;;  %v1885_v52 = vand.u32 3, %v1884_v4 }
 0x39a   :  { %v1983_v58 = vsel %vm6063_vm10, %v5505_v50, %v5949_v21  ;;  %v1984_v53 = vsel %vm6063_vm10, 0, %v1982_v47  ;;  %v2282_v17 = vor.u32 %v2281_v36, %v2280_v25  ;;  %v2285_v33 = vshll.u32 %v2284_v35, 23 }
 0x39b   :  { %4185 = vcosq.f32 %v1983_v58  ;;  %v1784_v31 = vxor.u32 2147483648, %v4180_v56  ;;  %vm2313_vm8 = vcmp.lt.s32.totalorder %v7051_v57, 0  ;;  %vm2209_vm11 = vcmp.lt.s32.totalorder %v5818_v43, 0 }
 0x39c   :  { %vm1782_vm4 = vcmp.lt.s32.totalorder %v1781_v22, 2  ;;  %vm1783_vm14 = vcmp.eq.s32.totalorder %v1781_v22, 0  ;;  %v1788_v21 = vsel %vm1786_vm3, %v1787_v18, %v4180_v56  ;;  %4187 = vsinq.f32 %v1983_v58 }
 0x39d   :  { %v2286_v14 = vor.u32 4788187, %v2285_v33  ;;  %v1785_v3 = vsel %vm1783_vm14, %v4178_v42, %v1784_v31  ;;  %v1988_v5 = vadd.s32 3, %v1984_v53  ;;  %v7052_v23 = vand.u32 2147483647, %v5645_v54 }
 0x39e   :  { %v4182_v34 = vpop.eup %4181  ;;  %v1789_v62 = vsel %vm1782_vm4, %v1785_v3, %v1788_v21  ;;  %v2086_v45 = vsel %vm2001_vm12, %v2085_v63, %v7050_v60  ;;  %v2289_v24 = vcvt.s32.f32 %v2282_v17  ;;  %vm1890_vm5 = vcmp.eq.s32.totalorder %v1885_v52, 2 }
 0x39f   :  { %vm6084_vm0 = vcmp.le.f32.partialorder %v7052_v23, 0.7853982  ;;  %v1891_v0 = vxor.u32 2147483648, %v4182_v34  ;;  %v4184_v19 = vpop.eup %4183  ;;  %v2287_v39 = vand.u32 2147483647, %v2286_v14  ;;  %v1790_v48 = vsel %vm1779_vm7, nan, %v1789_v62 }
 0x3a0   :  { %v2087_v27 = vsel %vm6084_vm0, %v5645_v54, %v6032_v44  ;;  %3920 = vmatmul.mubr.f32.gmra.mrb[12].mxu0 %v1790_v48  ;;  %vm1886_vm2 = vcmp.lt.s32.totalorder %v1885_v52, 2  ;;  %vm1887_vm1 = vcmp.eq.s32.totalorder %v1885_v52, 0  ;;  %v1888_v38 = vxor.u32 2147483648, %v4184_v19 }
 0x3a1   :  { %v1892_v61 = vsel %vm1890_vm5, %v1891_v0, %v4184_v19  ;;  %v2290_v6 = vmul.f32 %v2289_v24, %v2287_v39  ;;  %v1989_v22 = vand.u32 3, %v1988_v5  ;;  %v2088_v40 = vsel %vm6084_vm0, 0, %v2086_v45 }
 0x3a2   :  { %4189 = vcosq.f32 %v2087_v27  ;;  %v1889_v11 = vsel %vm1887_vm1, %v4182_v34, %v1888_v38  ;;  %v7055_v44 = vand.u32 2147483647, %v5602_v55  ;;  %v2189_v37 = vsub.s32 4, %v7058_v9 }
 0x3a3   :  { %4191 = vsinq.f32 %v2087_v27  ;;  %v2291_v30 = vxor.u32 2147483648, %v2290_v6  ;;  %vm1883_vm13 = vweird.f32 %v5598_v8  ;;  %v1893_v16 = vsel %vm1886_vm2, %v1889_v11, %v1892_v61 }
 0x3a4   :  { %vm6101_vm12 = vcmp.le.f32.partialorder %v7055_v44, 0.7853982  ;;  %v1894_v4 = vsel %vm1883_vm13, nan, %v1893_v16  ;;  %v2092_v51 = vadd.s32 3, %v2088_v40  ;;  %v2190_v15 = vsel %vm2105_vm6, %v2189_v37, %v7058_v9 }
 0x3a5   :  { %v2191_v20 = vsel %vm6101_vm12, %v5602_v55, %v6025_v13  ;;  %v4186_v10 = vpop.eup %4185  ;;  %v2396_v47 = vsel %vm2313_vm8, %v2395_v26, %v6050_v2  ;;  %v2292_v8 = vsel %vm2209_vm11, %v2291_v30, %v2290_v6  ;;  %3922 = vmatprep.mubr.f32.mxu0 %v1894_v4  ;;  %vm1987_vm15 = vweird.f32 %v5505_v50 }
 0x3a6   :  { %4193 = vcosq.f32 %v2191_v20  ;;  %v1995_v58 = vxor.u32 2147483648, %v4186_v10  ;;  %v4188_v13 = vpop.eup %4187  ;;  %vm1991_vm9 = vcmp.eq.s32.totalorder %v1989_v22, 0  ;;  %vm1994_vm10 = vcmp.eq.s32.totalorder %v1989_v22, 2 }
 0x3a7   :  { %v2192_v42 = vsel %vm6101_vm12, 0, %v2190_v15  ;;  %4195 = vsinq.f32 %v2191_v20  ;;  %v1992_v25 = vxor.u32 2147483648, %v4188_v13  ;;  %v7059_v35 = vand.u32 2147483647, %v5818_v43 }
 0x3a8   :  { %v1996_v36 = vsel %vm1994_vm10, %v1995_v58, %v4188_v13  ;;  %v2293_v26 = vsub.s32 4, %v5989_v41  ;;  %v2093_v56 = vand.u32 3, %v2092_v51  ;;  %v2196_v18 = vadd.s32 3, %v2192_v42 }
 0x3a9   :  { %vm6124_vm6 = vcmp.le.f32.partialorder %v7059_v35, 0.7853982  ;;  %v2397_v60 = vsub.s32 4, %v5905_v49  ;;  %vm1990_vm7 = vcmp.lt.s32.totalorder %v1989_v22, 2  ;;  %v1993_v63 = vsel %vm1991_vm9, %v4186_v10, %v1992_v25  ;;  %v6161_v25 = vld [vmem:[%s6900_s3 + $0x2] ss:$0 sm:$0xff] }
 0x3aa   :  { %v2295_v53 = vsel %vm6124_vm6, %v5818_v43, %v2292_v8  ;;  %v2294_v17 = vsel %vm2209_vm11, %v2293_v26, %v5989_v41  ;;  %v1997_v33 = vsel %vm1990_vm7, %v1993_v63, %v1996_v36  ;;  %v7062_v14 = vand.u32 2147483647, %v7051_v57 }
 0x3ab   :  { %4197 = vcosq.f32 %v2295_v53  ;;  %v2296_v31 = vsel %vm6124_vm6, 0, %v2294_v17  ;;  %v2398_v52 = vsel %vm2313_vm8, %v2397_v60, %v5905_v49  ;;  %v1998_v34 = vsel %vm1987_vm15, nan, %v1997_v33 }
 0x3ac   :  { %4199 = vsinq.f32 %v2295_v53  ;;  %v4190_v21 = vpop.eup %4189  ;;  %vm6145_vm3 = vcmp.le.f32.partialorder %v7062_v14, 0.7853982  ;;  %3923 = vmatmul.mubr.f32.gmra.mrb[14].mxu0 %v1998_v34  ;;  %vm2098_vm11 = vcmp.eq.s32.totalorder %v2093_v56, 2  ;;  %v2197_v23 = vand.u32 3, %v2196_v18 }
 0x3ad   :  { %v4192_v41 = vpop.eup %4191  ;;  %v2099_v5 = vxor.u32 2147483648, %v4190_v21  ;;  %v2399_v46 = vsel %vm6145_vm3, %v7051_v57, %v2396_v47  ;;  %v2300_v62 = vadd.s32 3, %v2296_v31  ;;  %v2400_v50 = vsel %vm6145_vm3, 0, %v2398_v52 }
 0x3ae   :  { %v2096_v49 = vxor.u32 2147483648, %v4192_v41  ;;  %4201 = vcosq.f32 %v2399_v46  ;;  %vm2095_vm8 = vcmp.eq.s32.totalorder %v2093_v56, 0  ;;  %vm2094_vm4 = vcmp.lt.s32.totalorder %v2093_v56, 2 }
 0x3af   :  { %v2100_v45 = vsel %vm2098_vm11, %v2099_v5, %v4192_v41  ;;  %4203 = vsinq.f32 %v2399_v46  ;;  %vm2091_vm14 = vweird.f32 %v5645_v54  ;;  %vm2202_vm0 = vcmp.eq.s32.totalorder %v2197_v23, 2 }
 0x3b0   :  { %v4194_v0 = vpop.eup %4193  ;;  %v2097_v27 = vsel %vm2095_vm8, %v4190_v21, %v2096_v49  ;;  %v2404_v48 = vadd.s32 3, %v2400_v50  ;;  %v2301_v22 = vand.u32 3, %v2300_v62  ;;  %vm2199_vm5 = vcmp.eq.s32.totalorder %v2197_v23, 0 }
 0x3b1   :  { %v2203_v19 = vxor.u32 2147483648, %v4194_v0  ;;  %v4196_v39 = vpop.eup %4195  ;;  %v2101_v24 = vsel %vm2094_vm4, %v2097_v27, %v2100_v45  ;;  %vm2198_vm2 = vcmp.lt.s32.totalorder %v2197_v23, 2  ;;  %vm2195_vm1 = vweird.f32 %v5602_v55 }
 0x3b2   :  { %v2102_v38 = vsel %vm2091_vm14, nan, %v2101_v24  ;;  %v2200_v61 = vxor.u32 2147483648, %v4196_v39  ;;  %vm2306_vm12 = vcmp.eq.s32.totalorder %v2301_v22, 2  ;;  %v2405_v54 = vand.u32 3, %v2404_v48 }
 0x3b3   :  { %v2204_v6 = vsel %vm2202_vm0, %v2203_v19, %v4196_v39  ;;  %3925 = vmatprep.mubr.f32.mxu0 %v2102_v38  ;;  %vm2303_vm13 = vcmp.eq.s32.totalorder %v2301_v22, 0  ;;  %vm2302_vm15 = vcmp.lt.s32.totalorder %v2301_v22, 2  ;;  %vm2299_vm9 = vweird.f32 %v5818_v43 }
 0x3b4   :  { %v2201_v11 = vsel %vm2199_vm5, %v4194_v0, %v2200_v61  ;;  %vm2410_vm10 = vcmp.eq.s32.totalorder %v2405_v54, 2  ;;  %vm2407_vm6 = vcmp.eq.s32.totalorder %v2405_v54, 0  ;;  %vm2406_vm7 = vcmp.lt.s32.totalorder %v2405_v54, 2 }
 0x3b5   :  { %v4198_v40 = vpop.eup %4197  ;;  %v2205_v29 = vsel %vm2198_vm2, %v2201_v11, %v2204_v6  ;;  %vm2403_vm3 = vweird.f32 %v7051_v57 }
 0x3b6   :  { %v4200_v44 = vpop.eup %4199  ;;  %v2307_v9 = vxor.u32 2147483648, %v4198_v40  ;;  %v2206_v37 = vsel %vm2195_vm1, nan, %v2205_v29 }
 0x3b7   :  { %v2304_v30 = vxor.u32 2147483648, %v4200_v44  ;;  %3926 = vmatmul.mubr.f32.gmra.mrb[16].mxu0 %v2206_v37 }
 0x3b8   :  { %v2308_v16 = vsel %vm2306_vm12, %v2307_v9, %v4200_v44  ;;  %v4202_v20 = vpop.eup %4201 }
 0x3b9   :  { %v2305_v10 = vsel %vm2303_vm13, %v4198_v40, %v2304_v30  ;;  %v4204_v4 = vpop.eup %4203  ;;  %v2411_v15 = vxor.u32 2147483648, %v4202_v20 }
 0x3ba   :  { %v2309_v51 = vsel %vm2302_vm15, %v2305_v10, %v2308_v16  ;;  %v2408_v8 = vxor.u32 2147483648, %v4204_v4 }
 0x3bb   :  { %v2310_v47 = vsel %vm2299_vm9, nan, %v2309_v51  ;;  %v2412_v55 = vsel %vm2410_vm10, %v2411_v15, %v4204_v4 }
 0x3bc   :  { %3928 = vmatprep.mubr.f32.mxu0 %v2310_v47  ;;  %v2409_v58 = vsel %vm2407_vm6, %v4202_v20, %v2408_v8 }
 0x3bd   :  { %v2413_v13 = vsel %vm2406_vm7, %v2409_v58, %v2412_v55 }
 0x3be   :  { %v2414_v42 = vsel %vm2403_vm3, nan, %v2413_v13 }
 0x3bf   :  { %3929 = vmatmul.mubr.f32.gmra.mrb[18].mxu0 %v2414_v42 }
 0x460   :  { %v3918_v43 = vpop.f32.mrb[10].mxu0 }
 0x461   :  { %v6164_v36 = vadd.f32 %v3918_v43, %v6161_v25  ;;  %v2506_v35 = vpop.f32.mrb[11].mxu0 }
 0x462   :  { %v6167_v2 = vadd.f32 %v6161_v25, %v2506_v35 }
 0x463   :  { %v2659_v26 = vand.u32 2147483647, %v6164_v36  ;;  %v2662_v57 = vand.u32 2139095040, %v6164_v36  ;;  %vm2661_vm10 = vcmp.lt.s32.totalorder %v6164_v36, 0 }
 0x464   :  { %v2555_v56 = vand.u32 2147483647, %v6167_v2  ;;  %v2558_v18 = vand.u32 2139095040, %v6167_v2 }
 0x465   :  { %v2663_v53 = vshrl.u32 %v2662_v57, 23  ;;  %v2666_v60 = vand.u32 8388607, %v2659_v26  ;;  %vm6283_vm7 = vcmp.le.f32.partialorder %v2659_v26, 0.7853982 }
 0x466   :  { %v2559_v63 = vshrl.u32 %v2558_v18, 23  ;;  %v2562_v17 = vand.u32 8388607, %v2555_v56 }
 0x467   :  { %v3721_v33 = vadd.s32 4294967169, %v2663_v53  ;;  %v2667_v21 = vor.u32 8388608, %v2666_v60 }
 0x468   :  { %v3717_v31 = vadd.s32 4294967169, %v2559_v63  ;;  %v2563_v34 = vor.u32 8388608, %v2562_v17 }
 0x469   :  { %v2669_v52 = vadd.s32 1, %v3721_v33  ;;  %v6177_v46 = vshll.u32 %v2667_v21, 8 }
 0x46a   :  { %v2565_v14 = vadd.s32 1, %v3717_v31  ;;  %v6179_v49 = vshll.u32 %v2563_v34, 8 }
 0x46b   :  { %vm2670_vm11 = vcmp.gt.s32.totalorder %v2669_v52, 0 }
 0x46c   :  { %v2671_v3 = vsel %vm2670_vm11, %v2669_v52, 0  ;;  %vm2566_vm8 = vcmp.gt.s32.totalorder %v2565_v14, 0  ;;  %vm2557_vm11 = vcmp.lt.s32.totalorder %v6167_v2, 0 }
 0x46d   :  { %v2672_v41 = vshrl.u32 %v2671_v3, 5  ;;  %v2673_v5 = vand.u32 31, %v2671_v3  ;;  %v2567_v23 = vsel %vm2566_vm8, %v2565_v14, 0 }
 0x46e   :  { %v6182_v0 = vshrl.u32 %v2567_v23, 5  ;;  %v2569_v45 = vand.u32 31, %v2567_v23 }
 0x46f   :  { %v2674_v62 = vsub.s32 32, %v2673_v5  ;;  %v2676_v50 = vshll.u32 %v6971_v59, %v2673_v5  ;;  %v2679_v27 = vshll.u32 %v6966_v28, %v2673_v5  ;;  %v2682_v19 = vshll.u32 %v6967_v12, %v2673_v5 }
 0x470   :  { %v2685_v39 = vshll.u32 %v6974_v32, %v2673_v5  ;;  %v2688_v24 = vshll.u32 %v6975_v7, %v2673_v5  ;;  %vm2691_vm4 = vcmp.lt.s32.totalorder %v2672_v41, 1  ;;  %vm2692_vm14 = vcmp.lt.s32.totalorder %v2672_v41, 2 }
 0x471   :  { %v2677_v48 = vshrl.u32 %v6966_v28, %v2674_v62  ;;  %v2680_v38 = vshrl.u32 %v6967_v12, %v2674_v62  ;;  %v2683_v61 = vshrl.u32 %v6974_v32, %v2674_v62  ;;  %v2675_v6 = vshrl.u32 %v6971_v59, %v2674_v62 }
 0x472   :  { %v2686_v22 = vshrl.u32 %v6975_v7, %v2674_v62  ;;  %v2689_v40 = vshrl.u32 %v6969_v1, %v2674_v62  ;;  %v2570_v37 = vsub.s32 32, %v2569_v45  ;;  %vm2693_vm0 = vcmp.lt.s32.totalorder %v2672_v41, 3 }
 0x473   :  { %v6194_v11 = vpop.f32.mrb[12].mxu0  ;;  %v2678_v44 = vor.u32 %v2677_v48, %v2676_v50  ;;  %v2681_v29 = vor.u32 %v2680_v38, %v2679_v27  ;;  %v2684_v9 = vor.u32 %v2683_v61, %v2682_v19  ;;  %vm2694_vm5 = vcmp.lt.s32.totalorder %v2672_v41, 4 }
 0x474   :  { %v6196_v30 = vpop.f32.mrb[13].mxu0  ;;  %v2687_v54 = vor.u32 %v2686_v22, %v2685_v39  ;;  %v2690_v16 = vor.u32 %v2689_v40, %v2688_v24  ;;  %v2572_v55 = vshll.u32 %v6971_v59, %v2569_v45  ;;  %v2573_v42 = vshrl.u32 %v6966_v28, %v2570_v37 }
 0x475   :  { %v2695_v20 = vsel %vm2691_vm4, %v2675_v6, %v2678_v44  ;;  %v2696_v10 = vsel %vm2694_vm5, %v2684_v9, 2102212464  ;;  %v2699_v4 = vsel %vm2691_vm4, %v2678_v44, %v2681_v29  ;;  %v2703_v51 = vsel %vm2691_vm4, %v2681_v29, %v2684_v9 }
 0x476   :  { %v2697_v15 = vsel %vm2693_vm0, %v2681_v29, %v2696_v10  ;;  %v2700_v47 = vsel %vm2694_vm5, %v2687_v54, 920167782  ;;  %v2704_v8 = vsel %vm2694_vm5, %v2690_v16, 1326507024  ;;  %v2575_v43 = vshll.u32 %v6966_v28, %v2569_v45 }
 0x477   :  { %v2701_v58 = vsel %vm2693_vm0, %v2684_v9, %v2700_v47  ;;  %v2705_v13 = vsel %vm2693_vm0, %v2687_v54, %v2704_v8  ;;  %v2698_v35 = vsel %vm2692_vm14, %v2695_v20, %v2697_v15  ;;  %v2576_v53 = vshrl.u32 %v6967_v12, %v2570_v37 }
 0x478   :  { %v2702_v57 = vsel %vm2692_vm14, %v2699_v4, %v2701_v58  ;;  %v2706_v18 = vsel %vm2692_vm14, %v2703_v51, %v2705_v13  ;;  %v2574_v31 = vor.u32 %v2573_v42, %v2572_v55  ;;  %v2578_v21 = vshll.u32 %v6967_v12, %v2569_v45 }
 0x479   :  { %v6209_v60 = vmul.u32.u64.low %v6177_v46, %v2706_v18  ;;  %v6210_v63 = vmul.u32.u64.high %v6177_v46, %v2706_v18, %v6209_v60  ;;  %v6213_v17 = vmul.u32.u64.low %v6177_v46, %v2702_v57  ;;  %v6214_v33 = vmul.u32.u64.high %v6177_v46, %v2702_v57, %v6213_v17 }
 0x47a   :  { %v2577_v52 = vor.u32 %v2576_v53, %v2575_v43  ;;  %v2579_v34 = vshrl.u32 %v6974_v32, %v2570_v37  ;;  %v2571_v14 = vshrl.u32 %v6971_v59, %v2570_v37  ;;  %v2581_v3 = vshll.u32 %v6974_v32, %v2569_v45 }
 0x47b   :  { %v2582_v41 = vshrl.u32 %v6975_v7, %v2570_v37  ;;  %v2585_v5 = vshrl.u32 %v6969_v1, %v2570_v37  ;;  %v2714_v23 = vmul.u32 %v6177_v46, %v2698_v35  ;;  %v2584_v50 = vshll.u32 %v6975_v7, %v2569_v45 }
 0x47c   :  { %v2580_v62 = vor.u32 %v2579_v34, %v2578_v21  ;;  %vm2587_vm2 = vcmp.lt.s32.totalorder %v6182_v0, 1  ;;  %vm2716_vm1 = vc.u32 %v6210_v63, %v6213_v17  ;;  %v2717_v27 = vadd.s32 1, %v6214_v33 }
 0x47d   :  { %v2583_v19 = vor.u32 %v2582_v41, %v2581_v3  ;;  %vm2588_vm12 = vcmp.lt.s32.totalorder %v6182_v0, 2  ;;  %v2586_v39 = vor.u32 %v2585_v5, %v2584_v50  ;;  %vm2589_vm13 = vcmp.lt.s32.totalorder %v6182_v0, 3 }
 0x47e   :  { %vm2590_vm15 = vcmp.lt.s32.totalorder %v6182_v0, 4  ;;  %v2595_v46 = vsel %vm2587_vm2, %v2574_v31, %v2577_v52  ;;  %v2718_v45 = vsel %vm2716_vm1, %v2717_v27, %v6214_v33  ;;  %v2599_v61 = vsel %vm2587_vm2, %v2577_v52, %v2580_v62 }
 0x47f   :  { %v3924_v24 = vpop.f32.mrb[14].mxu0  ;;  %v2592_v48 = vsel %vm2590_vm15, %v2580_v62, 2102212464  ;;  %v2596_v38 = vsel %vm2590_vm15, %v2583_v19, 920167782  ;;  %v2719_v22 = vadd.s32 %v2718_v45, %v2714_v23  ;;  %v2591_v40 = vsel %vm2587_vm2, %v2571_v14, %v2574_v31 }
 0x480   :  { %v6237_v6 = vpop.f32.mrb[15].mxu0  ;;  %v2597_v44 = vsel %vm2589_vm13, %v2580_v62, %v2596_v38  ;;  %v2600_v29 = vsel %vm2590_vm15, %v2586_v39, 1326507024  ;;  %v2593_v9 = vsel %vm2589_vm13, %v2577_v52, %v2592_v48  ;;  %v6245_v16 = vadd.f32 %v6194_v11, %v6161_v25 }
 0x481   :  { %v2598_v37 = vsel %vm2588_vm12, %v2595_v46, %v2597_v44  ;;  %v2601_v54 = vsel %vm2589_vm13, %v2583_v19, %v2600_v29  ;;  %v2720_v20 = vadd.s32 536870912, %v2719_v22  ;;  %v2594_v55 = vsel %vm2588_vm12, %v2591_v40, %v2593_v9 }
 0x482   :  { %v2602_v10 = vsel %vm2588_vm12, %v2599_v61, %v2601_v54  ;;  %v6250_v4 = vmul.u32.u64.low %v6179_v49, %v2598_v37  ;;  %v6251_v51 = vmul.u32.u64.high %v6179_v49, %v2598_v37, %v6250_v4  ;;  %v2870_v58 = vand.u32 2139095040, %v6245_v16 }
 0x483   :  { %v6254_v15 = vmul.u32.u64.low %v6179_v49, %v2602_v10  ;;  %v6255_v47 = vmul.u32.u64.high %v6179_v49, %v2602_v10, %v6254_v15  ;;  %v2721_v8 = vshrl.u32 %v2720_v20, 30  ;;  %v2867_v42 = vand.u32 2147483647, %v6245_v16 }
 0x484   :  { %v2613_v13 = vadd.s32 1, %v6251_v51  ;;  %v2871_v43 = vshrl.u32 %v2870_v58, 23  ;;  %v2610_v35 = vmul.u32 %v6179_v49, %v2594_v55  ;;  %v6269_v31 = vadd.f32 %v6161_v25, %v6196_v30 }
 0x485   :  { %v2722_v11 = vshll.u32 %v2721_v8, 30  ;;  %vm2612_vm9 = vc.u32 %v6255_v47, %v6250_v4  ;;  %v2745_v18 = vsub.s32 4, %v2721_v8  ;;  %v2874_v49 = vand.u32 8388607, %v2867_v42 }
 0x486   :  { %v2614_v53 = vsel %vm2612_vm9, %v2613_v13, %v6251_v51  ;;  %v3729_v60 = vadd.s32 4294967169, %v2871_v43  ;;  %v2766_v30 = vand.u32 2139095040, %v6269_v31  ;;  %v2763_v45 = vand.u32 2147483647, %v6269_v31 }
 0x487   :  { %v2723_v57 = vsub.s32 %v2719_v22, %v2722_v11  ;;  %v2615_v0 = vadd.s32 %v2614_v53, %v2610_v35  ;;  %v2746_v41 = vsel %vm2661_vm10, %v2745_v18, %v2721_v8  ;;  %v2875_v27 = vor.u32 8388608, %v2874_v49 }
 0x488   :  { %v2877_v34 = vadd.s32 1, %v3729_v60  ;;  %v2748_v19 = vsel %vm6283_vm7, 0, %v2746_v41  ;;  %v2715_v48 = vadd.s32 %v6213_v17, %v6210_v63  ;;  %v2767_v40 = vshrl.u32 %v2766_v30, 23 }
 0x489   :  { %v2725_v21 = vsub.s32 0, %v2723_v57  ;;  %v2616_v14 = vadd.s32 536870912, %v2615_v0  ;;  %v6298_v44 = vadd.f32 %v3924_v24, %v6161_v25  ;;  %v6300_v29 = vadd.s32 3, %v2748_v19 }
 0x48a   :  { %v6265_v33 = vpop.f32.mrb[16].mxu0  ;;  %vm2878_vm6 = vcmp.gt.s32.totalorder %v2877_v34, 0  ;;  %v2611_v9 = vadd.s32 %v6250_v4, %v6255_v47  ;;  %v6303_v37 = vshll.u32 %v2875_v27, 8  ;;  %v6309_v20 = vand.u32 8388607, %v2763_v45 }
 0x48b   :  { %v6271_v52 = vpop.f32.mrb[17].mxu0  ;;  %v3722_v3 = vmin.u32 %v2725_v21, %v2723_v57  ;;  %v6278_v5 = vshrl.u32 %v2616_v14, 30  ;;  %v2879_v23 = vsel %vm2878_vm6, %v2877_v34, 0  ;;  %v3725_v55 = vadd.s32 4294967169, %v2767_v40 }
 0x48c   :  { %v2881_v46 = vand.u32 31, %v2879_v23  ;;  %v6311_v24 = vshrl.u32 %v2879_v23, 5  ;;  %vm6375_vm1 = vcmp.le.f32.partialorder %v2555_v56, 0.7853982 }
 0x48d   :  { %v2727_v50 = vclz %v3722_v3  ;;  %v2618_v39 = vshll.u32 %v6278_v5, 30  ;;  %v2641_v17 = vsub.s32 4, %v6278_v5 }
 0x48e   :  { %v2882_v22 = vsub.s32 32, %v2881_v46  ;;  %v2884_v4 = vshll.u32 %v6971_v59, %v2881_v46  ;;  %v2887_v53 = vshll.u32 %v6966_v28, %v2881_v46  ;;  %v2890_v60 = vshll.u32 %v6967_v12, %v2881_v46 }
 0x48f   :  { %v3723_v38 = vadd.s32 4294967294, %v2727_v50  ;;  %v6295_v26 = vsub.s32 %v2615_v0, %v2618_v39  ;;  %v2893_v34 = vshll.u32 %v6974_v32, %v2881_v46  ;;  %v2896_v27 = vshll.u32 %v6975_v7, %v2881_v46 }
 0x490   :  { %v2885_v15 = vshrl.u32 %v6966_v28, %v2882_v22  ;;  %v2888_v47 = vshrl.u32 %v6967_v12, %v2882_v22  ;;  %v2891_v43 = vshrl.u32 %v6974_v32, %v2882_v22  ;;  %v2883_v18 = vshrl.u32 %v6971_v59, %v2882_v22 }
 0x491   :  { %vm3724_vm3 = vcmp.lt.s32.totalorder %v3723_v38, 0  ;;  %v2621_v63 = vsub.s32 0, %v6295_v26  ;;  %v2897_v41 = vshrl.u32 %v6969_v1, %v2882_v22  ;;  %vm2899_vm4 = vcmp.lt.s32.totalorder %v6311_v24, 1 }
 0x492   :  { %v6293_v61 = vpop.f32.mrb[18].mxu0  ;;  %v2730_v54 = vsel %vm3724_vm3, 0, %v3723_v38  ;;  %v2886_v49 = vor.u32 %v2885_v15, %v2884_v4  ;;  %v2889_v3 = vor.u32 %v2888_v47, %v2887_v53  ;;  %v2892_v50 = vor.u32 %v2891_v43, %v2890_v60 }
 0x493   :  { %v2731_v10 = vsub.s32 32, %v2730_v54  ;;  %v2735_v51 = vsub.s32 4294967266, %v2730_v54  ;;  %v3718_v8 = vmin.u32 %v2621_v63, %v6295_v26  ;;  %v2732_v58 = vshll.u32 %v2723_v57, %v2730_v54  ;;  %v6332_v63 = vpop.f32.mrb[19].mxu0 }
 0x494   :  { %v2894_v57 = vshrl.u32 %v6975_v7, %v2882_v22  ;;  %vm2900_vm14 = vcmp.lt.s32.totalorder %v6311_v24, 2  ;;  %v2898_v38 = vor.u32 %v2897_v41, %v2896_v27  ;;  %vm2901_vm0 = vcmp.lt.s32.totalorder %v6311_v24, 3 }
 0x495   :  { %v2733_v11 = vshrl.u32 %v2715_v48, %v2731_v10  ;;  %v2736_v13 = vadd.s32 127, %v2735_v51  ;;  %v2623_v35 = vclz %v3718_v8  ;;  %vm2902_vm5 = vcmp.lt.s32.totalorder %v6311_v24, 4 }
 0x496   :  { %v2895_v19 = vor.u32 %v2894_v57, %v2893_v34  ;;  %v2903_v54 = vsel %vm2899_vm4, %v2883_v18, %v2886_v49  ;;  %v2904_v10 = vsel %vm2902_vm5, %v2892_v50, 2102212464  ;;  %v2907_v51 = vsel %vm2899_vm4, %v2886_v49, %v2889_v3 }
 0x497   :  { %v2734_v0 = vor.u32 %v2733_v11, %v2732_v58  ;;  %v2737_v21 = vshll.u32 %v2736_v13, 23  ;;  %v3719_v14 = vadd.s32 4294967294, %v2623_v35  ;;  %v2911_v43 = vsel %vm2899_vm4, %v2889_v3, %v2892_v50 }
 0x498   :  { %v2908_v15 = vsel %vm2902_vm5, %v2895_v19, 920167782  ;;  %v2912_v35 = vsel %vm2902_vm5, %v2898_v38, 1326507024  ;;  %v2905_v60 = vsel %vm2901_vm0, %v2889_v3, %v2904_v10  ;;  %v2642_v3 = vsel %vm2557_vm11, %v2641_v17, %v6278_v5 }
 0x499   :  { %v2738_v23 = vor.u32 4788187, %v2737_v21  ;;  %v2741_v30 = vcvt.s32.f32 %v2734_v0  ;;  %vm3720_vm8 = vcmp.lt.s32.totalorder %v3719_v14, 0  ;;  %v2909_v58 = vsel %vm2901_vm0, %v2892_v50, %v2908_v15 }
 0x49a   :  { %v2626_v48 = vsel %vm3720_vm8, 0, %v3719_v14  ;;  %v2910_v13 = vsel %vm2900_vm14, %v2907_v51, %v2909_v58  ;;  %v2773_v57 = vadd.s32 1, %v3725_v55  ;;  %v2906_v41 = vsel %vm2900_vm14, %v2903_v54, %v2905_v60 }
 0x49b   :  { %v2739_v39 = vand.u32 2147483647, %v2738_v23  ;;  %v2627_v40 = vsub.s32 32, %v2626_v48  ;;  %v2631_v22 = vsub.s32 4294967266, %v2626_v48  ;;  %v2628_v8 = vshll.u32 %v6295_v26, %v2626_v48 }
 0x49c   :  { %v2913_v26 = vsel %vm2901_vm0, %v2895_v19, %v2912_v35  ;;  %v6352_v21 = vmul.u32.u64.low %v6303_v37, %v2910_v13  ;;  %v6353_v49 = vmul.u32.u64.high %v6303_v37, %v2910_v13, %v6352_v21  ;;  %vm2774_vm2 = vcmp.gt.s32.totalorder %v2773_v57, 0 }
 0x49d   :  { %v2742_v46 = vmul.f32 %v2741_v30, %v2739_v39  ;;  %v2629_v4 = vshrl.u32 %v2611_v9, %v2627_v40  ;;  %v2632_v47 = vadd.s32 127, %v2631_v22  ;;  %v2914_v0 = vsel %vm2900_vm14, %v2911_v43, %v2913_v26 }
 0x49e   :  { %v6367_v23 = vmul.u32.u64.low %v6303_v37, %v2914_v0  ;;  %v6368_v30 = vmul.u32.u64.high %v6303_v37, %v2914_v0, %v6367_v23  ;;  %v2753_v27 = vand.u32 3, %v6300_v29  ;;  %v2925_v19 = vadd.s32 1, %v6353_v49 }
 0x49f   :  { %v2743_v11 = vxor.u32 2147483648, %v2742_v46  ;;  %v2630_v18 = vor.u32 %v2629_v4, %v2628_v8  ;;  %v2633_v53 = vshll.u32 %v2632_v47, 23  ;;  %v2771_v39 = vor.u32 8388608, %v6309_v20 }
 0x4a0   :  { %v2775_v5 = vsel %vm2774_vm2, %v2773_v57, 0  ;;  %v2644_v48 = vsel %vm6375_vm1, 0, %v2642_v3  ;;  %v2922_v38 = vmul.u32 %v6303_v37, %v2906_v41  ;;  %vm2924_vm12 = vc.u32 %v6368_v30, %v6352_v21 }
 0x4a1   :  { %v2744_v9 = vsel %vm2661_vm10, %v2743_v11, %v2742_v46  ;;  %v2634_v14 = vor.u32 4788187, %v2633_v53  ;;  %v2637_v62 = vcvt.s32.f32 %v2630_v18  ;;  %v2777_v55 = vand.u32 31, %v2775_v5 }
 0x4a2   :  { %v2747_v34 = vsel %vm6283_vm7, %v6164_v36, %v2744_v9  ;;  %v2926_v20 = vsel %vm2924_vm12, %v2925_v19, %v6353_v49  ;;  %v3075_v22 = vand.u32 2147483647, %v6298_v44  ;;  %vm2754_vm13 = vcmp.lt.s32.totalorder %v2753_v27, 2 }
 0x4a3   :  { %4205 = vcosq.f32 %v2747_v34  ;;  %v2635_v50 = vand.u32 2147483647, %v2634_v14  ;;  %v2778_v40 = vsub.s32 32, %v2777_v55  ;;  %vm2755_vm15 = vcmp.eq.s32.totalorder %v2753_v27, 0 }
 0x4a4   :  { %4207 = vsinq.f32 %v2747_v34  ;;  %vm2758_vm9 = vcmp.eq.s32.totalorder %v2753_v27, 2  ;;  %v2927_v56 = vadd.s32 %v2926_v20, %v2922_v38  ;;  %v6386_v54 = vshll.u32 %v2771_v39, 8 }
 0x4a5   :  { %v2638_v24 = vmul.f32 %v2637_v62, %v2635_v50  ;;  %vm2751_vm10 = vweird.f32 %v6164_v36  ;;  %v2648_v46 = vadd.s32 3, %v2644_v48  ;;  %v6391_v10 = vshrl.u32 %v2775_v5, 5 }
 0x4a6   :  { %v3078_v51 = vand.u32 2139095040, %v6298_v44  ;;  %v2928_v8 = vadd.s32 536870912, %v2927_v56  ;;  %v2781_v4 = vshrl.u32 %v6966_v28, %v2778_v40  ;;  %v2784_v47 = vshrl.u32 %v6967_v12, %v2778_v40 }
 0x4a7   :  { %v2639_v29 = vxor.u32 2147483648, %v2638_v24  ;;  %v2780_v58 = vshll.u32 %v6971_v59, %v2777_v55  ;;  %v2787_v11 = vshrl.u32 %v6974_v32, %v2778_v40  ;;  %v2790_v13 = vshrl.u32 %v6975_v7, %v2778_v40 }
 0x4a8   :  { %v6402_v35 = vshrl.u32 %v2928_v8, 30  ;;  %v2783_v18 = vshll.u32 %v6966_v28, %v2777_v55  ;;  %v2786_v53 = vshll.u32 %v6967_v12, %v2777_v55  ;;  %v2789_v9 = vshll.u32 %v6974_v32, %v2777_v55 }
 0x4a9   :  { %v2640_v37 = vsel %vm2557_vm11, %v2639_v29, %v2638_v24  ;;  %v2792_v0 = vshll.u32 %v6975_v7, %v2777_v55  ;;  %v2793_v49 = vshrl.u32 %v6969_v1, %v2778_v40  ;;  %v2782_v3 = vor.u32 %v2781_v4, %v2780_v58 }
 0x4aa   :  { %v2643_v15 = vsel %vm6375_vm1, %v6167_v2, %v2640_v37  ;;  %v2930_v14 = vshll.u32 %v6402_v35, 30  ;;  %v2785_v57 = vor.u32 %v2784_v47, %v2783_v18  ;;  %v2788_v23 = vor.u32 %v2787_v11, %v2786_v53 }
 0x4ab   :  { %4209 = vcosq.f32 %v2643_v15  ;;  %v2791_v50 = vor.u32 %v2790_v13, %v2789_v9  ;;  %v2794_v62 = vor.u32 %v2793_v49, %v2792_v0  ;;  %v2649_v39 = vand.u32 3, %v2648_v46 }
 0x4ac   :  { %4211 = vsinq.f32 %v2643_v15  ;;  %v6412_v5 = vsub.s32 %v2927_v56, %v2930_v14  ;;  %v3079_v17 = vshrl.u32 %v3078_v51, 23  ;;  %v2779_v55 = vshrl.u32 %v6971_v59, %v2778_v40 }
 0x4ad   :  { %v4206_v43 = vpop.eup %4205  ;;  %vm2795_vm6 = vcmp.lt.s32.totalorder %v6391_v10, 1  ;;  %vm2796_vm7 = vcmp.lt.s32.totalorder %v6391_v10, 2  ;;  %vm2647_vm3 = vweird.f32 %v6167_v2  ;;  %vm2798_vm11 = vcmp.lt.s32.totalorder %v6391_v10, 4 }
 0x4ae   :  { %v4208_v60 = vpop.eup %4207  ;;  %v2759_v26 = vxor.u32 2147483648, %v4206_v43  ;;  %v2933_v38 = vsub.s32 0, %v6412_v5  ;;  %v2803_v29 = vsel %vm2795_vm6, %v2782_v3, %v2785_v57  ;;  %vm2797_vm8 = vcmp.lt.s32.totalorder %v6391_v10, 3 }
 0x4af   :  { %v2756_v34 = vxor.u32 2147483648, %v4208_v60  ;;  %v2804_v27 = vsel %vm2798_vm11, %v2791_v50, 920167782  ;;  %v2807_v20 = vsel %vm2795_vm6, %v2785_v57, %v2788_v23  ;;  %v2808_v40 = vsel %vm2798_vm11, %v2794_v62, 1326507024 }
 0x4b0   :  { %v2760_v41 = vsel %vm2758_vm9, %v2759_v26, %v4208_v60  ;;  %v3730_v36 = vmin.u32 %v2933_v38, %v6412_v5  ;;  %v2800_v56 = vsel %vm2798_vm11, %v2788_v23, 2102212464  ;;  %v2805_v37 = vsel %vm2797_vm8, %v2788_v23, %v2804_v27 }
 0x4b1   :  { %v2757_v19 = vsel %vm2755_vm15, %v4206_v43, %v2756_v34  ;;  %v2809_v46 = vsel %vm2797_vm8, %v2791_v50, %v2808_v40  ;;  %vm2651_vm4 = vcmp.eq.s32.totalorder %v2649_v39, 0  ;;  %v2806_v15 = vsel %vm2796_vm7, %v2803_v29, %v2805_v37 }
 0x4b2   :  { %v2761_v24 = vsel %vm2754_vm13, %v2757_v19, %v2760_v41  ;;  %v2810_v8 = vsel %vm2796_vm7, %v2807_v20, %v2809_v46  ;;  %v3737_v4 = vadd.s32 4294967169, %v3079_v17  ;;  %vm2654_vm14 = vcmp.eq.s32.totalorder %v2649_v39, 2 }
 0x4b3   :  { %v2762_v48 = vsel %vm2751_vm10, nan, %v2761_v24  ;;  %vm2869_vm0 = vcmp.lt.s32.totalorder %v6245_v16, 0  ;;  %v2935_v11 = vclz %v3730_v36  ;;  %v2799_v13 = vsel %vm2795_vm6, %v2779_v55, %v2782_v3 }
 0x4b4   :  { %3596 = vst [vmem:[#allocation5 + $0x8] sm:$0xff] %v2762_v48  ;;  %v2801_v18 = vsel %vm2797_vm8, %v2785_v57, %v2800_v56  ;;  %v6443_v53 = vmul.u32.u64.low %v6386_v54, %v2810_v8  ;;  %v6444_v60 = vmul.u32.u64.high %v6386_v54, %v2810_v8, %v6443_v53  ;;  %vm2650_vm5 = vcmp.lt.s32.totalorder %v2649_v39, 2 }
 0x4b5   :  { %v4210_v51 = vpop.eup %4209  ;;  %v3731_v9 = vadd.s32 4294967294, %v2935_v11  ;;  %v6447_v0 = vmul.u32.u64.low %v6386_v54, %v2806_v15  ;;  %v6448_v49 = vmul.u32.u64.high %v6386_v54, %v2806_v15, %v6447_v0  ;;  %v3085_v14 = vadd.s32 1, %v3737_v4 }
 0x4b6   :  { %v4212_v47 = vpop.eup %4211  ;;  %v2655_v58 = vxor.u32 2147483648, %v4210_v51  ;;  %v6454_v3 = vadd.f32 %v6161_v25, %v6237_v6  ;;  %v2802_v41 = vsel %vm2796_vm7, %v2799_v13, %v2801_v18  ;;  %v3082_v23 = vand.u32 8388607, %v3075_v22 }
 0x4b7   :  { %v2652_v43 = vxor.u32 2147483648, %v4212_v47  ;;  %vm3732_vm2 = vcmp.lt.s32.totalorder %v3731_v9, 0  ;;  %v2953_v19 = vsub.s32 4, %v6402_v35  ;;  %vm2820_vm1 = vc.u32 %v6444_v60, %v6447_v0 }
 0x4b8   :  { %v2656_v26 = vsel %vm2654_vm14, %v2655_v58, %v4212_v47  ;;  %v2938_v62 = vsel %vm3732_vm2, 0, %v3731_v9  ;;  %v2923_v6 = vadd.s32 %v6352_v21, %v6368_v30  ;;  %v2821_v10 = vadd.s32 1, %v6448_v49 }
 0x4b9   :  { %v2653_v34 = vsel %vm2651_vm4, %v4210_v51, %v2652_v43  ;;  %v2939_v39 = vsub.s32 32, %v2938_v62  ;;  %v2943_v17 = vsub.s32 4294967266, %v2938_v62  ;;  %v2940_v24 = vshll.u32 %v6412_v5, %v2938_v62 }
 0x4ba   :  { %v2657_v57 = vsel %vm2650_vm5, %v2653_v34, %v2656_v26  ;;  %v2818_v55 = vmul.u32 %v6386_v54, %v2802_v41  ;;  %vm3086_vm12 = vcmp.gt.s32.totalorder %v3085_v14, 0  ;;  %v2974_v2 = vand.u32 2139095040, %v6454_v3 }
 0x4bb   :  { %v2658_v50 = vsel %vm2647_vm3, nan, %v2657_v57  ;;  %v2941_v48 = vshrl.u32 %v2923_v6, %v2939_v39  ;;  %v2944_v38 = vadd.s32 127, %v2943_v17  ;;  %v2822_v29 = vsel %vm2820_vm1, %v2821_v10, %v6448_v49 }
 0x4bc   :  { %3595 = vst [vmem:[#allocation5] sm:$0xff] %v2658_v50  ;;  %v3087_v27 = vsel %vm3086_vm12, %v3085_v14, 0  ;;  %v2954_v21 = vsel %vm2869_vm0, %v2953_v19, %v6402_v35  ;;  %v2823_v30 = vadd.s32 %v2822_v29, %v2818_v55  ;;  %vm6477_vm13 = vcmp.le.f32.partialorder %v2867_v42, 0.7853982 }
 0x4bd   :  { %v3089_v20 = vand.u32 31, %v3087_v27  ;;  %v2942_v40 = vor.u32 %v2941_v48, %v2940_v24  ;;  %v2945_v36 = vshll.u32 %v2944_v38, 23  ;;  %v3083_v56 = vor.u32 8388608, %v3082_v23 }
 0x4be   :  { %v2824_v5 = vadd.s32 536870912, %v2823_v30  ;;  %v2956_v51 = vsel %vm6477_vm13, 0, %v2954_v21  ;;  %v3088_v15 = vshrl.u32 %v3087_v27, 5  ;;  %v2975_v8 = vshrl.u32 %v2974_v2, 23 }
 0x4bf   :  { %v3090_v37 = vsub.s32 32, %v3089_v20  ;;  %v2946_v46 = vor.u32 4788187, %v2945_v36  ;;  %v2949_v35 = vcvt.s32.f32 %v2942_v40  ;;  %v3101_v13 = vshll.u32 %v6974_v32, %v3089_v20 }
 0x4c0   :  { %v6483_v4 = vshrl.u32 %v2824_v5, 30  ;;  %v3092_v53 = vshll.u32 %v6971_v59, %v3089_v20  ;;  %v3095_v26 = vshll.u32 %v6966_v28, %v3089_v20  ;;  %v3098_v9 = vshll.u32 %v6967_v12, %v3089_v20 }
 0x4c1   :  { %v3093_v47 = vshrl.u32 %v6966_v28, %v3090_v37  ;;  %v3096_v58 = vshrl.u32 %v6967_v12, %v3090_v37  ;;  %v2947_v42 = vand.u32 2147483647, %v2946_v46  ;;  %v3099_v11 = vshrl.u32 %v6974_v32, %v3090_v37 }
 0x4c2   :  { %v3102_v43 = vshrl.u32 %v6975_v7, %v3090_v37  ;;  %v2826_v18 = vshll.u32 %v6483_v4, 30  ;;  %v3105_v14 = vshrl.u32 %v6969_v1, %v3090_v37  ;;  %v2960_v19 = vadd.s32 3, %v2956_v51 }
 0x4c3   :  { %v2950_v49 = vmul.f32 %v2949_v35, %v2947_v42  ;;  %v3094_v41 = vor.u32 %v3093_v47, %v3092_v53  ;;  %v3097_v23 = vor.u32 %v3096_v58, %v3095_v26  ;;  %v3100_v50 = vor.u32 %v3099_v11, %v3098_v9 }
 0x4c4   :  { %v3103_v34 = vor.u32 %v3102_v43, %v3101_v13  ;;  %v6495_v57 = vsub.s32 %v2823_v30, %v2826_v18  ;;  %v3104_v6 = vshll.u32 %v6975_v7, %v3089_v20  ;;  %v6498_v39 = vshll.u32 %v3083_v56, 8 }
 0x4c5   :  { %v2951_v62 = vxor.u32 2147483648, %v2950_v49  ;;  %vm3107_vm15 = vcmp.lt.s32.totalorder %v3088_v15, 1  ;;  %vm3110_vm9 = vcmp.lt.s32.totalorder %v3088_v15, 4  ;;  %v3733_v10 = vadd.s32 4294967169, %v2975_v8 }
 0x4c6   :  { %v2829_v17 = vsub.s32 0, %v6495_v57  ;;  %vm2765_vm10 = vcmp.lt.s32.totalorder %v6269_v31, 0  ;;  %v3106_v55 = vor.u32 %v3105_v14, %v3104_v6  ;;  %vm3109_vm6 = vcmp.lt.s32.totalorder %v3088_v15, 3 }
 0x4c7   :  { %v2952_v24 = vsel %vm2869_vm0, %v2951_v62, %v2950_v49  ;;  %v3116_v2 = vsel %vm3110_vm9, %v3103_v34, 920167782  ;;  %v3112_v29 = vsel %vm3110_vm9, %v3100_v50, 2102212464  ;;  %v3115_v27 = vsel %vm3107_vm15, %v3094_v41, %v3097_v23 }
 0x4c8   :  { %v2955_v48 = vsel %vm6477_vm13, %v6245_v16, %v2952_v24  ;;  %v3726_v38 = vmin.u32 %v2829_v17, %v6495_v57  ;;  %v2849_v21 = vsub.s32 4, %v6483_v4  ;;  %v3091_v30 = vshrl.u32 %v6971_v59, %v3090_v37 }
 0x4c9   :  { %4213 = vcosq.f32 %v2955_v48  ;;  %v3117_v20 = vsel %vm3109_vm6, %v3100_v50, %v3116_v2  ;;  %vm6516_vm7 = vcmp.le.f32.partialorder %v2763_v45, 0.7853982  ;;  %vm3108_vm3 = vcmp.lt.s32.totalorder %v3088_v15, 2 }
 0x4ca   :  { %4215 = vsinq.f32 %v2955_v48  ;;  %v2831_v36 = vclz %v3726_v38  ;;  %v3119_v54 = vsel %vm3107_vm15, %v3097_v23, %v3100_v50  ;;  %v3111_v5 = vsel %vm3107_vm15, %v3091_v30, %v3094_v41 }
 0x4cb   :  { %v3113_v56 = vsel %vm3109_vm6, %v3097_v23, %v3112_v29  ;;  %v3118_v46 = vsel %vm3108_vm3, %v3115_v27, %v3117_v20  ;;  %v3120_v37 = vsel %vm3110_vm9, %v3106_v55, 1326507024  ;;  %v2961_v47 = vand.u32 3, %v2960_v19 }
 0x4cc   :  { %v3727_v51 = vadd.s32 4294967294, %v2831_v36  ;;  %v3121_v8 = vsel %vm3109_vm6, %v3103_v34, %v3120_v37  ;;  %v6526_v35 = vmul.u32.u64.low %v6498_v39, %v3118_v46  ;;  %v6527_v45 = vmul.u32.u64.high %v6498_v39, %v3118_v46, %v6526_v35 }
 0x4cd   :  { %v3122_v58 = vsel %vm3108_vm3, %v3119_v54, %v3121_v8  ;;  %v2971_v42 = vand.u32 2147483647, %v6454_v3  ;;  %v2981_v11 = vadd.s32 1, %v3733_v10  ;;  %v3114_v13 = vsel %vm3108_vm3, %v3111_v5, %v3113_v56 }
 0x4ce   :  { %vm3728_vm11 = vcmp.lt.s32.totalorder %v3727_v51, 0  ;;  %v6532_v43 = vmul.u32.u64.low %v6498_v39, %v3122_v58  ;;  %v6533_v18 = vmul.u32.u64.high %v6498_v39, %v3122_v58, %v6532_v43  ;;  %v2819_v15 = vadd.s32 %v6447_v0, %v6444_v60 }
 0x4cf   :  { %v2834_v53 = vsel %vm3728_vm11, 0, %v3727_v51  ;;  %vm2982_vm8 = vcmp.gt.s32.totalorder %v2981_v11, 0  ;;  %v6539_v26 = vadd.f32 %v6265_v33, %v6161_v25  ;;  %vm2959_vm4 = vweird.f32 %v6245_v16 }
 0x4d0   :  { %v2835_v9 = vsub.s32 32, %v2834_v53  ;;  %v2839_v49 = vsub.s32 4294967266, %v2834_v53  ;;  %v2850_v34 = vsel %vm2765_vm10, %v2849_v21, %v6483_v4  ;;  %v3133_v14 = vadd.s32 1, %v6527_v45 }
 0x4d1   :  { %vm2962_vm14 = vcmp.lt.s32.totalorder %v2961_v47, 2  ;;  %v3130_v41 = vmul.u32 %v6498_v39, %v3114_v13  ;;  %v2978_v60 = vand.u32 8388607, %v2971_v42  ;;  %v2983_v0 = vsel %vm2982_vm8, %v2981_v11, 0 }
 0x4d2   :  { %v2836_v25 = vshll.u32 %v6495_v57, %v2834_v53  ;;  %v2837_v33 = vshrl.u32 %v2819_v15, %v2835_v9  ;;  %v2840_v23 = vadd.s32 127, %v2839_v49  ;;  %vm3132_vm0 = vc.u32 %v6533_v18, %v6526_v35 }
 0x4d3   :  { %v4214_v50 = vpop.eup %4213  ;;  %v2852_v4 = vsel %vm6516_vm7, 0, %v2850_v34  ;;  %v3134_v62 = vsel %vm3132_vm0, %v3133_v14, %v6527_v45  ;;  %v2985_v19 = vand.u32 31, %v2983_v0  ;;  %v3286_v6 = vand.u32 2139095040, %v6539_v26 }
 0x4d4   :  { %v4216_v39 = vpop.eup %4215  ;;  %v2967_v17 = vxor.u32 2147483648, %v4214_v50  ;;  %v2838_v10 = vor.u32 %v2837_v33, %v2836_v25  ;;  %v2841_v24 = vshll.u32 %v2840_v23, 23  ;;  %v3135_v55 = vadd.s32 %v3134_v62, %v3130_v41 }
 0x4d5   :  { %vm2963_vm5 = vcmp.eq.s32.totalorder %v2961_v47, 0  ;;  %v2964_v57 = vxor.u32 2147483648, %v4216_v39  ;;  %vm2966_vm2 = vcmp.eq.s32.totalorder %v2961_v47, 2  ;;  %v2986_v2 = vsub.s32 32, %v2985_v19 }
 0x4d6   :  { %v2968_v48 = vsel %vm2966_vm2, %v2967_v17, %v4216_v39  ;;  %v2842_v38 = vor.u32 4788187, %v2841_v24  ;;  %v3136_v29 = vadd.s32 536870912, %v3135_v55  ;;  %v2979_v27 = vor.u32 8388608, %v2978_v60 }
 0x4d7   :  { %v2965_v21 = vsel %vm2963_vm5, %v4214_v50, %v2964_v57  ;;  %v2856_v30 = vadd.s32 3, %v2852_v4  ;;  %v2984_v20 = vshrl.u32 %v2983_v0, 5  ;;  %v3287_v36 = vshrl.u32 %v3286_v6, 23 }
 0x4d8   :  { %v2969_v54 = vsel %vm2962_vm14, %v2965_v21, %v2968_v48  ;;  %v2843_v5 = vand.u32 2147483647, %v2842_v38  ;;  %v2845_v56 = vcvt.s32.f32 %v2838_v10  ;;  %v6557_v46 = vshrl.u32 %v3136_v29, 30 }
 0x4d9   :  { %v2970_v37 = vsel %vm2959_vm4, nan, %v2969_v54  ;;  %v2989_v51 = vshrl.u32 %v6966_v28, %v2986_v2  ;;  %v2992_v8 = vshrl.u32 %v6967_v12, %v2986_v2  ;;  %v2995_v45 = vshrl.u32 %v6974_v32, %v2986_v2 }
 0x4da   :  { %3598 = vst [vmem:[#allocation5 + $0x18] sm:$0xff] %v2970_v37  ;;  %v2846_v58 = vmul.f32 %v2845_v56, %v2843_v5  ;;  %v3138_v11 = vshll.u32 %v6557_v46, 30  ;;  %v2988_v47 = vshll.u32 %v6971_v59, %v2985_v19  ;;  %v2994_v13 = vshll.u32 %v6967_v12, %v2985_v19 }
 0x4db   :  { %v2991_v43 = vshll.u32 %v6966_v28, %v2985_v19  ;;  %v2997_v15 = vshll.u32 %v6974_v32, %v2985_v19  ;;  %v2998_v16 = vshrl.u32 %v6975_v7, %v2986_v2  ;;  %v3001_v53 = vshrl.u32 %v6969_v1, %v2986_v2 }
 0x4dc   :  { %v2847_v9 = vxor.u32 2147483648, %v2846_v58  ;;  %v6571_v49 = vsub.s32 %v3135_v55, %v3138_v11  ;;  %v2996_v34 = vor.u32 %v2995_v45, %v2994_v13  ;;  %v2990_v14 = vor.u32 %v2989_v51, %v2988_v47 }
 0x4dd   :  { %v2993_v41 = vor.u32 %v2992_v8, %v2991_v43  ;;  %v2999_v60 = vor.u32 %v2998_v16, %v2997_v15  ;;  %v3000_v0 = vshll.u32 %v6975_v7, %v2985_v19  ;;  %v6576_v33 = vand.u32 3, %v2856_v30 }
 0x4de   :  { %v2848_v25 = vsel %vm2765_vm10, %v2847_v9, %v2846_v58  ;;  %v3141_v23 = vsub.s32 0, %v6571_v49  ;;  %v3019_v50 = vshll.u32 %v2979_v27, 8  ;;  %vm3077_vm1 = vcmp.lt.s32.totalorder %v6298_v44, 0 }
 0x4df   :  { %v2851_v4 = vsel %vm6516_vm7, %v6269_v31, %v2848_v25  ;;  %v3002_v62 = vor.u32 %v3001_v53, %v3000_v0  ;;  %vm3006_vm12 = vcmp.lt.s32.totalorder %v2984_v20, 4  ;;  %v3745_v6 = vadd.s32 4294967169, %v3287_v36 }
 0x4e0   :  { %4217 = vcosq.f32 %v2851_v4  ;;  %v3738_v19 = vmin.u32 %v3141_v23, %v6571_v49  ;;  %vm3003_vm13 = vcmp.lt.s32.totalorder %v2984_v20, 1  ;;  %v3008_v39 = vsel %vm3006_vm12, %v2996_v34, 2102212464 }
 0x4e1   :  { %4219 = vsinq.f32 %v2851_v4  ;;  %v2987_v17 = vshrl.u32 %v6971_v59, %v2986_v2  ;;  %v3011_v10 = vsel %vm3003_vm13, %v2990_v14, %v2993_v41  ;;  %v3012_v24 = vsel %vm3006_vm12, %v2999_v60, 920167782 }
 0x4e2   :  { %vm6589_vm15 = vcmp.le.f32.partialorder %v3075_v22, 0.7853982  ;;  %v3143_v55 = vclz %v3738_v19  ;;  %vm3004_vm9 = vcmp.lt.s32.totalorder %v2984_v20, 2  ;;  %vm3005_vm10 = vcmp.lt.s32.totalorder %v2984_v20, 3 }
 0x4e3   :  { %v3015_v57 = vsel %vm3003_vm13, %v2993_v41, %v2996_v34  ;;  %v3007_v48 = vsel %vm3003_vm13, %v2987_v17, %v2990_v14  ;;  %v3009_v38 = vsel %vm3005_vm10, %v2993_v41, %v3008_v39  ;;  %v3013_v29 = vsel %vm3005_vm10, %v2996_v34, %v3012_v24 }
 0x4e4   :  { %v3016_v27 = vsel %vm3006_vm12, %v3002_v62, 1326507024  ;;  %v3739_v21 = vadd.s32 4294967294, %v3143_v55  ;;  %v3161_v2 = vsub.s32 4, %v6557_v46  ;;  %v3014_v30 = vsel %vm3004_vm9, %v3011_v10, %v3013_v29 }
 0x4e5   :  { %v3017_v36 = vsel %vm3005_vm10, %v2999_v60, %v3016_v27  ;;  %v6595_v5 = vmul.u32.u64.low %v3019_v50, %v3014_v30  ;;  %v6596_v22 = vmul.u32.u64.high %v3019_v50, %v3014_v30, %v6595_v5  ;;  %v3293_v56 = vadd.s32 1, %v3745_v6 }
 0x4e6   :  { %v3018_v54 = vsel %vm3004_vm9, %v3015_v57, %v3017_v36  ;;  %vm3740_vm6 = vcmp.lt.s32.totalorder %v3739_v21, 0  ;;  %v3010_v37 = vsel %vm3004_vm9, %v3007_v48, %v3009_v38  ;;  %vm2855_vm7 = vweird.f32 %v6269_v31 }
 0x4e7   :  { %v6599_v51 = vmul.u32.u64.low %v3019_v50, %v3018_v54  ;;  %v6600_v8 = vmul.u32.u64.high %v3019_v50, %v3018_v54, %v6599_v51  ;;  %vm2862_vm3 = vcmp.eq.s32.totalorder %v6576_v33, 2  ;;  %v3131_v20 = vadd.s32 %v6526_v35, %v6533_v18 }
 0x4e8   :  { %v3146_v45 = vsel %vm3740_vm6, 0, %v3739_v21  ;;  %vm3294_vm11 = vcmp.gt.s32.totalorder %v3293_v56, 0  ;;  %v3162_v47 = vsel %vm3077_vm1, %v3161_v2, %v6557_v46  ;;  %v3026_v43 = vmul.u32 %v3019_v50, %v3010_v37 }
 0x4e9   :  { %v3147_v58 = vsub.s32 32, %v3146_v45  ;;  %v3151_v11 = vsub.s32 4294967266, %v3146_v45  ;;  %v3295_v13 = vsel %vm3294_vm11, %v3293_v56, 0  ;;  %v3029_v15 = vadd.s32 1, %v6596_v22 }
 0x4ea   :  { %v3283_v16 = vand.u32 2147483647, %v6539_v26  ;;  %v3297_v53 = vand.u32 31, %v3295_v13  ;;  %v4218_v9 = vpop.eup %4217  ;;  %v3148_v34 = vshll.u32 %v6571_v49, %v3146_v45  ;;  %vm3028_vm8 = vc.u32 %v6600_v8, %v6595_v5 }
 0x4eb   :  { %v3149_v14 = vshrl.u32 %v3131_v20, %v3147_v58  ;;  %v3152_v35 = vadd.s32 127, %v3151_v11  ;;  %v4220_v18 = vpop.eup %4219  ;;  %v2863_v41 = vxor.u32 2147483648, %v4218_v9  ;;  %v3164_v46 = vsel %vm6589_vm15, 0, %v3162_v47 }
 0x4ec   :  { %v3030_v60 = vsel %vm3028_vm8, %v3029_v15, %v6596_v22  ;;  %v3298_v0 = vsub.s32 32, %v3297_v53  ;;  %v2860_v25 = vxor.u32 2147483648, %v4220_v18  ;;  %vm2858_vm4 = vcmp.lt.s32.totalorder %v6576_v33, 2 }
 0x4ed   :  { %v3150_v23 = vor.u32 %v3149_v14, %v3148_v34  ;;  %v3153_v50 = vshll.u32 %v3152_v35, 23  ;;  %v3031_v4 = vadd.s32 %v3030_v60, %v3026_v43  ;;  %vm2859_vm14 = vcmp.eq.s32.totalorder %v6576_v33, 0 }
 0x4ee   :  { %v2864_v49 = vsel %vm2862_vm3, %v2863_v41, %v4220_v18  ;;  %v3290_v62 = vand.u32 8388607, %v3283_v16  ;;  %v2861_v6 = vsel %vm2859_vm14, %v4218_v9, %v2860_v25  ;;  %v3168_v39 = vadd.s32 3, %v3164_v46  ;;  %v6643_v9 = vld [vmem:[%s6900_s3 + $0x2] ss:$0 sm:$0xff]  ;;  %s4304_s3 = smov [#allocation5]  }
 0x4ef   :  { %v3154_v19 = vor.u32 4788187, %v3153_v50  ;;  %v3032_v17 = vadd.s32 536870912, %v3031_v4  ;;  %v2865_v10 = vsel %vm2858_vm4, %v2861_v6, %v2864_v49  ;;  %v3157_v24 = vcvt.s32.f32 %v3150_v23  ;;  %s3610_s8 = sshll.u32 %s4304_s3, 4  ;;  %s3611_s8 = int_to_ptr.vmem [resolvable:$true] %s3610_s8 }
 0x4f0   :  { %v3301_v55 = vshrl.u32 %v6966_v28, %v3298_v0  ;;  %v3304_v57 = vshrl.u32 %v6967_v12, %v3298_v0  ;;  %v2866_v48 = vsel %vm2855_vm7, nan, %v2865_v10  ;;  %v3307_v33 = vshrl.u32 %v6974_v32, %v3298_v0  ;;  %s4269_s9 = scalar_lea.vmem %s3611_s8, 1280  ;;  %p4274_p9 = scmp.lt.s32.totalorder %s3611_s8, %s3611_s8 }
 0x4f1   :  { %v3155_v38 = vand.u32 2147483647, %v3154_v19  ;;  %v3033_v29 = vshrl.u32 %v3032_v17, 30  ;;  %3597 = vst [vmem:[#allocation5 + $0x10] sm:$0xff] %v2866_v48  ;;  %v3296_v27 = vshrl.u32 %v3295_v13, 5  ;;  %v3300_v21 = vshll.u32 %v6971_v59, %v3297_v53  ;;  %p4270_p8 = scmp.ne.s32.totalorder %s3611_s8, %s4269_s9  ;;  %p4275_p10 = scmp.lt.s32.totalorder %s4269_s9, %s4269_s9 }
 0x4f2   :  { %v3309_v2 = vshll.u32 %v6974_v32, %v3297_v53  ;;  %v3310_v30 = vshrl.u32 %v6975_v7, %v3298_v0  ;;  %v3303_v22 = vshll.u32 %v6966_v28, %v3297_v53  ;;  %v3306_v56 = vshll.u32 %v6967_v12, %v3297_v53 }
 0x4f3   :  { %v3158_v36 = vmul.f32 %v3157_v24, %v3155_v38  ;;  %v3034_v54 = vshll.u32 %v3033_v29, 30  ;;  %v3302_v31 = vor.u32 %v3301_v55, %v3300_v21  ;;  %v3312_v51 = vshll.u32 %v6975_v7, %v3297_v53  ;;  %p4276_p11 = por %p4275_p10, %p4274_p9 }
 0x4f4   :  { %v3311_v37 = vor.u32 %v3310_v30, %v3309_v2  ;;  %v3313_v20 = vshrl.u32 %v6969_v1, %v3298_v0  ;;  %v3305_v11 = vor.u32 %v3304_v57, %v3303_v22  ;;  %v3308_v47 = vor.u32 %v3307_v33, %v3306_v56 }
 0x4f5   :  { %v3159_v45 = vxor.u32 2147483648, %v3158_v36  ;;  %v6635_v58 = vsub.s32 %v3031_v4, %v3034_v54  ;;  %v6637_v13 = vand.u32 3, %v3168_v39  ;;  %vm2973_vm0 = vcmp.lt.s32.totalorder %v6454_v3, 0  ;;  %p4277_p12 = pnand %p4276_p11, %p4270_p8 }
 0x4f6   :  { %v3291_v43 = vor.u32 8388608, %v3290_v62  ;;  %v3314_v15 = vor.u32 %v3313_v20, %v3312_v51  ;;  %v6647_v53 = vadd.f32 %v6643_v9, %v6271_v52  ;;  %v3299_v35 = vshrl.u32 %v6971_v59, %v3298_v0 }
 0x4f7   :  { %v3160_v34 = vsel %vm3077_vm1, %v3159_v45, %v3158_v36  ;;  %v3037_v14 = vsub.s32 0, %v6635_v58  ;;  %vm3318_vm5 = vcmp.lt.s32.totalorder %v3296_v27, 4  ;;  %vm3315_vm2 = vcmp.lt.s32.totalorder %v3296_v27, 1 }
 0x4f8   :  { %v3163_v18 = vsel %vm6589_vm15, %v6298_v44, %v3160_v34  ;;  %vm3317_vm12 = vcmp.lt.s32.totalorder %v3296_v27, 3  ;;  %v3324_v41 = vsel %vm3318_vm5, %v3311_v37, 920167782  ;;  %v3320_v52 = vsel %vm3318_vm5, %v3308_v47, 2102212464 }
 0x4f9   :  { %4221 = vcosq.f32 %v3163_v18  ;;  %v3734_v46 = vmin.u32 %v3037_v14, %v6635_v58  ;;  %v3323_v60 = vsel %vm3315_vm2, %v3302_v31, %v3305_v11  ;;  %v3325_v25 = vsel %vm3317_vm12, %v3308_v47, %v3324_v41 }
 0x4fa   :  { %4223 = vsinq.f32 %v3163_v18  ;;  %v3327_v23 = vsel %vm3315_vm2, %v3305_v11, %v3308_v47  ;;  %v3328_v50 = vsel %vm3318_vm5, %v3314_v15, 1326507024  ;;  %v3057_v0 = vsub.s32 4, %v3033_v29 }
 0x4fb   :  { %v3039_v4 = vclz %v3734_v46  ;;  %vm3316_vm1 = vcmp.lt.s32.totalorder %v3296_v27, 2  ;;  %v3331_v49 = vshll.u32 %v3291_v43, 8  ;;  %v3319_v62 = vsel %vm3315_vm2, %v3299_v35, %v3302_v31 }
 0x4fc   :  { %v3321_v40 = vsel %vm3317_vm12, %v3305_v11, %v3320_v52  ;;  %v3326_v6 = vsel %vm3316_vm1, %v3323_v60, %v3325_v25  ;;  %v3329_v19 = vsel %vm3317_vm12, %v3311_v37, %v3328_v50  ;;  %vm6665_vm13 = vcmp.le.f32.partialorder %v2971_v42, 0.7853982 }
 0x4fd   :  { %v3735_v39 = vadd.s32 4294967294, %v3039_v4  ;;  %v3330_v17 = vsel %vm3316_vm1, %v3327_v23, %v3329_v19  ;;  %v6660_v10 = vmul.u32.u64.low %v3331_v49, %v3326_v6  ;;  %v6661_v24 = vmul.u32.u64.high %v3331_v49, %v3326_v6, %v6660_v10 }
 0x4fe   :  { %v6669_v57 = vmul.u32.u64.low %v3331_v49, %v3330_v17  ;;  %v6670_v48 = vmul.u32.u64.high %v3331_v49, %v3330_v17, %v6669_v57  ;;  %v3182_v38 = vand.u32 2139095040, %v6647_v53  ;;  %vm3170_vm15 = vcmp.lt.s32.totalorder %v6637_v13, 2 }
 0x4ff   :  { %vm3736_vm9 = vcmp.lt.s32.totalorder %v3735_v39, 0  ;;  %v3058_v33 = vsel %vm2973_vm0, %v3057_v0, %v3033_v29  ;;  %v3322_v27 = vsel %vm3316_vm1, %v3319_v62, %v3321_v40  ;;  %vm3167_vm10 = vweird.f32 %v6298_v44 }
 0x500   :  { %vm3171_vm6 = vcmp.eq.s32.totalorder %v6637_v13, 0  ;;  %v3042_v42 = vsel %vm3736_vm9, 0, %v3735_v39  ;;  %v3179_v21 = vand.u32 2147483647, %v6647_v53  ;;  %v3183_v2 = vshrl.u32 %v3182_v38, 23 }
 0x501   :  { %v3027_v30 = vadd.s32 %v6595_v5, %v6600_v8  ;;  %v3043_v36 = vsub.s32 32, %v3042_v42  ;;  %v3047_v54 = vsub.s32 4294967266, %v3042_v42  ;;  %v3341_v22 = vadd.s32 1, %v6661_v24 }
 0x502   :  { %v3060_v56 = vsel %vm6665_vm13, 0, %v3058_v33  ;;  %v3338_v29 = vmul.u32 %v3331_v49, %v3322_v27  ;;  %vm3340_vm7 = vc.u32 %v6670_v48, %v6660_v10  ;;  %v3741_v31 = vadd.s32 4294967169, %v3183_v2 }
 0x503   :  { %v4222_v37 = vpop.eup %4221  ;;  %v3044_v51 = vshll.u32 %v6635_v58, %v3042_v42  ;;  %v3045_v20 = vshrl.u32 %v3027_v30, %v3043_v36  ;;  %v3048_v45 = vadd.s32 127, %v3047_v54  ;;  %v3342_v11 = vsel %vm3340_vm7, %v3341_v22, %v6661_v24 }
 0x504   :  { %v4224_v47 = vpop.eup %4223  ;;  %v3175_v5 = vxor.u32 2147483648, %v4222_v37  ;;  %v3343_v8 = vadd.s32 %v3342_v11, %v3338_v29  ;;  %v3189_v43 = vadd.s32 1, %v3741_v31  ;;  %v6689_v15 = vadd.f32 %v6643_v9, %v6293_v61 }
 0x505   :  { %v3172_v34 = vxor.u32 2147483648, %v4224_v47  ;;  %vm3174_vm3 = vcmp.eq.s32.totalorder %v6637_v13, 2  ;;  %v3046_v14 = vor.u32 %v3045_v20, %v3044_v51  ;;  %v3049_v35 = vshll.u32 %v3048_v45, 23 }
 0x506   :  { %v3176_v18 = vsel %vm3174_vm3, %v3175_v5, %v4224_v47  ;;  %v3064_v41 = vadd.s32 3, %v3060_v56  ;;  %v3344_v58 = vadd.s32 536870912, %v3343_v8  ;;  %vm3190_vm11 = vcmp.gt.s32.totalorder %v3189_v43, 0 }
 0x507   :  { %v3173_v46 = vsel %vm3171_vm6, %v4222_v37, %v3172_v34  ;;  %v3050_v52 = vor.u32 4788187, %v3049_v35  ;;  %v3186_v60 = vand.u32 8388607, %v3179_v21  ;;  %v3191_v25 = vsel %vm3190_vm11, %v3189_v43, 0 }
 0x508   :  { %v3177_v61 = vsel %vm3170_vm15, %v3173_v46, %v3176_v18  ;;  %v3345_v23 = vshrl.u32 %v3344_v58, 30  ;;  %v3193_v50 = vand.u32 31, %v3191_v25  ;;  %v3494_v4 = vand.u32 2139095040, %v6689_v15 }
 0x509   :  { %v3178_v0 = vsel %vm3167_vm10, nan, %v3177_v61  ;;  %v3051_v49 = vand.u32 2147483647, %v3050_v52  ;;  %v3053_v62 = vcvt.s32.f32 %v3046_v14  ;;  %v6701_v40 = vand.u32 3, %v3064_v41 }
 0x50a   :  { %3600 = vst [vmem:[#allocation5 + $0x28] sm:$0xff] %v3178_v0  ;;  %vm3285_vm8 = vcmp.lt.s32.totalorder %v6539_v26, 0  ;;  %v3346_v6 = vshll.u32 %v3345_v23, 30  ;;  %v3194_v19 = vsub.s32 32, %v3193_v50  ;;  %v3339_v13 = vadd.s32 %v6660_v10, %v6670_v48 }
 0x50b   :  { %v3054_v39 = vmul.f32 %v3053_v62, %v3051_v49  ;;  %v3187_v17 = vor.u32 8388608, %v3186_v60  ;;  %v3491_v24 = vand.u32 2147483647, %v6689_v15  ;;  %v6708_v38 = vshrl.u32 %v3191_v25, 5 }
 0x50c   :  { %v6706_v57 = vsub.s32 %v3343_v8, %v3346_v6  ;;  %v3197_v44 = vshrl.u32 %v6966_v28, %v3194_v19  ;;  %v3495_v33 = vshrl.u32 %v3494_v4, 23  ;;  %v3196_v42 = vshll.u32 %v6971_v59, %v3193_v50 }
 0x50d   :  { %v3055_v27 = vxor.u32 2147483648, %v3054_v39  ;;  %v3200_v2 = vshrl.u32 %v6967_v12, %v3194_v19  ;;  %v3203_v30 = vshrl.u32 %v6974_v32, %v3194_v19  ;;  %v3199_v10 = vshll.u32 %v6966_v28, %v3193_v50 }
 0x50e   :  { %v3349_v36 = vsub.s32 0, %v6706_v57  ;;  %v3202_v48 = vshll.u32 %v6967_v12, %v3193_v50  ;;  %v3206_v54 = vshrl.u32 %v6975_v7, %v3194_v19  ;;  %v3369_v56 = vsub.s32 4, %v3345_v23 }
 0x50f   :  { %v3056_v22 = vsel %vm2973_vm0, %v3055_v27, %v3054_v39  ;;  %v3198_v29 = vor.u32 %v3197_v44, %v3196_v42  ;;  %v3205_v31 = vshll.u32 %v6974_v32, %v3193_v50  ;;  %v3201_v20 = vor.u32 %v3200_v2, %v3199_v10 }
 0x510   :  { %v3059_v37 = vsel %vm6665_vm13, %v6454_v3, %v3056_v22  ;;  %v3746_v51 = vmin.u32 %v3349_v36, %v6706_v57  ;;  %v3204_v45 = vor.u32 %v3203_v30, %v3202_v48  ;;  %v3208_v47 = vshll.u32 %v6975_v7, %v3193_v50 }
 0x511   :  { %4225 = vcosq.f32 %v3059_v37  ;;  %v3207_v11 = vor.u32 %v3206_v54, %v3205_v31  ;;  %v3209_v5 = vshrl.u32 %v6969_v1, %v3194_v19  ;;  %v3227_v43 = vshll.u32 %v3187_v17, 8 }
 0x512   :  { %4227 = vsinq.f32 %v3059_v37  ;;  %v3351_v8 = vclz %v3746_v51  ;;  %v3753_v34 = vadd.s32 4294967169, %v3495_v33  ;;  %v3370_v14 = vsel %vm3285_vm8, %v3369_v56, %v3345_v23 }
 0x513   :  { %v3195_v55 = vshrl.u32 %v6971_v59, %v3194_v19  ;;  %v3210_v35 = vor.u32 %v3209_v5, %v3208_v47  ;;  %vm3211_vm4 = vcmp.lt.s32.totalorder %v6708_v38, 1  ;;  %vm6733_vm14 = vcmp.le.f32.partialorder %v3283_v16, 0.7853982 }
 0x514   :  { %v3747_v41 = vadd.s32 4294967294, %v3351_v8  ;;  %vm3213_vm0 = vcmp.lt.s32.totalorder %v6708_v38, 3  ;;  %vm3214_vm5 = vcmp.lt.s32.totalorder %v6708_v38, 4  ;;  %v3219_v58 = vsel %vm3211_vm4, %v3198_v29, %v3201_v20 }
 0x515   :  { %v3216_v46 = vsel %vm3214_vm5, %v3204_v45, 2102212464  ;;  %v3220_v52 = vsel %vm3214_vm5, %v3207_v11, 920167782  ;;  %v3223_v60 = vsel %vm3211_vm4, %v3201_v20, %v3204_v45  ;;  %v3224_v25 = vsel %vm3214_vm5, %v3210_v35, 1326507024 }
 0x516   :  { %vm3748_vm2 = vcmp.lt.s32.totalorder %v3747_v41, 0  ;;  %vm3212_vm12 = vcmp.lt.s32.totalorder %v6708_v38, 2  ;;  %v3221_v61 = vsel %vm3213_vm0, %v3204_v45, %v3220_v52  ;;  %v3225_v16 = vsel %vm3213_vm0, %v3207_v11, %v3224_v25 }
 0x517   :  { %v3354_v23 = vsel %vm3748_vm2, 0, %v3747_v41  ;;  %v3215_v50 = vsel %vm3211_vm4, %v3195_v55, %v3198_v29  ;;  %v3222_v4 = vsel %vm3212_vm12, %v3219_v58, %v3221_v61  ;;  %v3226_v0 = vsel %vm3212_vm12, %v3223_v60, %v3225_v16 }
 0x518   :  { %vm3063_vm1 = vweird.f32 %v6454_v3  ;;  %v3355_v49 = vsub.s32 32, %v3354_v23  ;;  %v3359_v62 = vsub.s32 4294967266, %v3354_v23  ;;  %v3217_v6 = vsel %vm3213_vm0, %v3201_v20, %v3216_v46 }
 0x519   :  { %v3501_v19 = vadd.s32 1, %v3753_v34  ;;  %v6751_v39 = vmul.u32.u64.low %v3227_v43, %v3226_v0  ;;  %v6752_v17 = vmul.u32.u64.high %v3227_v43, %v3226_v0, %v6751_v39  ;;  %v3356_v27 = vshll.u32 %v6706_v57, %v3354_v23 }
 0x51a   :  { %v6754_v44 = vmul.u32.u64.low %v3227_v43, %v3222_v4  ;;  %v6755_v33 = vmul.u32.u64.high %v3227_v43, %v3222_v4, %v6754_v44  ;;  %v3357_v42 = vshrl.u32 %v3339_v13, %v3355_v49  ;;  %v3360_v2 = vadd.s32 127, %v3359_v62 }
 0x51b   :  { %vm3502_vm13 = vcmp.gt.s32.totalorder %v3501_v19, 0  ;;  %v4226_v30 = vpop.eup %4225  ;;  %vm3067_vm15 = vcmp.eq.s32.totalorder %v6701_v40, 0  ;;  %vm3070_vm9 = vcmp.eq.s32.totalorder %v6701_v40, 2  ;;  %v3218_v36 = vsel %vm3212_vm12, %v3215_v50, %v3217_v6 }
 0x51c   :  { %v3503_v10 = vsel %vm3502_vm13, %v3501_v19, 0  ;;  %v4228_v48 = vpop.eup %4227  ;;  %v3071_v54 = vxor.u32 2147483648, %v4226_v30  ;;  %v3358_v22 = vor.u32 %v3357_v42, %v3356_v27  ;;  %v3361_v56 = vshll.u32 %v3360_v2, 23 }
 0x51d   :  { %v3498_v29 = vand.u32 8388607, %v3491_v24  ;;  %v3068_v57 = vxor.u32 2147483648, %v4228_v48  ;;  %v3372_v13 = vsel %vm6733_vm14, 0, %v3370_v14  ;;  %vm3236_vm10 = vc.u32 %v6752_v17, %v6754_v44 }
 0x51e   :  { %v3237_v31 = vadd.s32 1, %v6755_v33  ;;  %v3072_v37 = vsel %vm3070_vm9, %v3071_v54, %v4228_v48  ;;  %v3362_v38 = vor.u32 4788187, %v3361_v56  ;;  %v3234_v51 = vmul.u32 %v3227_v43, %v3218_v36 }
 0x51f   :  { %v3505_v20 = vand.u32 31, %v3503_v10  ;;  %vm3066_vm6 = vcmp.lt.s32.totalorder %v6701_v40, 2  ;;  %v3069_v45 = vsel %vm3067_vm15, %v4226_v30, %v3068_v57  ;;  %v3365_v11 = vcvt.s32.f32 %v3358_v22 }
 0x520   :  { %v3238_v47 = vsel %vm3236_vm10, %v3237_v31, %v6755_v33  ;;  %v3073_v5 = vsel %vm3066_vm6, %v3069_v45, %v3072_v37  ;;  %v3363_v8 = vand.u32 2147483647, %v3362_v38  ;;  %v3376_v35 = vadd.s32 3, %v3372_v13 }
 0x521   :  { %v3239_v34 = vadd.s32 %v3238_v47, %v3234_v51  ;;  %v3506_v14 = vsub.s32 32, %v3505_v20  ;;  %v3074_v55 = vsel %vm3063_vm1, nan, %v3073_v5  ;;  %v3499_v41 = vor.u32 8388608, %v3498_v29 }
 0x522   :  { %v3504_v58 = vshrl.u32 %v3503_v10, 5  ;;  %3599 = vst [vmem:[#allocation5 + $0x20] sm:$0xff] %v3074_v55  ;;  %v3366_v43 = vmul.f32 %v3365_v11, %v3363_v8  ;;  %v3508_v52 = vshll.u32 %v6971_v59, %v3505_v20  ;;  %v3511_v60 = vshll.u32 %v6966_v28, %v3505_v20 }
 0x523   :  { %v3240_v46 = vadd.s32 536870912, %v3239_v34  ;;  %v3509_v40 = vshrl.u32 %v6966_v28, %v3506_v14  ;;  %v3512_v25 = vshrl.u32 %v6967_v12, %v3506_v14  ;;  %v3515_v61 = vshrl.u32 %v6974_v32, %v3506_v14 }
 0x524   :  { %v3518_v16 = vshrl.u32 %v6975_v7, %v3506_v14  ;;  %v3367_v3 = vxor.u32 2147483648, %v3366_v43  ;;  %v3514_v50 = vshll.u32 %v6967_v12, %v3505_v20  ;;  %v3517_v4 = vshll.u32 %v6974_v32, %v3505_v20 }
 0x525   :  { %v6782_v23 = vshrl.u32 %v3240_v46, 30  ;;  %v3510_v0 = vor.u32 %v3509_v40, %v3508_v52  ;;  %v3513_v49 = vor.u32 %v3512_v25, %v3511_v60  ;;  %v3520_v62 = vshll.u32 %v6975_v7, %v3505_v20 }
 0x526   :  { %v3521_v6 = vshrl.u32 %v6969_v1, %v3506_v14  ;;  %v3368_v19 = vsel %vm3285_vm8, %v3367_v3, %v3366_v43  ;;  %v3516_v33 = vor.u32 %v3515_v61, %v3514_v50  ;;  %v3519_v27 = vor.u32 %v3518_v16, %v3517_v4 }
 0x527   :  { %v3242_v39 = vshll.u32 %v6782_v23, 30  ;;  %v3371_v42 = vsel %vm6733_vm14, %v6539_v26, %v3368_v19  ;;  %v3377_v2 = vand.u32 3, %v3376_v35  ;;  %v3539_v36 = vshll.u32 %v3499_v41, 8 }
 0x528   :  { %v3522_v30 = vor.u32 %v3521_v6, %v3520_v62  ;;  %4229 = vcosq.f32 %v3371_v42  ;;  %vm3523_vm7 = vcmp.lt.s32.totalorder %v3504_v58, 1  ;;  %v6796_v48 = vadd.f32 %v6643_v9, %v6332_v63 }
 0x529   :  { %v3243_v10 = vsub.s32 %v3239_v34, %v3242_v39  ;;  %4231 = vsinq.f32 %v3371_v42  ;;  %v3507_v54 = vshrl.u32 %v6971_v59, %v3506_v14  ;;  %vm3526_vm3 = vcmp.lt.s32.totalorder %v3504_v58, 4 }
 0x52a   :  { %v3531_v22 = vsel %vm3523_vm7, %v3510_v0, %v3513_v49  ;;  %vm3525_vm11 = vcmp.lt.s32.totalorder %v3504_v58, 3  ;;  %v3528_v29 = vsel %vm3526_vm3, %v3516_v33, 2102212464  ;;  %v3532_v18 = vsel %vm3526_vm3, %v3519_v27, 920167782 }
 0x52b   :  { %v3245_v56 = vsub.s32 0, %v3243_v10  ;;  %vm3524_vm8 = vcmp.lt.s32.totalorder %v3504_v58, 2  ;;  %v3533_v57 = vsel %vm3525_vm11, %v3516_v33, %v3532_v18  ;;  %v3535_v13 = vsel %vm3523_vm7, %v3513_v49, %v3516_v33 }
 0x52c   :  { %v3536_v31 = vsel %vm3526_vm3, %v3522_v30, 1326507024  ;;  %v3527_v38 = vsel %vm3523_vm7, %v3507_v54, %v3510_v0  ;;  %v3534_v51 = vsel %vm3524_vm8, %v3531_v22, %v3533_v57  ;;  %v3529_v45 = vsel %vm3525_vm11, %v3513_v49, %v3528_v29 }
 0x52d   :  { %v3742_v37 = vmin.u32 %v3245_v56, %v3243_v10  ;;  %v3537_v20 = vsel %vm3525_vm11, %v3519_v27, %v3536_v31  ;;  %v6799_v9 = vmul.u32.u64.low %v3539_v36, %v3534_v51  ;;  %v6800_v11 = vmul.u32.u64.high %v3539_v36, %v3534_v51, %v6799_v9 }
 0x52e   :  { %v3538_v63 = vsel %vm3524_vm8, %v3535_v13, %v3537_v20  ;;  %v3530_v14 = vsel %vm3524_vm8, %v3527_v38, %v3529_v45  ;;  %v3390_v55 = vand.u32 2139095040, %v6796_v48  ;;  %vm3378_vm4 = vcmp.lt.s32.totalorder %v3377_v2, 2 }
 0x52f   :  { %v3247_v47 = vclz %v3742_v37  ;;  %v6803_v5 = vmul.u32.u64.low %v3539_v36, %v3538_v63  ;;  %v6804_v8 = vmul.u32.u64.high %v3539_v36, %v3538_v63, %v6803_v5  ;;  %vm3379_vm14 = vcmp.eq.s32.totalorder %v3377_v2, 0 }
 0x530   :  { %v3549_v35 = vadd.s32 1, %v6800_v11  ;;  %vm3382_vm0 = vcmp.eq.s32.totalorder %v3377_v2, 2  ;;  %v3235_v58 = vadd.s32 %v6754_v44, %v6752_v17  ;;  %v3391_v43 = vshrl.u32 %v3390_v55, 23 }
 0x531   :  { %v3743_v34 = vadd.s32 4294967294, %v3247_v47  ;;  %v3546_v60 = vmul.u32 %v3539_v36, %v3530_v14  ;;  %vm3548_vm2 = vc.u32 %v6804_v8, %v6799_v9  ;;  %v3387_v3 = vand.u32 2147483647, %v6796_v48 }
 0x532   :  { %v4230_v41 = vpop.eup %4229  ;;  %v3550_v0 = vsel %vm3548_vm2, %v3549_v35, %v6800_v11  ;;  %v3749_v49 = vadd.s32 4294967169, %v3391_v43  ;;  %vm3375_vm12 = vweird.f32 %v6539_v26  ;;  %v3265_v39 = vsub.s32 4, %v6782_v23 }
 0x533   :  { %vm3744_vm5 = vcmp.lt.s32.totalorder %v3743_v34, 0  ;;  %v4232_v46 = vpop.eup %4231  ;;  %v3383_v52 = vxor.u32 2147483648, %v4230_v41  ;;  %v3551_v6 = vadd.s32 %v3550_v0, %v3546_v60  ;;  %vm3181_vm1 = vcmp.lt.s32.totalorder %v6647_v53, 0 }
 0x534   :  { %v3250_v40 = vsel %vm3744_vm5, 0, %v3743_v34  ;;  %v3380_v25 = vxor.u32 2147483648, %v4232_v46  ;;  %v3397_v33 = vadd.s32 1, %v3749_v49  ;;  %v3394_v22 = vand.u32 8388607, %v3387_v3 }
 0x535   :  { %v3251_v61 = vsub.s32 32, %v3250_v40  ;;  %v3255_v16 = vsub.s32 4294967266, %v3250_v40  ;;  %v3384_v50 = vsel %vm3382_vm0, %v3383_v52, %v4232_v46  ;;  %v3252_v4 = vshll.u32 %v3243_v10, %v3250_v40 }
 0x536   :  { %v3381_v17 = vsel %vm3379_vm14, %v4230_v41, %v3380_v25  ;;  %v3552_v36 = vadd.s32 536870912, %v3551_v6  ;;  %vm3398_vm13 = vcmp.gt.s32.totalorder %v3397_v33, 0  ;;  %v3266_v2 = vsel %vm3181_vm1, %v3265_v39, %v6782_v23 }
 0x537   :  { %v3253_v44 = vshrl.u32 %v3235_v58, %v3251_v61  ;;  %v3256_v62 = vadd.s32 127, %v3255_v16  ;;  %v3385_v19 = vsel %vm3378_vm4, %v3381_v17, %v3384_v50  ;;  %v3399_v26 = vsel %vm3398_vm13, %v3397_v33, 0 }
 0x538   :  { %v3386_v27 = vsel %vm3375_vm12, nan, %v3385_v19  ;;  %v6819_v54 = vshrl.u32 %v3552_v36, 30  ;;  %v3401_v56 = vand.u32 31, %v3399_v26  ;;  %vm6829_vm15 = vcmp.le.f32.partialorder %v3179_v21, 0.7853982 }
 0x539   :  { %v3254_v42 = vor.u32 %v3253_v44, %v3252_v4  ;;  %v3257_v30 = vshll.u32 %v3256_v62, 23  ;;  %3602 = vst [vmem:[#allocation5 + $0x38] sm:$0xff] %v3386_v27  ;;  %v3268_v38 = vsel %vm6829_vm15, 0, %v3266_v2  ;;  %v3395_v20 = vor.u32 8388608, %v3394_v22 }
 0x53a   :  { %v3554_v57 = vshll.u32 %v6819_v54, 30  ;;  %v3402_v31 = vsub.s32 32, %v3401_v56  ;;  %v3400_v45 = vshrl.u32 %v3399_v26, 5  ;;  %v3404_v23 = vshll.u32 %v6971_v59, %v3401_v56 }
 0x53b   :  { %v3258_v10 = vor.u32 4788187, %v3257_v30  ;;  %v3261_v18 = vcvt.s32.f32 %v3254_v42  ;;  %v3407_v21 = vshll.u32 %v6966_v28, %v3401_v56  ;;  %v3410_v55 = vshll.u32 %v6967_v12, %v3401_v56 }
 0x53c   :  { %v3555_v51 = vsub.s32 %v3551_v6, %v3554_v57  ;;  %v3405_v63 = vshrl.u32 %v6966_v28, %v3402_v31  ;;  %v3408_v11 = vshrl.u32 %v6967_v12, %v3402_v31  ;;  %v3411_v34 = vshrl.u32 %v6974_v32, %v3402_v31 }
 0x53d   :  { %v3259_v29 = vand.u32 2147483647, %v3258_v10  ;;  %v3413_v35 = vshll.u32 %v6974_v32, %v3401_v56  ;;  %v3414_v41 = vshrl.u32 %v6975_v7, %v3402_v31  ;;  %v3416_v52 = vshll.u32 %v6975_v7, %v3401_v56 }
 0x53e   :  { %v3557_v5 = vsub.s32 0, %v3555_v51  ;;  %v3406_v14 = vor.u32 %v3405_v63, %v3404_v23  ;;  %v3409_v46 = vor.u32 %v3408_v11, %v3407_v21  ;;  %v3412_v40 = vor.u32 %v3411_v34, %v3410_v55 }
 0x53f   :  { %v3262_v37 = vmul.f32 %v3261_v18, %v3259_v29  ;;  %v3415_v60 = vor.u32 %v3414_v41, %v3413_v35  ;;  %v3417_v25 = vshrl.u32 %v6969_v1, %v3402_v31  ;;  %v3272_v12 = vadd.s32 3, %v3268_v38 }
 0x540   :  { %v3754_v43 = vmin.u32 %v3557_v5, %v3555_v51  ;;  %v3547_v32 = vadd.s32 %v6799_v9, %v6804_v8  ;;  %v3403_v16 = vshrl.u32 %v6971_v59, %v3402_v31  ;;  %v3435_v4 = vshll.u32 %v3395_v20, 8 }
 0x541   :  { %v3263_v47 = vxor.u32 2147483648, %v3262_v37  ;;  %v3418_v50 = vor.u32 %v3417_v25, %v3416_v52  ;;  %vm3419_vm9 = vcmp.lt.s32.totalorder %v3400_v45, 1  ;;  %vm3421_vm10 = vcmp.lt.s32.totalorder %v3400_v45, 3 }
 0x542   :  { %v3559_v61 = vclz %v3754_v43  ;;  %vm3422_vm6 = vcmp.lt.s32.totalorder %v3400_v45, 4  ;;  %v3427_v49 = vsel %vm3419_vm9, %v3406_v14, %v3409_v46  ;;  %v3431_v44 = vsel %vm3419_vm9, %v3409_v46, %v3412_v40 }
 0x543   :  { %v3264_v58 = vsel %vm3181_vm1, %v3263_v47, %v3262_v37  ;;  %v3424_v0 = vsel %vm3422_vm6, %v3412_v40, 2102212464  ;;  %v3428_v17 = vsel %vm3422_vm6, %v3415_v60, 920167782  ;;  %vm3420_vm3 = vcmp.lt.s32.totalorder %v3400_v45, 2 }
 0x544   :  { %v3267_v28 = vsel %vm6829_vm15, %v6647_v53, %v3264_v58  ;;  %v3755_v7 = vadd.s32 4294967294, %v3559_v61  ;;  %v3429_v1 = vsel %vm3421_vm10, %v3412_v40, %v3428_v17  ;;  %v3432_v62 = vsel %vm3422_vm6, %v3418_v50, 1326507024 }
 0x545   :  { %4233 = vcosq.f32 %v3267_v28  ;;  %v3423_v8 = vsel %vm3419_vm9, %v3403_v16, %v3406_v14  ;;  %v3430_v6 = vsel %vm3420_vm3, %v3427_v49, %v3429_v1  ;;  %v3433_v59 = vsel %vm3421_vm10, %v3415_v60, %v3432_v62 }
 0x546   :  { %4235 = vsinq.f32 %v3267_v28  ;;  %vm3756_vm7 = vcmp.lt.s32.totalorder %v3755_v7, 0  ;;  %v3425_v33 = vsel %vm3421_vm10, %v3409_v46, %v3424_v0  ;;  %v3434_v27 = vsel %vm3420_vm3, %v3431_v44, %v3433_v59 }
 0x547   :  { %v3562_v9 = vsel %vm3756_vm7, 0, %v3755_v7  ;;  %v6858_v42 = vmul.u32.u64.low %v3435_v4, %v3434_v27  ;;  %v6859_v30 = vmul.u32.u64.high %v3435_v4, %v3434_v27, %v6858_v42  ;;  %v3273_v22 = vand.u32 3, %v3272_v12 }
 0x548   :  { %v3563_v19 = vsub.s32 32, %v3562_v9  ;;  %v3567_v39 = vsub.s32 4294967266, %v3562_v9  ;;  %v6861_v36 = vmul.u32.u64.low %v3435_v4, %v3430_v6  ;;  %v6862_v10 = vmul.u32.u64.high %v3435_v4, %v3430_v6, %v6861_v36 }
 0x549   :  { %v3564_v26 = vshll.u32 %v3555_v51, %v3562_v9  ;;  %v3426_v29 = vsel %vm3420_vm3, %v3423_v8, %v3425_v33  ;;  %vm3278_vm8 = vcmp.eq.s32.totalorder %v3273_v22, 2  ;;  %vm3274_vm4 = vcmp.lt.s32.totalorder %v3273_v22, 2 }
 0x54a   :  { %v3565_v2 = vshrl.u32 %v3547_v32, %v3563_v19  ;;  %v3568_v56 = vadd.s32 127, %v3567_v39  ;;  %vm3444_vm11 = vc.u32 %v6859_v30, %v6861_v36  ;;  %v3445_v38 = vadd.s32 1, %v6862_v10 }
 0x54b   :  { %v3442_v63 = vmul.u32 %v3435_v4, %v3426_v29  ;;  %vm3275_vm14 = vcmp.eq.s32.totalorder %v3273_v22, 0  ;;  %vm3271_vm0 = vweird.f32 %v6647_v53  ;;  %v3577_v14 = vsub.s32 4, %v6819_v54 }
 0x54c   :  { %v3566_v57 = vor.u32 %v3565_v2, %v3564_v26  ;;  %v3569_v13 = vshll.u32 %v3568_v56, 23  ;;  %v3446_v11 = vsel %vm3444_vm11, %v3445_v38, %v6862_v10  ;;  %vm3493_vm5 = vcmp.lt.s32.totalorder %v6689_v15, 0 }
 0x54d   :  { %v3447_v21 = vadd.s32 %v3446_v11, %v3442_v63  ;;  %v3578_v46 = vsel %vm3493_vm5, %v3577_v14, %v6819_v54  ;;  %vm3492_vm2 = vcmp.le.f32.partialorder %v3491_v24, 0.7853982  ;;  %v3443_v49 = vadd.s32 %v6861_v36, %v6859_v30 }
 0x54e   :  { %v3570_v23 = vor.u32 4788187, %v3569_v13  ;;  %v3573_v5 = vcvt.s32.f32 %v3566_v57  ;;  %v3580_v40 = vsel %vm3492_vm2, 0, %v3578_v46  ;;  %vm3583_vm9 = vweird.f32 %v6689_v15 }
 0x54f   :  { %v4234_v18 = vpop.eup %4233  ;;  %v3448_v41 = vadd.s32 536870912, %v3447_v21  ;;  %v3584_v12 = vadd.s32 3, %v3580_v40  ;;  %vm3389_vm10 = vcmp.lt.s32.totalorder %v6796_v48, 0  ;;  %vm3388_vm6 = vcmp.le.f32.partialorder %v3387_v3, 0.7853982 }
 0x550   :  { %v4236_v31 = vpop.eup %4235  ;;  %v3279_v37 = vxor.u32 2147483648, %v4234_v18  ;;  %v3571_v47 = vand.u32 2147483647, %v3570_v23 }
 0x551   :  { %v3276_v20 = vxor.u32 2147483648, %v4236_v31  ;;  %v3449_v43 = vshrl.u32 %v3448_v41, 30  ;;  %v3585_v16 = vand.u32 3, %v3584_v12 }
 0x552   :  { %v3280_v51 = vsel %vm3278_vm8, %v3279_v37, %v4236_v31  ;;  %v3574_v35 = vmul.f32 %v3573_v5, %v3571_v47  ;;  %vm3479_vm8 = vweird.f32 %v6796_v48 }
 0x553   :  { %v3277_v45 = vsel %vm3275_vm14, %v4234_v18, %v3276_v20  ;;  %v3450_v28 = vshll.u32 %v3449_v43, 30  ;;  %vm3590_vm1 = vcmp.eq.s32.totalorder %v3585_v16, 2  ;;  %vm3586_vm13 = vcmp.lt.s32.totalorder %v3585_v16, 2 }
 0x554   :  { %v3281_v34 = vsel %vm3274_vm4, %v3277_v45, %v3280_v51  ;;  %v3575_v58 = vxor.u32 2147483648, %v3574_v35  ;;  %vm3587_vm15 = vcmp.eq.s32.totalorder %v3585_v16, 0  ;;  %v3473_v36 = vsub.s32 4, %v3449_v43 }
 0x555   :  { %v3282_v55 = vsel %vm3271_vm0, nan, %v3281_v34  ;;  %v3451_v60 = vsub.s32 %v3447_v21, %v3450_v28 }
 0x556   :  { %3601 = vst [vmem:[#allocation5 + $0x30] sm:$0xff] %v3282_v55  ;;  %v3576_v52 = vsel %vm3493_vm5, %v3575_v58, %v3574_v35  ;;  %v3474_v2 = vsel %vm3389_vm10, %v3473_v36, %v3449_v43 }
 0x557   :  { %v3579_v53 = vsel %vm3492_vm2, %v6689_v15, %v3576_v52  ;;  %v3453_v25 = vsub.s32 0, %v3451_v60  ;;  %v3476_v56 = vsel %vm3388_vm6, 0, %v3474_v2 }
 0x558   :  { %4237 = vcosq.f32 %v3579_v53  ;;  %v3480_v29 = vadd.s32 3, %v3476_v56 }
 0x559   :  { %4239 = vsinq.f32 %v3579_v53  ;;  %v3750_v32 = vmin.u32 %v3453_v25, %v3451_v60 }
 0x55a   :  { %v3481_v18 = vand.u32 3, %v3480_v29 }
 0x55b   :  { %v3455_v61 = vclz %v3750_v32 }
 0x55c   :  { %vm3486_vm7 = vcmp.eq.s32.totalorder %v3481_v18, 2  ;;  %vm3483_vm3 = vcmp.eq.s32.totalorder %v3481_v18, 0  ;;  %vm3482_vm11 = vcmp.lt.s32.totalorder %v3481_v18, 2 }
 0x55d   :  { %v3751_v50 = vadd.s32 4294967294, %v3455_v61 }
 0x55f   :  { %vm3752_vm12 = vcmp.lt.s32.totalorder %v3751_v50, 0 }
 0x560   :  { %v3458_v24 = vsel %vm3752_vm12, 0, %v3751_v50 }
 0x561   :  { %v3459_v17 = vsub.s32 32, %v3458_v24  ;;  %v3463_v44 = vsub.s32 4294967266, %v3458_v24  ;;  %v3460_v9 = vshll.u32 %v3451_v60, %v3458_v24 }
 0x562   :  { %v4238_v4 = vpop.eup %4237 }
 0x563   :  { %v4240_v54 = vpop.eup %4239  ;;  %v3591_v7 = vxor.u32 2147483648, %v4238_v4  ;;  %v3461_v8 = vshrl.u32 %v3443_v49, %v3459_v17  ;;  %v3464_v6 = vadd.s32 127, %v3463_v44 }
 0x564   :  { %v3588_v0 = vxor.u32 2147483648, %v4240_v54 }
 0x565   :  { %v3592_v1 = vsel %vm3590_vm1, %v3591_v7, %v4240_v54  ;;  %v3462_v39 = vor.u32 %v3461_v8, %v3460_v9  ;;  %v3465_v33 = vshll.u32 %v3464_v6, 23 }
 0x566   :  { %v3589_v62 = vsel %vm3587_vm15, %v4238_v4, %v3588_v0 }
 0x567   :  { %v3593_v59 = vsel %vm3586_vm13, %v3589_v62, %v3592_v1  ;;  %v3466_v27 = vor.u32 4788187, %v3465_v33  ;;  %v3469_v10 = vcvt.s32.f32 %v3462_v39 }
 0x568   :  { %v3594_v19 = vsel %vm3583_vm9, nan, %v3593_v59 }
 0x569   :  { %3604 = vst [vmem:[#allocation5 + $0x48] sm:$0x7] %v3594_v19  ;;  %v3467_v42 = vand.u32 2147483647, %v3466_v27 }
 0x56b   :  { %v3470_v30 = vmul.f32 %v3469_v10, %v3467_v42 }
 0x56d   :  { %v3471_v22 = vxor.u32 2147483648, %v3470_v30 }
 0x56f   :  { %v3472_v26 = vsel %vm3389_vm10, %v3471_v22, %v3470_v30 }
 0x570   :  { %v3475_v15 = vsel %vm3388_vm6, %v6796_v48, %v3472_v26 }
 0x571   :  { %4241 = vcosq.f32 %v3475_v15 }
 0x572   :  { %4243 = vsinq.f32 %v3475_v15 }
 0x57b   :  { %v4242_v57 = vpop.eup %4241 }
 0x57c   :  { %v4244_v13 = vpop.eup %4243  ;;  %v3487_v31 = vxor.u32 2147483648, %v4242_v57 }
 0x57d   :  { %v3484_v37 = vxor.u32 2147483648, %v4244_v13 }
 0x57e   :  { %v3488_v38 = vsel %vm3486_vm7, %v3487_v31, %v4244_v13 }
 0x57f   :  { %v3485_v3 = vsel %vm3483_vm3, %v4242_v57, %v3484_v37 }
 0x580   :  { %v3489_v20 = vsel %vm3482_vm11, %v3485_v3, %v3488_v38 }
 0x581   :  { %v3490_v23 = vsel %vm3479_vm8, nan, %v3489_v20 }
 0x582   :  { %3603 = vst [vmem:[#allocation5 + $0x40] sm:$0xff] %v3490_v23 }
 0x583   :  { %4280 = shalt.err (!%p4277_p12)
}
 0x584   :  { %s4281_s10 = scalar_lea.hbm %s6901_s4, 1280 }
 0x585   :  { %p4282_p13 = scmp.ne.s32.totalorder %s6901_s4, %s4281_s10  ;;  %p4285_p0 = scmp.lt.u32.totalorder %s4281_s10, %s6901_s4 }
 0x587   :  { %p4287_p1 = pnand %p4285_p0, %p4282_p13 }
 0x589   :  { %4290 = shalt.err (!%p4287_p1)
}
 0x58a   :  { %3616 = dma.vmem_to_hbm [thread:$0]  %s3611_s8, 1280, %s6901_s4, [#allocation4], %s4296_s25, %s4296_s25, %s4297_s26  }
 0x58b   :  { %4293 = dma.done.wait [#allocation4], 1280  }
 0x58c   :  { %4294 = vsyncadd [#allocation4], 4294966016 }
 0x58d   :  { %3620 = vsyncpa [#allocation3], 1 }
 0x58e   :  { %3621 = vsyncpa [#allocation4], 1 }

</bundles_post_ra>
